<compile_context>
chip_gen: v5e
topology: v5e:2x2
jax: 0.10.0
libtpu: 0.0.40
codegen_flags: <defaults>
</compile_context>

<pallas_src>
import jax
import jax.numpy as jnp
from jax.experimental import pallas as pl
from jax.experimental.pallas import tpu as pltpu


def decoder_kernel(x_ref, w0_ref, bnb_ref, w1_ref, w2_ref, b2_ref,
                   wp_ref, bp_ref, out_ref, y_scr, pool_scr):
    t = pl.program_id(1)
    num_t = pl.num_programs(1)
    tile_hw = x_ref.shape[2]
    full_hw = y_scr.shape[1]

    @pl.when(t == 0)
    def _():
        pool_scr[...] = jnp.zeros_like(pool_scr)

    # ---- conv0: 1x1 conv (BN scale pre-folded into w0) + BN bias + ReLU ----
    # channels-first: (Cmid, Cin)bf16 @ (Cin, T)bf16 -> (Cmid, T)f32
    y = jnp.dot(w0_ref[...], x_ref[0], preferred_element_type=jnp.float32)
    y = jnp.maximum(y + bnb_ref[...], 0.0)

    # ---- SE global-average-pool: accumulate per-channel sum across HW tiles ----
    pool_scr[...] += jnp.sum(y, axis=1, keepdims=True)             # (Cmid, 1) f32

    # stash conv0 activations (bf16) for the gated classifier pass
    off = pl.multiple_of(t * tile_hw, tile_hw)
    y_scr[:, pl.ds(off, tile_hw)] = y.astype(y_scr.dtype)

    # ---- last HW tile of this image: SE gate + pred_conv ----
    @pl.when(t == num_t - 1)
    def _():
        pooled = pool_scr[...] * (1.0 / full_hw)                   # mean over full H*W
        h = jnp.maximum(
            jnp.dot(w1_ref[...], pooled, preferred_element_type=jnp.float32), 0.0)
        z = jnp.dot(w2_ref[...], h, preferred_element_type=jnp.float32) + b2_ref[...]
        gate = 1.0 + jax.nn.sigmoid(z)                             # out + se(out)*out == out*(1+s)
        y2 = y_scr[...] * gate.astype(y_scr.dtype)                 # (Cmid, HW) bf16
        # pred_conv: Dropout2d is identity at inference; 1x1 conv with bias
        out = jnp.dot(wp_ref[...], y2, preferred_element_type=jnp.float32)
        out_ref[0] = (out + bp_ref[...]).astype(out_ref.dtype)


def _pick_hw_tile(hw, max_tile=2048):
    """Largest multiple of 128 that divides hw and is <= max_tile (else whole hw)."""
    if hw % 128 != 0:
        return hw
    best = 128
    t = 128
    while t <= min(hw, max_tile):
        if hw % t == 0:
            best = t
        t += 128
    return best


def _prepare_kernel_params(params):
    inv = params['gamma'] / jnp.sqrt(params['rvar'] + params['eps'])
    w0_folded = (params['w0'] * inv[:, None]).astype(jnp.bfloat16)   # (Cmid, Cin)
    bn_bias = (params['beta'] - params['rmean'] * inv)[:, None]      # (Cmid, 1) f32
    w1 = params['w1']                                                # (Cmid, Cmid) f32 (tiny matvec)
    w2 = params['w2']                                                # (Cmid, Cmid) f32
    b2 = params['b2'][:, None]                                       # (Cmid, 1) f32
    wp = params['wp'].astype(jnp.bfloat16)                           # (num_classes, Cmid)
    bp = params['bp'][:, None]                                       # (num_classes, 1) f32
    return w0_folded, bn_bias, w1, w2, b2, wp, bp


def decoder_forward(x_nchw, params, *, max_hw_tile=2048):
    """x_nchw: (N, 512, H, W) float32. Returns (N, num_classes, H, W) float32."""
    N, Cin, H, W = x_nchw.shape
    HW = H * W
    w0_bf, bn_b, w1, w2, b2, wp_bf, bp = _prepare_kernel_params(params)
    Cmid = w0_bf.shape[0]
    nc = wp_bf.shape[0]

    T = _pick_hw_tile(HW, max_hw_tile)
    n_t = HW // T

    # NCHW -> (N, Cin, HW) is a pure reshape (no transpose); cast MXU operand to bf16.
    x_cf = x_nchw.reshape(N, Cin, HW).astype(jnp.bfloat16)

    out = pl.pallas_call(
        decoder_kernel,
        out_shape=jax.ShapeDtypeStruct((N, nc, HW), jnp.float32),
        grid_spec=pltpu.PrefetchScalarGridSpec(
            num_scalar_prefetch=0,
            grid=(N, n_t),
            in_specs=[
                pl.BlockSpec((1, Cin, T), lambda n, t: (n, 0, t)),     # x tile (channels-first)
                pl.BlockSpec((Cmid, Cin), lambda n, t: (0, 0)),        # conv0 weight (BN-folded, bf16)
                pl.BlockSpec((Cmid, 1), lambda n, t: (0, 0)),          # BN bias
                pl.BlockSpec((Cmid, Cmid), lambda n, t: (0, 0)),       # se conv1 weight
                pl.BlockSpec((Cmid, Cmid), lambda n, t: (0, 0)),       # se conv2 weight
                pl.BlockSpec((Cmid, 1), lambda n, t: (0, 0)),          # se conv2 bias
                pl.BlockSpec((nc, Cmid), lambda n, t: (0, 0)),         # pred weight (bf16)
                pl.BlockSpec((nc, 1), lambda n, t: (0, 0)),            # pred bias
            ],
            out_specs=pl.BlockSpec((1, nc, HW), lambda n, t: (n, 0, 0)),
            scratch_shapes=[
                pltpu.VMEM((Cmid, HW), jnp.bfloat16),                  # stashed conv0 activations
                pltpu.VMEM((Cmid, 1), jnp.float32),                    # SE pool accumulator
            ],
        ),
        compiler_params=pltpu.CompilerParams(
            dimension_semantics=("parallel", "arbitrary"),
            vmem_limit_bytes=48 * 1024 * 1024,
        ),
    )(x_cf, w0_bf, bn_b, w1, w2, b2, wp_bf, bp)

    # (N, num_classes, HW) -> NCHW: pure reshape, no transpose.
    return out.reshape(N, nc, H, W)


def reference_forward(x_nchw, params):
    """Pure-f32 JAX reference of the PyTorch forward (inference)."""
    w0, gamma, beta = params['w0'], params['gamma'], params['beta']
    rmean, rvar, eps = params['rmean'], params['rvar'], params['eps']
    w1, w2, b2, wp, bp = params['w1'], params['w2'], params['b2'], params['wp'], params['bp']

    inv = gamma / jnp.sqrt(rvar + eps)
    y = jnp.einsum('oc,nchw->nohw', w0, x_nchw)
    y = y * inv[None, :, None, None] + (beta - rmean * inv)[None, :, None, None]
    y = jnp.maximum(y, 0.0)
    pooled = jnp.mean(y, axis=(2, 3), keepdims=True)
    h = jnp.maximum(jnp.einsum('oc,nchw->nohw', w1, pooled), 0.0)
    s = jax.nn.sigmoid(jnp.einsum('oc,nchw->nohw', w2, h) + b2[None, :, None, None])
    y2 = y + s * y
    out = jnp.einsum('oc,nchw->nohw', wp, y2) + bp[None, :, None, None]
    return out


def make_params(key, cin=512, cmid=256, num_classes=8, eps=1e-5):
    ks = jax.random.split(key, 10)
    w0 = jax.random.normal(ks[0], (cmid, cin), jnp.float32) * 0.05       # conv0 (Cout, Cin)
    gamma = 1.0 + 0.1 * jax.random.normal(ks[1], (cmid,), jnp.float32)
    beta = 0.1 * jax.random.normal(ks[2], (cmid,), jnp.float32)
    rmean = 0.1 * jax.random.normal(ks[3], (cmid,), jnp.float32)
    rvar = jnp.abs(jax.random.normal(ks[4], (cmid,), jnp.float32)) + 0.5
    w1 = jax.random.normal(ks[5], (cmid, cmid), jnp.float32) * 0.05      # se conv1 (Cout, Cin)
    w2 = jax.random.normal(ks[6], (cmid, cmid), jnp.float32) * 0.05      # se conv2 (Cout, Cin)
    b2 = 0.1 * jax.random.normal(ks[7], (cmid,), jnp.float32)
    wp = jax.random.normal(ks[8], (num_classes, cmid), jnp.float32) * 0.05
    bp = 0.1 * jax.random.normal(ks[9], (num_classes,), jnp.float32)
    return dict(w0=w0, gamma=gamma, beta=beta, rmean=rmean, rvar=rvar,
                w1=w1, w2=w2, b2=b2, wp=wp, bp=bp, eps=eps)


if __name__ == "__main__":
    key = jax.random.PRNGKey(0)
    k_x, k_p = jax.random.split(key)

    N, Cin, H, W = 2, 512, 16, 16
    num_classes = 8
    x = jax.random.normal(k_x, (N, Cin, H, W), jnp.float32)
    params = make_params(k_p, cin=Cin, cmid=256, num_classes=num_classes)

    out = jax.block_until_ready(decoder_forward(x, params))
    ref = jax.block_until_ready(reference_forward(x, params))

    assert out.shape == (N, num_classes, H, W), out.shape
    max_err = float(jnp.max(jnp.abs(out - ref)))
    # bf16 MXU operands vs. pure-f32 reference -> loosened tolerance (f32 accumulation).
    assert jnp.allclose(out, ref, atol=5e-2, rtol=5e-2), max_err

    print("KERNEL_OK")
</pallas_src>

<mosaic_0001>
module attributes {stable_mosaic.version = 11 : i64} {
  func.func @decoder_kernel(%arg0: i32, %arg1: i32, %arg2: memref<1x512x256xbf16, #tpu.memory_space<vmem>>, %arg3: memref<256x512xbf16, #tpu.memory_space<vmem>>, %arg4: memref<256x1xf32, #tpu.memory_space<vmem>>, %arg5: memref<256x256xf32, #tpu.memory_space<vmem>>, %arg6: memref<256x256xf32, #tpu.memory_space<vmem>>, %arg7: memref<256x1xf32, #tpu.memory_space<vmem>>, %arg8: memref<8x256xbf16, #tpu.memory_space<vmem>>, %arg9: memref<8x1xf32, #tpu.memory_space<vmem>>, %arg10: memref<1x8x256xf32, #tpu.memory_space<vmem>>, %arg11: memref<256x256xbf16, #tpu.memory_space<vmem>>, %arg12: memref<256x1xf32, #tpu.memory_space<vmem>>) attributes {dimension_semantics = [#tpu.dimension_semantics<parallel>, #tpu.dimension_semantics<arbitrary>], iteration_bounds = array<i64: 2, 1>, scalar_prefetch = 0 : i64, scratch_operands = 2 : i64, tpu.core_type = #tpu.core_type<tc>, window_params = [{transform_indices = @transform_0, window_bounds = array<i64: 1, 512, 256>}, {pipeline_mode = #tpu.pipeline_mode<synchronous>, transform_indices = @transform_1, window_bounds = array<i64: 256, 512>}, {pipeline_mode = #tpu.pipeline_mode<synchronous>, transform_indices = @transform_2, window_bounds = array<i64: 256, 1>}, {pipeline_mode = #tpu.pipeline_mode<synchronous>, transform_indices = @transform_3, window_bounds = array<i64: 256, 256>}, {pipeline_mode = #tpu.pipeline_mode<synchronous>, transform_indices = @transform_4, window_bounds = array<i64: 256, 256>}, {pipeline_mode = #tpu.pipeline_mode<synchronous>, transform_indices = @transform_5, window_bounds = array<i64: 256, 1>}, {pipeline_mode = #tpu.pipeline_mode<synchronous>, transform_indices = @transform_6, window_bounds = array<i64: 8, 256>}, {pipeline_mode = #tpu.pipeline_mode<synchronous>, transform_indices = @transform_7, window_bounds = array<i64: 8, 1>}, {transform_indices = @transform_8, window_bounds = array<i64: 1, 8, 256>}]} {
    %c0_i32 = arith.constant 0 : i32
    %0 = arith.cmpi eq, %arg1, %c0_i32 : i32
    %1 = arith.extui %0 : i1 to i32
    %c0_i32_0 = arith.constant 0 : i32
    %2 = arith.cmpi ne, %1, %c0_i32_0 : i32
    scf.if %2 {
      %cst_16 = arith.constant 0.000000e+00 : f32
      %25 = vector.broadcast %cst_16 : f32 to vector<256x1xf32>
      %c0_17 = arith.constant 0 : index
      %c0_18 = arith.constant 0 : index
      %26 = vector.load %arg12[%c0_17, %c0_18] : memref<256x1xf32, #tpu.memory_space<vmem>>, vector<256x1xf32>
      tpu.vector_store %arg12[%c0_17, %c0_18], %25 {strides = array<i32>} : memref<256x1xf32, #tpu.memory_space<vmem>>, vector<256x1xf32>,
    } else {
    }
    %c0 = arith.constant 0 : index
    %c0_1 = arith.constant 0 : index
    %3 = vector.load %arg3[%c0, %c0_1] : memref<256x512xbf16, #tpu.memory_space<vmem>>, vector<256x512xbf16>
    %c0_2 = arith.constant 0 : index
    %c0_3 = arith.constant 0 : index
    %c0_4 = arith.constant 0 : index
    %4 = vector.load %arg2[%c0_2, %c0_3, %c0_4] : memref<1x512x256xbf16, #tpu.memory_space<vmem>>, vector<1x512x256xbf16>
    %5 = vector.shape_cast %4 : vector<1x512x256xbf16> to vector<512x256xbf16>
    %cst = arith.constant dense<0.000000e+00> : vector<256x256xf32>
    %6 = tpu.matmul %3, %5, %cst {dimension_numbers = #tpu.dot_dimension_numbers<[1], [0], [0], [1], [0, 0, 1, 1], [], []>} : vector<256x512xbf16>, vector<512x256xbf16>, vector<256x256xf32> -> vector<256x256xf32>
    %c0_5 = arith.constant 0 : index
    %c0_6 = arith.constant 0 : index
    %7 = vector.load %arg4[%c0_5, %c0_6] : memref<256x1xf32, #tpu.memory_space<vmem>>, vector<256x1xf32>
    %8 = vector.broadcast %7 : vector<256x1xf32> to vector<256x256xf32>
    %9 = arith.addf %6, %8 : vector<256x256xf32>
    %cst_7 = arith.constant 0.000000e+00 : f32
    %10 = vector.broadcast %cst_7 : f32 to vector<256x256xf32>
    %11 = arith.maximumf %9, %10 : vector<256x256xf32>
    %c0_8 = arith.constant 0 : index
    %c0_9 = arith.constant 0 : index
    %12 = vector.load %arg12[%c0_8, %c0_9] : memref<256x1xf32, #tpu.memory_space<vmem>>, vector<256x1xf32>
    %cst_10 = arith.constant dense<0.000000e+00> : vector<256xf32>
    %13 = vector.multi_reduction <add>, %11, %cst_10 [1] : vector<256x256xf32> to vector<256xf32>
    %14 = vector.shape_cast %13 : vector<256xf32> to vector<256x1xf32>
    %15 = arith.addf %12, %14 : vector<256x1xf32>
    %c0_11 = arith.constant 0 : index
    %c0_12 = arith.constant 0 : index
    %16 = vector.load %arg12[%c0_11, %c0_12] : memref<256x1xf32, #tpu.memory_space<vmem>>, vector<256x1xf32>
    tpu.vector_store %arg12[%c0_11, %c0_12], %15 {strides = array<i32>} : memref<256x1xf32, #tpu.memory_space<vmem>>, vector<256x1xf32>,
    %c256_i32 = arith.constant 256 : i32
    %17 = arith.muli %arg1, %c256_i32 : i32
    %18 = tpu.assume_multiple %17, 256 : i32
    %19 = arith.truncf %11 : vector<256x256xf32> to vector<256x256xbf16>
    %c0_13 = arith.constant 0 : index
    %20 = arith.index_cast %18 : i32 to index
    %21 = vector.load %arg11[%c0_13, %20] : memref<256x256xbf16, #tpu.memory_space<vmem>>, vector<256x256xbf16>
    tpu.vector_store %arg11[%c0_13, %20], %19 {strides = array<i32>} : memref<256x256xbf16, #tpu.memory_space<vmem>>, vector<256x256xbf16>,
    %c0_i32_14 = arith.constant 0 : i32
    %22 = arith.cmpi eq, %arg1, %c0_i32_14 : i32
    %23 = arith.extui %22 : i1 to i32
    %c0_i32_15 = arith.constant 0 : i32
    %24 = arith.cmpi ne, %23, %c0_i32_15 : i32
    scf.if %24 {
      %c0_16 = arith.constant 0 : index
      %c0_17 = arith.constant 0 : index
      %25 = vector.load %arg12[%c0_16, %c0_17] : memref<256x1xf32, #tpu.memory_space<vmem>>, vector<256x1xf32>
      %cst_18 = arith.constant 3.906250e-03 : f32
      %26 = vector.broadcast %cst_18 : f32 to vector<256x1xf32>
      %27 = arith.mulf %25, %26 : vector<256x1xf32>
      %c0_19 = arith.constant 0 : index
      %c0_20 = arith.constant 0 : index
      %28 = vector.load %arg5[%c0_19, %c0_20] : memref<256x256xf32, #tpu.memory_space<vmem>>, vector<256x256xf32>
      %cst_21 = arith.constant dense<0.000000e+00> : vector<256x1xf32>
      %29 = tpu.matmul %28, %27, %cst_21 {dimension_numbers = #tpu.dot_dimension_numbers<[1], [0], [0], [1], [0, 0, 1, 1], [], []>} : vector<256x256xf32>, vector<256x1xf32>, vector<256x1xf32> -> vector<256x1xf32>
      %cst_22 = arith.constant 0.000000e+00 : f32
      %30 = vector.broadcast %cst_22 : f32 to vector<256x1xf32>
      %31 = arith.maximumf %29, %30 : vector<256x1xf32>
      %c0_23 = arith.constant 0 : index
      %c0_24 = arith.constant 0 : index
      %32 = vector.load %arg6[%c0_23, %c0_24] : memref<256x256xf32, #tpu.memory_space<vmem>>, vector<256x256xf32>
      %cst_25 = arith.constant dense<0.000000e+00> : vector<256x1xf32>
      %33 = tpu.matmul %32, %31, %cst_25 {dimension_numbers = #tpu.dot_dimension_numbers<[1], [0], [0], [1], [0, 0, 1, 1], [], []>} : vector<256x256xf32>, vector<256x1xf32>, vector<256x1xf32> -> vector<256x1xf32>
      %c0_26 = arith.constant 0 : index
      %c0_27 = arith.constant 0 : index
      %34 = vector.load %arg7[%c0_26, %c0_27] : memref<256x1xf32, #tpu.memory_space<vmem>>, vector<256x1xf32>
      %35 = arith.addf %33, %34 : vector<256x1xf32>
      %36 = arith.negf %35 : vector<256x1xf32>
      %37 = math.exp %36 : vector<256x1xf32>
      %cst_28 = arith.constant 1.000000e+00 : f32
      %38 = vector.broadcast %cst_28 : f32 to vector<256x1xf32>
      %39 = arith.addf %38, %37 : vector<256x1xf32>
      %40 = arith.divf %38, %39 : vector<256x1xf32>
      %cst_29 = arith.constant 1.000000e+00 : f32
      %41 = vector.broadcast %cst_29 : f32 to vector<256x1xf32>
      %42 = arith.addf %41, %40 : vector<256x1xf32>
      %c0_30 = arith.constant 0 : index
      %c0_31 = arith.constant 0 : index
      %43 = vector.load %arg11[%c0_30, %c0_31] : memref<256x256xbf16, #tpu.memory_space<vmem>>, vector<256x256xbf16>
      %44 = arith.truncf %42 : vector<256x1xf32> to vector<256x1xbf16>
      %45 = vector.broadcast %44 : vector<256x1xbf16> to vector<256x256xbf16>
      %46 = arith.mulf %43, %45 : vector<256x256xbf16>
      %c0_32 = arith.constant 0 : index
      %c0_33 = arith.constant 0 : index
      %47 = vector.load %arg8[%c0_32, %c0_33] : memref<8x256xbf16, #tpu.memory_space<vmem>>, vector<8x256xbf16>
      %cst_34 = arith.constant dense<0.000000e+00> : vector<8x256xf32>
      %48 = tpu.matmul %47, %46, %cst_34 {dimension_numbers = #tpu.dot_dimension_numbers<[1], [0], [0], [1], [0, 0, 1, 1], [], []>} : vector<8x256xbf16>, vector<256x256xbf16>, vector<8x256xf32> -> vector<8x256xf32>
      %c0_35 = arith.constant 0 : index
      %c0_36 = arith.constant 0 : index
      %49 = vector.load %arg9[%c0_35, %c0_36] : memref<8x1xf32, #tpu.memory_space<vmem>>, vector<8x1xf32>
      %50 = vector.broadcast %49 : vector<8x1xf32> to vector<8x256xf32>
      %51 = arith.addf %48, %50 : vector<8x256xf32>
      %c0_37 = arith.constant 0 : index
      %c0_38 = arith.constant 0 : index
      %c0_39 = arith.constant 0 : index
      %52 = vector.load %arg10[%c0_37, %c0_38, %c0_39] : memref<1x8x256xf32, #tpu.memory_space<vmem>>, vector<1x8x256xf32>
      %53 = vector.shape_cast %52 : vector<1x8x256xf32> to vector<8x256xf32>
      %54 = vector.shape_cast %51 : vector<8x256xf32> to vector<1x8x256xf32>
      tpu.vector_store %arg10[%c0_37, %c0_38, %c0_39], %54 {strides = array<i32>} : memref<1x8x256xf32, #tpu.memory_space<vmem>>, vector<1x8x256xf32>,
    } else {
    }
    return
  }
  func.func @transform_0(%arg0: i32, %arg1: i32) -> (i32, i32, i32) {
    %c0_i32 = arith.constant 0 : i32
    %c0_i32_0 = arith.constant 0 : i32
    return %arg0, %c0_i32, %arg1 : i32, i32, i32
  }
  func.func @transform_1(%arg0: i32, %arg1: i32) -> (i32, i32) {
    %c0_i32 = arith.constant 0 : i32
    %c0_i32_0 = arith.constant 0 : i32
    %c0_i32_1 = arith.constant 0 : i32
    return %c0_i32, %c0_i32_0 : i32, i32
  }
  func.func @transform_2(%arg0: i32, %arg1: i32) -> (i32, i32) {
    %c0_i32 = arith.constant 0 : i32
    %c0_i32_0 = arith.constant 0 : i32
    %c0_i32_1 = arith.constant 0 : i32
    return %c0_i32, %c0_i32_0 : i32, i32
  }
  func.func @transform_3(%arg0: i32, %arg1: i32) -> (i32, i32) {
    %c0_i32 = arith.constant 0 : i32
    %c0_i32_0 = arith.constant 0 : i32
    %c0_i32_1 = arith.constant 0 : i32
    return %c0_i32, %c0_i32_0 : i32, i32
  }
  func.func @transform_4(%arg0: i32, %arg1: i32) -> (i32, i32) {
    %c0_i32 = arith.constant 0 : i32
    %c0_i32_0 = arith.constant 0 : i32
    %c0_i32_1 = arith.constant 0 : i32
    return %c0_i32, %c0_i32_0 : i32, i32
  }
  func.func @transform_5(%arg0: i32, %arg1: i32) -> (i32, i32) {
    %c0_i32 = arith.constant 0 : i32
    %c0_i32_0 = arith.constant 0 : i32
    %c0_i32_1 = arith.constant 0 : i32
    return %c0_i32, %c0_i32_0 : i32, i32
  }
  func.func @transform_6(%arg0: i32, %arg1: i32) -> (i32, i32) {
    %c0_i32 = arith.constant 0 : i32
    %c0_i32_0 = arith.constant 0 : i32
    %c0_i32_1 = arith.constant 0 : i32
    return %c0_i32, %c0_i32_0 : i32, i32
  }
  func.func @transform_7(%arg0: i32, %arg1: i32) -> (i32, i32) {
    %c0_i32 = arith.constant 0 : i32
    %c0_i32_0 = arith.constant 0 : i32
    %c0_i32_1 = arith.constant 0 : i32
    return %c0_i32, %c0_i32_0 : i32, i32
  }
  func.func @transform_8(%arg0: i32, %arg1: i32) -> (i32, i32, i32) {
    %c0_i32 = arith.constant 0 : i32
    %c0_i32_0 = arith.constant 0 : i32
    %c0_i32_1 = arith.constant 0 : i32
    return %arg0, %c0_i32, %c0_i32_0 : i32, i32, i32
  }
}

</mosaic_0001>

<bundles_post_ra>
// kernel: tpu_custom_call.1
= control target key start
LH: loop header
LB: loop body
LE: loop exit
PB: predicated region body
PF: predicated region fallthrough
CT: control target
= control target key end

     0   :  { %s8080_s0 = inlined_call_operand.hbm [shape: bf16[2,512,256], index: 0, kind: input, shape index: {}]   ;;  %s8081_s1 = inlined_call_operand.vmem [shape: bf16[256,512], index: 1, kind: input, shape index: {}]   ;;  %s8082_s2 = inlined_call_operand.vmem [shape: f32[256,1], index: 2, kind: input, shape index: {}]   ;;  %s8083_s3 = inlined_call_operand.hbm [shape: f32[256,256], index: 3, kind: input, shape index: {}]   ;;  %s8084_s4 = inlined_call_operand.hbm [shape: f32[256,256], index: 4, kind: input, shape index: {}]   ;;  %s8085_s5 = inlined_call_operand.vmem [shape: f32[256,1], index: 5, kind: input, shape index: {}]   ;;  %s8086_s6 = inlined_call_operand.vmem [shape: bf16[8,256], index: 6, kind: input, shape index: {}]   ;;  %s8087_s7 = inlined_call_operand.vmem [shape: f32[8,1], index: 7, kind: input, shape index: {}]   ;;  %s8088_s8 = inlined_call_operand.hbm [shape: f32[2,8,256], index: 8, kind: output, shape index: {}]  }
   0x1   :  { %8172 = sst [smem:[#allocation81_spill]] %s8083_s3 }
   0x2   :  { %8173 = sst [smem:[#allocation82_spill]] %s8084_s4 }
   0x3   :  { %13 = vsyncpa [#allocation5], 0 }
   0x4   :  { %15 = vsyncpa [#allocation5 + $0x1], 0 }
   0x5   :  { %16 = vsyncpa [#allocation8], 0 }
   0x6   :  { %17 = vsyncpa [#allocation6], 0 }
   0x7   :  { %19 = vsyncpa [#allocation6 + $0x1], 0  ;;  %s5639_s27 = smov 0   ;;  %s5641_s28 = smov 0  }
   0x8   :  { %s5643_s29 = smov 0   ;;  %s5645_s30 = smov 0  }
   0x9   :  { %s5647_s9 = smov 0   ;;  %s5649_s10 = smov 0  }
   0xa LB: > { %8174 = sst [smem:[#allocation14_spill]] %s5563_s27  ;;  %s4493_s11 = sadd.s32 4294967295, %s5583_s10   ;;  %s5583_s10 = sphi %s5649_s10, %s25_s10   ;;  %s5579_s9 = sphi %s5647_s9, %s8445_s9   ;;  %s5575_s30 = sphi %s5645_s30, %s8444_s30   ;;  %s5571_s29 = sphi %s5643_s29, %s8443_s29   ;;  %s5567_s28 = sphi %s5641_s28, %s8442_s28   ;;  %s5563_s27 = sphi %s5639_s27, %s8441_s27  }
   0xb   : > { %s4494_s12 = sadd.s32 4294967294, %s5583_s10   ;;  %p59_p0 = scmp.ne.s32.totalorder %s5567_s28, %s5563_s27 }
   0xc   : > { %p5673_p1 = scmp.eq.s32.totalorder %s4493_s11, 0  ;;  %p5677_p2 = scmp.eq.s32.totalorder %s4493_s11, 1 }
   0xd   : > { %p236_p3 = scmp.eq.s32.totalorder %s4494_s12, 1  ;;  %p4495_p5 = scmp.ge.s32.totalorder %s5583_s10, 1 }
   0xe   : > { %p5683_p4 = por %p5673_p1, %p59_p0  ;;  %p243_p7 = scmp.lt.s32.totalorder %s5583_s10, 3 }
   0xf   : > { %p5688_p6 = por %p236_p3, %p59_p0  ;;  %s8180_s3 = sld [smem:[#allocation81_spill]] }
  0x10   : > { %p5696_p8 = pnand %p4495_p5, %p243_p7  ;;  %s5585_s21 = smov [#allocation7]  }
  0x11   : > { %s8178_s16 = scalar_select %p5688_p6, 1, 0 }
  0x12   : > { %p5198_p9 = pneg %p5696_p8  ;;  %s262_s22 = sshll.u32 %s5585_s21, 4  ;;  %s263_s22 = int_to_ptr.vmem [resolvable:$true] %s262_s22 }
  0x13   : > { %8179 = sst [smem:[#allocation15_spill]] %s8178_s16  ;;  %p4498_p11 = scmp.ge.s32.totalorder %s5583_s10, 2 }
  0x14   : > { %p5199_p10 = pnand %p5198_p9, %p5673_p1  ;;  %s8182_s4 = sld [smem:[#allocation82_spill]] }
  0x15   : > { %s260_s19 = sshll.u32 %s8180_s3, 4  ;;  %s5586_s26 = smov 256   ;;  %s261_s19 = int_to_ptr.hbm [resolvable:$true] %s260_s19 }
  0x16   : > { %s5587_s11 = smov 16   ;;  %s5588_s12 = smov [#allocation9]  }
  0x17   : > { %5201 = dma.hbm_to_vmem [thread:$0]  (!%p5199_p10), %s261_s19, 8192, %s263_s22, [#allocation8], %s5586_s26, %s5586_s26, %s5587_s11  }
  0x18   : > { %s276_s17 = sshll.u32 %s5588_s12, 4  ;;  %s37_s18 = sadd.s32 1, %s5579_s9  ;;  %s277_s17 = int_to_ptr.vmem [resolvable:$true] %s276_s17 }
  0x19   : > { %s46_s21 = sadd.s32 1, %s5571_s29  ;;  %p39_p12 = scmp.ge.s32.totalorder %s37_s18, 2 }
  0x1a   : > { %s274_s25 = sshll.u32 %s8182_s4, 4  ;;  %p53_p13 = scmp.ne.s32.totalorder %s5571_s29, %s5567_s28  ;;  %s275_s25 = int_to_ptr.hbm [resolvable:$true] %s274_s25 }
  0x1b   : > { %5204 = dma.hbm_to_vmem [thread:$0]  (!%p5199_p10), %s275_s25, 8192, %s277_s17, [#allocation8], %s5586_s26, %s5586_s26, %s5587_s11  }
  0x1c   : > { %p54_p0 = scmp.eq.s32.totalorder %s5583_s10, 0  ;;  %p5215_p3 = scmp.lt.s32.totalorder %s5583_s10, 2 }
  0x1d   : > { %s8447_s18 = smov (%p39_p12, %s37_s18), 0  ;;  %p5722_p7 = por %p5677_p2, %p53_p13 }
  0x1e   : > { %8183 = sst [smem:[#allocation16_spill]] %s8447_s18  ;;  %p5716_p5 = por %p54_p0, %p53_p13 }
  0x1f   : > { %s8185_s19 = scalar_select %p5722_p7, 1, 0 }
  0x20   : > { %s41_s22 = ssub.s32 %s5579_s9, %s8447_s18  ;;  %s299_s24 = sand.u32 1, %s5571_s29  }
  0x21   : > { %8186 = sst [smem:[#allocation17_spill]] %s8185_s19  ;;  %p44_p9 = scmp.eq.s32.totalorder %s41_s22, 0 }
  0x22   : > { %s4499_s25 = sshll.u32 %s299_s24, 9  ;;  %s5056_s26 = sshll.u32 %s5579_s9, 9 }
  0x23   : > { %s5731_s11 = scalar_select %p44_p9, %s5571_s29, %s46_s21  }
  0x24   : > { %s310_s3 = scalar_lea.hbm %s8080_s0, %s5056_s26  ;;  %s303_s16 = scalar_lea.vmem [#allocation4], %s4499_s25 }
  0x25   : > { %s311_s4 = sshll.u32 %s310_s3, 4  ;;  %s313_s27 = sshll.u32 %s303_s16, 4  ;;  %s312_s4 = int_to_ptr.hbm [resolvable:$true] %s311_s4  ;;  %s314_s27 = int_to_ptr.vmem [resolvable:$true] %s313_s27 }
  0x26   : > { %p5206_p2 = pnand %p5215_p3, %p5716_p5  ;;  %s300_s14 = scalar_lea.sflag [#allocation5], %s299_s24 }
  0x27   : > { %s5589_s18 = smov 128   ;;  %s5590_s19 = smov 8  }
  0x28   : > { %5208 = dma.hbm_to_vmem [thread:$0]  (!%p5206_p2), %s312_s4, 8192, %s314_s27, %s300_s14, %s5589_s18, %s5589_s18, %s5590_s19  }
  0x29   : > { %325 = sbr.rel (%p5696_p8) target bundleno = 2021 (0x7e5), region = 52 }
  0x2e   : > { %s5743_s21 = sand.u32 1, %s5567_s28  }
  0x2f   : > { %s4503_s3 = sshll.u32 %s5743_s21, 9  ;;  %s328_s16 = scalar_lea.sflag [#allocation5], %s5743_s21 }
  0x30   : > { %s5747_s22 = scalar_lea.vmem [#allocation4], %s4503_s3 }
  0x31   : > { %5550 = dma.done.wait (%p5683_p4), %s328_s16, 8192  }
  0x32   : > { %5552 = vsyncadd (%p5683_p4), %s328_s16, 4294959104 }
  0x33   : > { %5554 = dma.done.wait (%p5673_p1), [#allocation8], 16384  }
  0x34   : > { %5556 = vsyncadd (%p5673_p1), [#allocation8], 4294950912  ;;  %v5591_v0 = vmov 0   ;;  %v556_v1 = vld [vmem:[%s8082_s2 + $0x78] sm:$0xff]  ;;  %v555_v2 = vld [vmem:[%s8082_s2 + $0x70] sm:$0xff]  ;;  %vm380_vm0 = vcmask 7168  }
  0x35   : > { %5277 = vset.pattern.permute.xlu1 %v5591_v0  ;;  %5276 = vset.pattern.permute.xlu0 %v5591_v0  ;;  %v4821_v3 = vld [vmem:[%s5747_s22 + $0x70] sm:$0xf]  ;;  %v5136_v4 = vld [vmem:[%s5747_s22 + $0x74] sm:$0xf0]  ;;  %v4813_v14 = vld [vmem:[%s5747_s22 + $0x60] sm:$0xf] }
  0x36   : > { %5278 = vset.pattern.permute.xlu2 %v5591_v0  ;;  %650 = vperm.xlu0 %5276, %v556_v1   ;;  %v4885_v5 = vld [vmem:[%s5747_s22 + $0xf0] sm:$0xf]  ;;  %v5152_v6 = vld [vmem:[%s5747_s22 + $0xf4] sm:$0xf0]  ;;  %v4822_v7 = vor.u32 %v5136_v4, %v4821_v3  ;;  %v5134_v15 = vld [vmem:[%s5747_s22 + $0x64] sm:$0xf0] }
  0x37   : > { %645 = vperm.xlu1 %5277, %v555_v2   ;;  %v4886_v8 = vor.u32 %v5152_v6, %v4885_v5  ;;  %v4949_v9 = vld [vmem:[%s5747_s22 + $0x170] sm:$0xf]  ;;  %v5168_v10 = vld [vmem:[%s5747_s22 + $0x174] sm:$0xf0]  ;;  %v4814_v17 = vor.u32 %v5134_v15, %v4813_v14  ;;  %v4877_v18 = vld [vmem:[%s5747_s22 + $0xe0] sm:$0xf] }
  0x38   : > { %v5013_v11 = vld [vmem:[%s5747_s22 + $0x1f0] sm:$0xf]  ;;  %v4950_v12 = vor.u32 %v5168_v10, %v4949_v9  ;;  %v5184_v13 = vld [vmem:[%s5747_s22 + $0x1f4] sm:$0xf0]  ;;  %1373 = vmatpush.bf16.msra.mxu0 %v4822_v7  ;;  %v5150_v19 = vld [vmem:[%s5747_s22 + $0xe4] sm:$0xf0] }
  0x39   : > { %1462 = vmatpush.bf16.msra.mxu1 %v4886_v8  ;;  %v5014_v16 = vor.u32 %v5184_v13, %v5013_v11  ;;  %v4941_v20 = vld [vmem:[%s5747_s22 + $0x160] sm:$0xf]  ;;  %v4878_v21 = vor.u32 %v5150_v19, %v4877_v18  ;;  %v5166_v22 = vld [vmem:[%s5747_s22 + $0x164] sm:$0xf0]  ;;  %v572_v27 = vld [vmem:[%s8082_s2 + $0xf8] sm:$0xff]  ;;  %s4506_s16 = sshll.u32 %s5743_s21, 4 }
  0x3a   : > { %1551 = vmatpush.bf16.msra.mxu2 %v4950_v12  ;;  %v5005_v23 = vld [vmem:[%s5747_s22 + $0x1e0] sm:$0xf]  ;;  %v5182_v24 = vld [vmem:[%s5747_s22 + $0x1e4] sm:$0xf0]  ;;  %v4942_v25 = vor.u32 %v5166_v22, %v4941_v20  ;;  %v571_v28 = vld [vmem:[%s8082_s2 + $0xf0] sm:$0xff]  ;;  %s374_s13 = scalar_lea.vmem [#allocation10], %s4506_s16 }
  0x3b   : > { %1640 = vmatpush.bf16.msra.mxu3 %v5014_v16  ;;  %v5006_v26 = vor.u32 %v5182_v24, %v5005_v23  ;;  %v4805_v29 = vld [vmem:[%s5747_s22 + $0x50] sm:$0xf]  ;;  %v5132_v30 = vld [vmem:[%s5747_s22 + $0x54] sm:$0xf0]  ;;  %v4797_v40 = vld [vmem:[%s5747_s22 + $0x40] sm:$0xf] }
  0x3c   : > { %v4869_v31 = vld [vmem:[%s5747_s22 + $0xd0] sm:$0xf]  ;;  %v5148_v32 = vld [vmem:[%s5747_s22 + $0xd4] sm:$0xf0]  ;;  %1374 = vmatpush.bf16.msra.mxu0 %v4814_v17  ;;  %v4806_v33 = vor.u32 %v5132_v30, %v4805_v29  ;;  %v5130_v41 = vld [vmem:[%s5747_s22 + $0x44] sm:$0xf0] }
  0x3d   : > { %1463 = vmatpush.bf16.msra.mxu1 %v4878_v21  ;;  %v4870_v34 = vor.u32 %v5148_v32, %v4869_v31  ;;  %v4933_v35 = vld [vmem:[%s5747_s22 + $0x150] sm:$0xf]  ;;  %v5164_v36 = vld [vmem:[%s5747_s22 + $0x154] sm:$0xf0]  ;;  %v4861_v43 = vld [vmem:[%s5747_s22 + $0xc0] sm:$0xf]  ;;  %v4798_v49 = vor.u32 %v5130_v41, %v4797_v40 }
  0x3e   : > { %v4997_v37 = vld [vmem:[%s5747_s22 + $0x1d0] sm:$0xf]  ;;  %1552 = vmatpush.bf16.msra.mxu2 %v4942_v25  ;;  %730 = vperm.xlu0 %5276, %v572_v27   ;;  %v4934_v38 = vor.u32 %v5164_v36, %v4933_v35  ;;  %v5180_v39 = vld [vmem:[%s5747_s22 + $0x1d4] sm:$0xf0]  ;;  %v5146_v44 = vld [vmem:[%s5747_s22 + $0xc4] sm:$0xf0] }
  0x3f   : > { %1641 = vmatpush.bf16.msra.mxu3 %v5006_v26  ;;  %725 = vperm.xlu1 %5277, %v571_v28   ;;  %v4998_v42 = vor.u32 %v5180_v39, %v4997_v37  ;;  %v4925_v45 = vld [vmem:[%s5747_s22 + $0x140] sm:$0xf]  ;;  %v5162_v46 = vld [vmem:[%s5747_s22 + $0x144] sm:$0xf0]  ;;  %v4862_v50 = vor.u32 %v5146_v44, %v4861_v43  ;;  %v4789_v51 = vld [vmem:[%s5747_s22 + $0x30] sm:$0xf] }
  0x40   : > { %v4989_v47 = vld [vmem:[%s5747_s22 + $0x1c0] sm:$0xf]  ;;  %v5178_v48 = vld [vmem:[%s5747_s22 + $0x1c4] sm:$0xf0]  ;;  %1375 = vmatpush.bf16.msra.mxu0 %v4806_v33  ;;  %v4926_v52 = vor.u32 %v5162_v46, %v4925_v45  ;;  %v5128_v53 = vld [vmem:[%s5747_s22 + $0x34] sm:$0xf0] }
  0x41   : > { %1464 = vmatpush.bf16.msra.mxu1 %v4870_v34  ;;  %v4853_v54 = vld [vmem:[%s5747_s22 + $0xb0] sm:$0xf]  ;;  %v5144_v55 = vld [vmem:[%s5747_s22 + $0xb4] sm:$0xf0]  ;;  %v4990_v56 = vor.u32 %v5178_v48, %v4989_v47  ;;  %v553_v57 = vld [vmem:[%s8082_s2 + $0x60] sm:$0xff]  ;;  %v4790_v63 = vor.u32 %v5128_v53, %v4789_v51  ;;  %s4388_s18 = sshll.u32 %s374_s13, 4  ;;  %s4389_s18 = int_to_ptr.vmem [resolvable:$true] %s4388_s18 }
  0x42   : > { %1553 = vmatpush.bf16.msra.mxu2 %v4934_v38  ;;  %v4917_v58 = vld [vmem:[%s5747_s22 + $0x130] sm:$0xf]  ;;  %v5160_v59 = vld [vmem:[%s5747_s22 + $0x134] sm:$0xf0]  ;;  %v569_v60 = vld [vmem:[%s8082_s2 + $0xe0] sm:$0xff]  ;;  %v4854_v0 = vor.u32 %v5144_v55, %v4853_v54  ;;  %s5517_s12 = scalar_lea.hbm %s8088_s8, 32 }
  0x43   : > { %1642 = vmatpush.bf16.msra.mxu3 %v4998_v42  ;;  %v4981_v61 = vld [vmem:[%s5747_s22 + $0x1b0] sm:$0xf]  ;;  %v5176_v62 = vld [vmem:[%s5747_s22 + $0x1b4] sm:$0xf0]  ;;  %v554_v1 = vld [vmem:[%s8082_s2 + $0x68] sm:$0xff]  ;;  %v4918_v3 = vor.u32 %v5160_v59, %v4917_v58 }
  0x44   : > { %1376 = vmatpush.bf16.msra.mxu0 %v4798_v49  ;;  %v4781_v2 = vld [vmem:[%s5747_s22 + $0x20] sm:$0xf]  ;;  %v5126_v4 = vld [vmem:[%s5747_s22 + $0x24] sm:$0xf0]  ;;  %v4982_v7 = vor.u32 %v5176_v62, %v4981_v61  ;;  %640 = vperm.xlu2 %5278, %v554_v1   ;;  %v4773_v14 = vld [vmem:[%s5747_s22 + $0x10] sm:$0xf] }
  0x45   : > { %1465 = vmatpush.bf16.msra.mxu1 %v4862_v50  ;;  %v4845_v5 = vld [vmem:[%s5747_s22 + $0xa0] sm:$0xf]  ;;  %v5142_v6 = vld [vmem:[%s5747_s22 + $0xa4] sm:$0xf0]  ;;  %v4782_v12 = vor.u32 %v5126_v4, %v4781_v2  ;;  %v5124_v16 = vld [vmem:[%s5747_s22 + $0x14] sm:$0xf0] }
  0x46   : > { %1554 = vmatpush.bf16.msra.mxu2 %v4926_v52  ;;  %635 = vperm.xlu0 %5276, %v553_v57   ;;  %v4909_v8 = vld [vmem:[%s5747_s22 + $0x120] sm:$0xf]  ;;  %v5158_v9 = vld [vmem:[%s5747_s22 + $0x124] sm:$0xf0]  ;;  %v4846_v13 = vor.u32 %v5142_v6, %v4845_v5  ;;  %v4837_v17 = vld [vmem:[%s5747_s22 + $0x90] sm:$0xf]  ;;  %v4774_v26 = vor.u32 %v5124_v16, %v4773_v14 }
  0x47   : > { %1643 = vmatpush.bf16.msra.mxu3 %v4990_v56  ;;  %715 = vperm.xlu1 %5277, %v569_v60   ;;  %v4973_v10 = vld [vmem:[%s5747_s22 + $0x1a0] sm:$0xf]  ;;  %v5174_v11 = vld [vmem:[%s5747_s22 + $0x1a4] sm:$0xf0]  ;;  %v4910_v15 = vor.u32 %v5158_v9, %v4909_v8  ;;  %v5140_v18 = vld [vmem:[%s5747_s22 + $0x94] sm:$0xf0] }
  0x48   : > { %1377 = vmatpush.bf16.msra.mxu0 %v4790_v63  ;;  %v4974_v19 = vor.u32 %v5174_v11, %v4973_v10  ;;  %v568_v20 = vld [vmem:[%s8082_s2 + $0xd8] sm:$0xff]  ;;  %v4901_v21 = vld [vmem:[%s5747_s22 + $0x110] sm:$0xf]  ;;  %v4838_v27 = vor.u32 %v5140_v18, %v4837_v17  ;;  %v570_v28 = vld [vmem:[%s8082_s2 + $0xe8] sm:$0xff] }
  0x49   : > { %1466 = vmatpush.bf16.msra.mxu1 %v4854_v0  ;;  %v5156_v22 = vld [vmem:[%s5747_s22 + $0x114] sm:$0xf0]  ;;  %v551_v23 = vld [vmem:[%s8082_s2 + $0x50] sm:$0xff]  ;;  %v4765_v29 = vld [vmem:[%s5747_s22] sm:$0xf] }
  0x4a   : > { %1555 = vmatpush.bf16.msra.mxu2 %v4918_v3  ;;  %v4965_v24 = vld [vmem:[%s5747_s22 + $0x190] sm:$0xf]  ;;  %v5172_v25 = vld [vmem:[%s5747_s22 + $0x194] sm:$0xf0]  ;;  %v4902_v30 = vor.u32 %v5156_v22, %v4901_v21  ;;  %v5122_v31 = vld [vmem:[%s5747_s22 + $0x4] sm:$0xf0] }
  0x4b   : > { %1644 = vmatpush.bf16.msra.mxu3 %v4982_v7  ;;  %v4829_v32 = vld [vmem:[%s5747_s22 + $0x80] sm:$0xf]  ;;  %v5138_v33 = vld [vmem:[%s5747_s22 + $0x84] sm:$0xf0]  ;;  %v4966_v34 = vor.u32 %v5172_v25, %v4965_v24  ;;  %v4766_v40 = vor.u32 %v5122_v31, %v4765_v29  ;;  %v5059_v42 = vld [vmem:[%s8081_s1 + $0xc] sm:$0xf0] }
  0x4c   : > { %1378 = vmatpush.bf16.msra.mxu0 %v4782_v12  ;;  %v4893_v35 = vld [vmem:[%s5747_s22 + $0x100] sm:$0xf]  ;;  %v5154_v36 = vld [vmem:[%s5747_s22 + $0x104] sm:$0xf0]  ;;  %720 = vperm.xlu2 %5278, %v570_v28   ;;  %v4830_v41 = vor.u32 %v5138_v33, %v4829_v32  ;;  %v5057_v43 = vld [vmem:[%s8081_s1 + $0x4] sm:$0xf] }
  0x4d   : > { %1467 = vmatpush.bf16.msra.mxu1 %v4846_v13  ;;  %v4957_v37 = vld [vmem:[%s5747_s22 + $0x180] sm:$0xf]  ;;  %v5170_v38 = vld [vmem:[%s5747_s22 + $0x184] sm:$0xf0]  ;;  %v4511_v44 = vld [vmem:[%s8081_s1 + $0x10] sm:$0xf0]  ;;  %v4894_v45 = vor.u32 %v5154_v36, %v4893_v35 }
  0x4e   : > { %1556 = vmatpush.bf16.msra.mxu2 %v4910_v15  ;;  %710 = vperm.xlu0 %5276, %v568_v20   ;;  %v4509_v39 = vld [vmem:[%s8081_s1] sm:$0xf]  ;;  %v4517_v46 = vld [vmem:[%s8081_s1 + $0x8] sm:$0xf]  ;;  %v5060_v47 = vld [vmem:[%s8081_s1 + $0x14] sm:$0xf0]  ;;  %v4958_v48 = vor.u32 %v5170_v38, %v4957_v37  ;;  %v5883_v54 = vor.u32 %v5057_v43, %v4511_v44 }
  0x4f   : > { %1645 = vmatpush.bf16.msra.mxu3 %v4974_v19  ;;  %625 = vperm.xlu1 %5277, %v551_v23   ;;  %v550_v49 = vld [vmem:[%s8082_s2 + $0x48] sm:$0xff]  ;;  %v4519_v51 = vld [vmem:[%s8081_s1 + $0x18] sm:$0xf0]  ;;  %v5881_v53 = vor.u32 %v5059_v42, %v4509_v39  ;;  %v5885_v55 = vor.u32 %v5060_v47, %v4517_v46  ;;  %v565_v58 = vld [vmem:[%s8082_s2 + $0xc0] sm:$0xff] }
  0x50   : > { %1379 = vmatpush.bf16.msra.mxu0 %v4774_v26  ;;  %v5058_v50 = vld [vmem:[%s8081_s1 + $0xc] sm:$0xf]  ;;  %v552_v57 = vld [vmem:[%s8082_s2 + $0x58] sm:$0xff]  ;;  %v567_v60 = vld [vmem:[%s8082_s2 + $0xd0] sm:$0xff] }
  0x51   : > { %1468 = vmatpush.bf16.msra.mxu1 %v4838_v27  ;;  %v566_v52 = vld [vmem:[%s8082_s2 + $0xc8] sm:$0xff]  ;;  %v5887_v56 = vor.u32 %v5058_v50, %v4519_v51  ;;  %v548_v59 = vld [vmem:[%s8082_s2 + $0x38] sm:$0xff]  ;;  %v4525_v61 = vld [vmem:[%s8081_s1 + $0x20] sm:$0xf] }
  0x52   : > { %1557 = vmatpush.bf16.msra.mxu2 %v4902_v30  ;;  %v5063_v62 = vld [vmem:[%s8081_s1 + $0x2c] sm:$0xf0]  ;;  %v5061_v63 = vld [vmem:[%s8081_s1 + $0x24] sm:$0xf]  ;;  %v4527_v0 = vld [vmem:[%s8081_s1 + $0x30] sm:$0xf0] }
  0x53   : > { %1646 = vmatpush.bf16.msra.mxu3 %v4966_v34  ;;  %v4533_v1 = vld [vmem:[%s8081_s1 + $0x28] sm:$0xf]  ;;  %v5064_v2 = vld [vmem:[%s8081_s1 + $0x34] sm:$0xf0]  ;;  %v547_v3 = vld [vmem:[%s8082_s2 + $0x30] sm:$0xff]  ;;  %v5935_v7 = vor.u32 %v5063_v62, %v4525_v61  ;;  %v5937_v8 = vor.u32 %v5061_v63, %v4527_v0 }
  0x54   : > { %1380 = vmatpush.bf16.msra.mxu0 %v4766_v40  ;;  %630 = vperm.xlu2 %5278, %v552_v57   ;;  %v5062_v4 = vld [vmem:[%s8081_s1 + $0x2c] sm:$0xf]  ;;  %v4535_v5 = vld [vmem:[%s8081_s1 + $0x38] sm:$0xf0]  ;;  %v563_v6 = vld [vmem:[%s8082_s2 + $0xb0] sm:$0xff]  ;;  %v5939_v9 = vor.u32 %v5064_v2, %v4533_v1 }
  0x55   : > { %1469 = vmatpush.bf16.msra.mxu1 %v4830_v41  ;;  %v5941_v10 = vor.u32 %v5062_v4, %v4535_v5  ;;  %v549_v11 = vld [vmem:[%s8082_s2 + $0x40] sm:$0xff]  ;;  %v562_v12 = vld [vmem:[%s8082_s2 + $0xa8] sm:$0xff]  ;;  %v564_v14 = vld [vmem:[%s8082_s2 + $0xb8] sm:$0xff] }
  0x56   : > { %1558 = vmatpush.bf16.msra.mxu2 %v4894_v45  ;;  %620 = vperm.xlu0 %5276, %v550_v49   ;;  %v545_v13 = vld [vmem:[%s8082_s2 + $0x20] sm:$0xff]  ;;  %v5067_v16 = vld [vmem:[%s8081_s1 + $0x4c] sm:$0xf0]  ;;  %v4543_v18 = vld [vmem:[%s8081_s1 + $0x50] sm:$0xf0] }
  0x57   : > { %1647 = vmatpush.bf16.msra.mxu3 %v4958_v48  ;;  %700 = vperm.xlu1 %5277, %v566_v52   ;;  %v4541_v15 = vld [vmem:[%s8081_s1 + $0x40] sm:$0xf]  ;;  %v5065_v17 = vld [vmem:[%s8081_s1 + $0x44] sm:$0xf]  ;;  %v4549_v19 = vld [vmem:[%s8081_s1 + $0x48] sm:$0xf] }
  0x58   : > { %1381 = vmatmul.bf16.vlgmr.msra.gmra.mxu0 %v5881_v53  ;;  %1470 = vmatmul.bf16.vlgmr.msra.gmra.mxu1 %v5883_v54  ;;  %v5068_v20 = vld [vmem:[%s8081_s1 + $0x54] sm:$0xf0]  ;;  %v5066_v22 = vld [vmem:[%s8081_s1 + $0x4c] sm:$0xf]  ;;  %v4551_v23 = vld [vmem:[%s8081_s1 + $0x58] sm:$0xf0]  ;;  %v5989_v25 = vor.u32 %v5067_v16, %v4541_v15  ;;  %v5991_v26 = vor.u32 %v5065_v17, %v4543_v18 }
  0x59   : > { %1559 = vmatmul.bf16.vlgmr.msra.gmra.mxu2 %v5885_v55  ;;  %v544_v21 = vld [vmem:[%s8082_s2 + $0x18] sm:$0xff]  ;;  %v5993_v27 = vor.u32 %v5068_v20, %v4549_v19  ;;  %v5995_v28 = vor.u32 %v5066_v22, %v4551_v23  ;;  %v546_v29 = vld [vmem:[%s8082_s2 + $0x28] sm:$0xff]  ;;  %v559_v30 = vld [vmem:[%s8082_s2 + $0x90] sm:$0xff] }
  0x5a   : > { %1648 = vmatmul.bf16.vlgmr.msra.gmra.mxu3 %v5887_v56  ;;  %v560_v24 = vld [vmem:[%s8082_s2 + $0x98] sm:$0xff]  ;;  %v542_v31 = vld [vmem:[%s8082_s2 + $0x8] sm:$0xff]  ;;  %v561_v32 = vld [vmem:[%s8082_s2 + $0xa0] sm:$0xff] }
  0x5b   : > { %v4557_v33 = vld [vmem:[%s8081_s1 + $0x60] sm:$0xf]  ;;  %v5071_v34 = vld [vmem:[%s8081_s1 + $0x6c] sm:$0xf0]  ;;  %v5069_v35 = vld [vmem:[%s8081_s1 + $0x64] sm:$0xf] }
  0x5c   : > { %705 = vperm.xlu2 %5278, %v567_v60   ;;  %v4559_v36 = vld [vmem:[%s8081_s1 + $0x70] sm:$0xf0]  ;;  %v4565_v37 = vld [vmem:[%s8081_s1 + $0x68] sm:$0xf]  ;;  %v5072_v38 = vld [vmem:[%s8081_s1 + $0x74] sm:$0xf0]  ;;  %v6040_v42 = vor.u32 %v5071_v34, %v4557_v33 }
  0x5d   : > { %v541_v39 = vld [vmem:[%s8082_s2] sm:$0xff]  ;;  %v5070_v40 = vld [vmem:[%s8081_s1 + $0x6c] sm:$0xf]  ;;  %v4567_v41 = vld [vmem:[%s8081_s1 + $0x78] sm:$0xf0]  ;;  %v6042_v43 = vor.u32 %v5069_v35, %v4559_v36  ;;  %v6044_v44 = vor.u32 %v5072_v38, %v4565_v37 }
  0x5e   : > { %695 = vperm.xlu0 %5276, %v565_v58   ;;  %v6046_v45 = vor.u32 %v5070_v40, %v4567_v41  ;;  %v543_v46 = vld [vmem:[%s8082_s2 + $0x10] sm:$0xff]  ;;  %v4573_v47 = vld [vmem:[%s8081_s1 + $0x80] sm:$0xf]  ;;  %v5073_v49 = vld [vmem:[%s8081_s1 + $0x84] sm:$0xf] }
  0x5f   : > { %610 = vperm.xlu1 %5277, %v548_v59   ;;  %v5075_v48 = vld [vmem:[%s8081_s1 + $0x8c] sm:$0xf0]  ;;  %v4575_v50 = vld [vmem:[%s8081_s1 + $0x90] sm:$0xf0]  ;;  %v4581_v51 = vld [vmem:[%s8081_s1 + $0x88] sm:$0xf] }
  0x60   : > { %v5076_v52 = vld [vmem:[%s8081_s1 + $0x94] sm:$0xf0]  ;;  %v5074_v57 = vld [vmem:[%s8081_s1 + $0x8c] sm:$0xf]  ;;  %v4583_v58 = vld [vmem:[%s8081_s1 + $0x98] sm:$0xf0]  ;;  %v6079_v59 = vor.u32 %v5075_v48, %v4573_v47  ;;  %v6081_v60 = vor.u32 %v5073_v49, %v4575_v50 }
  0x61   : > { %v6083_v61 = vor.u32 %v5076_v52, %v4581_v51  ;;  %v6085_v62 = vor.u32 %v5074_v57, %v4583_v58  ;;  %v4589_v63 = vld [vmem:[%s8081_s1 + $0xa0] sm:$0xf]  ;;  %v5079_v0 = vld [vmem:[%s8081_s1 + $0xac] sm:$0xf0]  ;;  %v5077_v1 = vld [vmem:[%s8081_s1 + $0xa4] sm:$0xf] }
  0x62   : > { %8187 = vst [vmem:[#allocation18_spill] sm:$0xff] %v6079_v59  ;;  %v4591_v2 = vld [vmem:[%s8081_s1 + $0xb0] sm:$0xf0]  ;;  %v4597_v4 = vld [vmem:[%s8081_s1 + $0xa8] sm:$0xf] }
  0x63   : > { %8188 = vst [vmem:[#allocation19_spill] sm:$0xff] %v6081_v60  ;;  %v5080_v5 = vld [vmem:[%s8081_s1 + $0xb4] sm:$0xf0]  ;;  %v4605_v20 = vld [vmem:[%s8081_s1 + $0xc0] sm:$0xf] }
  0x64   : > { %615 = vperm.xlu2 %5278, %v549_v11   ;;  %8189 = vst [vmem:[#allocation20_spill] sm:$0xff] %v6083_v61  ;;  %v4599_v11 = vld [vmem:[%s8081_s1 + $0xb8] sm:$0xf0]  ;;  %v5083_v22 = vld [vmem:[%s8081_s1 + $0xcc] sm:$0xf0] }
  0x65   : > { %8190 = vst [vmem:[#allocation21_spill] sm:$0xff] %v6085_v62  ;;  %v5081_v23 = vld [vmem:[%s8081_s1 + $0xc4] sm:$0xf]  ;;  %v4615_v33 = vld [vmem:[%s8081_s1 + $0xd8] sm:$0xf0]  ;;  %v6165_v34 = vor.u32 %v5083_v22, %v4605_v20 }
  0x66   : > { %605 = vperm.xlu0 %5276, %v547_v3   ;;  %v5087_v48 = vld [vmem:[%s8081_s1 + $0xec] sm:$0xf0]  ;;  %v5085_v49 = vld [vmem:[%s8081_s1 + $0xe4] sm:$0xf]  ;;  %v4623_v50 = vld [vmem:[%s8081_s1 + $0xf0] sm:$0xf0] }
  0x67   : > { %685 = vperm.xlu1 %5277, %v563_v6   ;;  %v5078_v6 = vld [vmem:[%s8081_s1 + $0xac] sm:$0xf]  ;;  %8199 = vst [vmem:[#allocation30_spill] sm:$0xff] %v6165_v34  ;;  %v4629_v51 = vld [vmem:[%s8081_s1 + $0xe8] sm:$0xf] }
  0x68   : > { %1386 = vmatmul.bf16.gmra.mxu0 %v5935_v7  ;;  %1475 = vmatmul.bf16.gmra.mxu1 %v5937_v8  ;;  %v6123_v15 = vor.u32 %v5078_v6, %v4599_v11  ;;  %v5088_v52 = vld [vmem:[%s8081_s1 + $0xf4] sm:$0xf0]  ;;  %v5086_v58 = vld [vmem:[%s8081_s1 + $0xec] sm:$0xf] }
  0x69   : > { %1564 = vmatmul.bf16.gmra.mxu2 %v5939_v9 }
  0x6a   : > { %1653 = vmatmul.bf16.gmra.mxu3 %v5941_v10  ;;  %8194 = vst [vmem:[#allocation25_spill] sm:$0xff] %v6123_v15 }
  0x6c   : > { %690 = vperm.xlu2 %5278, %v564_v14   ;;  %v6121_v14 = vor.u32 %v5080_v5, %v4597_v4  ;;  %v557_v4 = vld [vmem:[%s8082_s2 + $0x80] sm:$0xff] }
  0x6e   : > { %680 = vperm.xlu0 %5276, %v562_v12   ;;  %v6117_v12 = vor.u32 %v5079_v0, %v4589_v63  ;;  %8193 = vst [vmem:[#allocation24_spill] sm:$0xff] %v6121_v14  ;;  %v4631_v63 = vld [vmem:[%s8081_s1 + $0xf8] sm:$0xf0] }
  0x6f   : > { %595 = vperm.xlu1 %5277, %v545_v13   ;;  %v6119_v13 = vor.u32 %v5077_v1, %v4591_v2  ;;  %v6215_v1 = vor.u32 %v5085_v49, %v4623_v50  ;;  %v6217_v2 = vor.u32 %v5088_v52, %v4629_v51  ;;  %v6222_v5 = vor.u32 %v5086_v58, %v4631_v63  ;;  %v5090_v49 = vld [vmem:[%s8081_s1 + $0x10c] sm:$0xf]  ;;  %v4647_v50 = vld [vmem:[%s8081_s1 + $0x118] sm:$0xf0] }
  0x70   : > { %8191 = vst [vmem:[#allocation22_spill] sm:$0xff] %v6117_v12 }
  0x71   : > { %8192 = vst [vmem:[#allocation23_spill] sm:$0xff] %v6119_v13 }
  0x72   : > { %8209 = vst [vmem:[#allocation40_spill] sm:$0xff] %v6215_v1 }
  0x73   : > { %8210 = vst [vmem:[#allocation41_spill] sm:$0xff] %v6217_v2 }
  0x74   : > { %600 = vperm.xlu2 %5278, %v546_v29   ;;  %v4613_v29 = vld [vmem:[%s8081_s1 + $0xc8] sm:$0xf]  ;;  %8211 = vst [vmem:[#allocation42_spill] sm:$0xff] %v6222_v5 }
  0x76   : > { %590 = vperm.xlu0 %5276, %v544_v21  }
  0x77   : > { %670 = vperm.xlu1 %5277, %v560_v24   ;;  %v4607_v24 = vld [vmem:[%s8081_s1 + $0xd0] sm:$0xf0] }
  0x78   : > { %1391 = vmatmul.bf16.gmra.mxu0 %v5989_v25  ;;  %1480 = vmatmul.bf16.gmra.mxu1 %v5991_v26  ;;  %v6167_v35 = vor.u32 %v5081_v23, %v4607_v24  ;;  %v4637_v23 = vld [vmem:[%s8081_s1 + $0x100] sm:$0xf] }
  0x79   : > { %1569 = vmatmul.bf16.gmra.mxu2 %v5993_v27 }
  0x7a   : > { %1658 = vmatmul.bf16.gmra.mxu3 %v5995_v28  ;;  %8200 = vst [vmem:[#allocation31_spill] sm:$0xff] %v6167_v35 }
  0x7c   : > { %675 = vperm.xlu2 %5278, %v561_v32   ;;  %v5082_v32 = vld [vmem:[%s8081_s1 + $0xcc] sm:$0xf] }
  0x7d   : > { %v6171_v37 = vor.u32 %v5082_v32, %v4615_v33  ;;  %v4639_v32 = vld [vmem:[%s8081_s1 + $0x110] sm:$0xf0]  ;;  %v4645_v33 = vld [vmem:[%s8081_s1 + $0x108] sm:$0xf] }
  0x7e   : > { %665 = vperm.xlu0 %5276, %v559_v30   ;;  %v5084_v30 = vld [vmem:[%s8081_s1 + $0xd4] sm:$0xf0] }
  0x7f   : > { %580 = vperm.xlu1 %5277, %v542_v31   ;;  %v6169_v36 = vor.u32 %v5084_v30, %v4613_v29  ;;  %8202 = vst [vmem:[#allocation33_spill] sm:$0xff] %v6171_v37  ;;  %v5091_v29 = vld [vmem:[%s8081_s1 + $0x10c] sm:$0xf0]  ;;  %v5089_v30 = vld [vmem:[%s8081_s1 + $0x104] sm:$0xf] }
  0x80   : > { %v6264_v51 = vor.u32 %v5091_v29, %v4637_v23  ;;  %v6266_v52 = vor.u32 %v5089_v30, %v4639_v32 }
  0x81   : > { %8201 = vst [vmem:[#allocation32_spill] sm:$0xff] %v6169_v36 }
  0x82   : > { %8218 = vst [vmem:[#allocation49_spill] sm:$0xff] %v6264_v51 }
  0x83   : > { %8219 = vst [vmem:[#allocation50_spill] sm:$0xff] %v6266_v52 }
  0x84   : > { %585 = vperm.xlu2 %5278, %v543_v46   ;;  %v4621_v46 = vld [vmem:[%s8081_s1 + $0xe0] sm:$0xf] }
  0x85   : > { %v6213_v0 = vor.u32 %v5087_v48, %v4621_v46  ;;  %v5092_v46 = vld [vmem:[%s8081_s1 + $0x114] sm:$0xf0] }
  0x86   : > { %575 = vperm.xlu0 %5276, %v541_v39  }
  0x87   : > { %8208 = vst [vmem:[#allocation39_spill] sm:$0xff] %v6213_v0  ;;  %655 = vperm.xlu1 %5277, %v557_v4   ;;  %v6272_v4 = vor.u32 %v5092_v46, %v4645_v33 }
  0x88   : > { %1396 = vmatmul.bf16.gmra.mxu0 %v6040_v42  ;;  %1485 = vmatmul.bf16.gmra.mxu1 %v6042_v43 }
  0x89   : > { %1574 = vmatmul.bf16.gmra.mxu2 %v6044_v44  ;;  %8220 = vst [vmem:[#allocation51_spill] sm:$0xff] %v6272_v4 }
  0x8a   : > { %1663 = vmatmul.bf16.gmra.mxu3 %v6046_v45 }
  0x98   : > { %1401 = vmatmul.bf16.gmra.mxu0 %v6079_v59  ;;  %1490 = vmatmul.bf16.gmra.mxu1 %v6081_v60 }
  0x99   : > { %1579 = vmatmul.bf16.gmra.mxu2 %v6083_v61 }
  0x9a   : > { %1668 = vmatmul.bf16.gmra.mxu3 %v6085_v62 }
  0x9e   : > { %v6103_v3 = vpop.permute.xlu2 %640 }
  0xa6   : > { %v6133_v18 = vpop.permute.xlu2 %720 }
  0xa7   : > { %8195 = vst [vmem:[#allocation26_spill] sm:$0xff] %v6133_v18  ;;  %v5094_v18 = vld [vmem:[%s8081_s1 + $0x12c] sm:$0xf] }
  0xa8   : > { %1406 = vmatmul.bf16.gmra.mxu0 %v6117_v12  ;;  %1495 = vmatmul.bf16.gmra.mxu1 %v6119_v13  ;;  %v6127_v16 = vpop.permute.xlu0 %650 }
  0xa9   : > { %v6129_v17 = vpop.permute.xlu1 %645  ;;  %1584 = vmatmul.bf16.gmra.mxu2 %v6121_v14 }
  0xaa   : > { %1673 = vmatmul.bf16.gmra.mxu3 %v6123_v15 }
  0xae   : > { %v6157_v31 = vpop.permute.xlu2 %630 }
  0xaf   : > { %8198 = vst [vmem:[#allocation29_spill] sm:$0xff] %v6157_v31 }
  0xb0   : > { %v6135_v19 = vpop.permute.xlu0 %730 }
  0xb1   : > { %8196 = vst [vmem:[#allocation27_spill] sm:$0xff] %v6135_v19  ;;  %v6140_v21 = vpop.permute.xlu1 %725  ;;  %v6274_v19 = vor.u32 %v5090_v49, %v4647_v50  ;;  %v4653_v50 = vld [vmem:[%s8081_s1 + $0x120] sm:$0xf] }
  0xb2   : > { %8197 = vst [vmem:[#allocation28_spill] sm:$0xff] %v6140_v21 }
  0xb3   : > { %8221 = vst [vmem:[#allocation52_spill] sm:$0xff] %v6274_v19 }
  0xb6   : > { %v6181_v40 = vpop.permute.xlu2 %705 }
  0xb7   : > { %8204 = vst [vmem:[#allocation35_spill] sm:$0xff] %v6181_v40 }
  0xb8   : > { %1411 = vmatmul.bf16.gmra.mxu0 %v6165_v34  ;;  %1500 = vmatmul.bf16.gmra.mxu1 %v6167_v35  ;;  %v6175_v38 = vpop.permute.xlu0 %635 }
  0xb9   : > { %1589 = vmatmul.bf16.gmra.mxu2 %v6169_v36  ;;  %v6178_v39 = vpop.permute.xlu1 %715 }
  0xba   : > { %8203 = vst [vmem:[#allocation34_spill] sm:$0xff] %v6178_v39  ;;  %1678 = vmatmul.bf16.gmra.mxu3 %v6171_v37  ;;  %v4663_v37 = vld [vmem:[%s8081_s1 + $0x138] sm:$0xf0] }
  0xbb   : > { %v6330_v13 = vor.u32 %v5094_v18, %v4663_v37 }
  0xbd   : > { %8227 = vst [vmem:[#allocation58_spill] sm:$0xff] %v6330_v13 }
  0xbe   : > { %v6205_v57 = vpop.permute.xlu2 %615 }
  0xbf   : > { %8207 = vst [vmem:[#allocation38_spill] sm:$0xff] %v6205_v57 }
  0xc0   : > { %v6183_v41 = vpop.permute.xlu0 %710 }
  0xc1   : > { %8205 = vst [vmem:[#allocation36_spill] sm:$0xff] %v6183_v41  ;;  %v6188_v47 = vpop.permute.xlu1 %625 }
  0xc2   : > { %8206 = vst [vmem:[#allocation37_spill] sm:$0xff] %v6188_v47 }
  0xc6   : > { %v6232_v20 = vpop.permute.xlu2 %690 }
  0xc7   : > { %8214 = vst [vmem:[#allocation45_spill] sm:$0xff] %v6232_v20 }
  0xc8   : > { %1416 = vmatmul.bf16.gmra.mxu0 %v6213_v0  ;;  %1505 = vmatmul.bf16.gmra.mxu1 %v6215_v1  ;;  %v6226_v6 = vpop.permute.xlu0 %620  ;;  %v4661_v1 = vld [vmem:[%s8081_s1 + $0x128] sm:$0xf]  ;;  %v5096_v0 = vld [vmem:[%s8081_s1 + $0x134] sm:$0xf0] }
  0xc9   : > { %8212 = vst [vmem:[#allocation43_spill] sm:$0xff] %v6226_v6  ;;  %1594 = vmatmul.bf16.gmra.mxu2 %v6217_v2  ;;  %v6229_v11 = vpop.permute.xlu1 %700  ;;  %v558_v2 = vld [vmem:[%s8082_s2 + $0x88] sm:$0xff]  ;;  %v6327_v15 = vor.u32 %v5096_v0, %v4661_v1 }
  0xca   : > { %8213 = vst [vmem:[#allocation44_spill] sm:$0xff] %v6229_v11  ;;  %1683 = vmatmul.bf16.gmra.mxu3 %v6222_v5  ;;  %660 = vperm.xlu2 %5278, %v558_v2  }
  0xcb   : > { %8226 = vst [vmem:[#allocation57_spill] sm:$0xff] %v6327_v15 }
  0xce   : > { %v6256_v48 = vpop.permute.xlu2 %600 }
  0xcf   : > { %8217 = vst [vmem:[#allocation48_spill] sm:$0xff] %v6256_v48 }
  0xd0   : > { %v6234_v22 = vpop.permute.xlu0 %695 }
  0xd1   : > { %8215 = vst [vmem:[#allocation46_spill] sm:$0xff] %v6234_v22  ;;  %v6239_v24 = vpop.permute.xlu1 %610 }
  0xd2   : > { %8216 = vst [vmem:[#allocation47_spill] sm:$0xff] %v6239_v24 }
  0xd5   : > { %v6268_v58 = vpop.f32.mrf.mxu0  ;;  %v6270_v63 = vpop.f32.mrf.mxu1 }
  0xd6   : > { %v6284_v29 = vpop.permute.xlu2 %675 }
  0xd8   : > { %1421 = vmatmul.bf16.gmra.mxu0 %v6264_v51  ;;  %1510 = vmatmul.bf16.gmra.mxu1 %v6266_v52  ;;  %v6278_v5 = vpop.permute.xlu0 %605  ;;  %v4655_v51 = vld [vmem:[%s8081_s1 + $0x130] sm:$0xf0] }
  0xd9   : > { %8222 = vst [vmem:[#allocation53_spill] sm:$0xff] %v6278_v5  ;;  %1599 = vmatmul.bf16.gmra.mxu2 %v6272_v4  ;;  %v6281_v23 = vpop.permute.xlu1 %685  ;;  %v5095_v4 = vld [vmem:[%s8081_s1 + $0x12c] sm:$0xf0] }
  0xda   : > { %1688 = vmatmul.bf16.gmra.mxu3 %v6274_v19  ;;  %v5093_v19 = vld [vmem:[%s8081_s1 + $0x124] sm:$0xf]  ;;  %v6323_v35 = vor.u32 %v5095_v4, %v4653_v50 }
  0xdb   : > { %v6325_v34 = vor.u32 %v5093_v19, %v4655_v51 }
  0xdc   : > { %v6286_v30 = vpop.f32.mrf.mxu2  ;;  %8224 = vst [vmem:[#allocation55_spill] sm:$0xff] %v6323_v35 }
  0xdd   : > { %v6288_v32 = vpop.f32.mrf.mxu3  ;;  %v1384_v33 = vpop.f32.mrf.mxu0  ;;  %8225 = vst [vmem:[#allocation56_spill] sm:$0xff] %v6325_v34 }
  0xde   : > { %v1473_v46 = vpop.f32.mrf.mxu1  ;;  %v6315_v21 = vpop.permute.xlu2 %585 }
  0xdf   : > { %8223 = vst [vmem:[#allocation54_spill] sm:$0xff] %v6315_v21 }
  0xe0   : > { %v6290_v49 = vpop.permute.xlu0 %680 }
  0xe1   : > { %v6298_v52 = vpop.permute.xlu1 %595 }
  0xe4   : > { %v1562_v36 = vpop.f32.mrf.mxu2 }
  0xe5   : > { %v1651_v39 = vpop.f32.mrf.mxu3  ;;  %v1387_v41 = vpop.f32.mrf.mxu0 }
  0xe6   : > { %v1476_v2 = vpop.f32.mrf.mxu1  ;;  %v1388_v14 = vadd.f32 %v1387_v41, %v6315_v21 }
  0xe8   : > { %1426 = vmatmul.bf16.gmra.mxu0 %v6323_v35  ;;  %1515 = vmatmul.bf16.gmra.mxu1 %v6325_v34  ;;  %v6334_v12 = vpop.permute.xlu0 %590  ;;  %v1477_v40 = vadd.f32 %v1476_v2, %v1388_v14  ;;  %v4669_v14 = vld [vmem:[%s8081_s1 + $0x140] sm:$0xf] }
  0xe9   : > { %8228 = vst [vmem:[#allocation59_spill] sm:$0xff] %v6334_v12  ;;  %1604 = vmatmul.bf16.gmra.mxu2 %v6327_v15  ;;  %v6337_v19 = vpop.permute.xlu1 %670 }
  0xea   : > { %1693 = vmatmul.bf16.gmra.mxu3 %v6330_v13 }
  0xec   : > { %v1565_v0 = vpop.f32.mrf.mxu2 }
  0xed   : > { %v1566_v1 = vadd.f32 %v1565_v0, %v1477_v40  ;;  %v1654_v51 = vpop.f32.mrf.mxu3  ;;  %v1389_v4 = vpop.f32.mrf.mxu0  ;;  %v5099_v40 = vld [vmem:[%s8081_s1 + $0x14c] sm:$0xf0]  ;;  %v5097_v0 = vld [vmem:[%s8081_s1 + $0x144] sm:$0xf] }
  0xee   : > { %v1390_v18 = vadd.f32 %v1389_v4, %v6334_v12  ;;  %v1478_v37 = vpop.f32.mrf.mxu1  ;;  %v4677_v4 = vld [vmem:[%s8081_s1 + $0x148] sm:$0xf]  ;;  %v6372_v15 = vor.u32 %v5099_v40, %v4669_v14  ;;  %v5104_v40 = vld [vmem:[%s8081_s1 + $0x174] sm:$0xf0] }
  0xef   : > { %v6341_v41 = vadd.f32 %v1654_v51, %v1566_v1  ;;  %v4671_v1 = vld [vmem:[%s8081_s1 + $0x150] sm:$0xf0] }
  0xf0   : > { %v1479_v50 = vadd.f32 %v1478_v37, %v1390_v18  ;;  %v6343_v34 = vpop.permute.xlu0 %665  ;;  %v5100_v18 = vld [vmem:[%s8081_s1 + $0x154] sm:$0xf0]  ;;  %v5098_v37 = vld [vmem:[%s8081_s1 + $0x14c] sm:$0xf] }
  0xf1   : > { %8229 = vst [vmem:[#allocation60_spill] sm:$0xff] %v6341_v41  ;;  %v6348_v2 = vpop.permute.xlu1 %580  ;;  %v4679_v41 = vld [vmem:[%s8081_s1 + $0x158] sm:$0xf0]  ;;  %v6376_v11 = vor.u32 %v5100_v18, %v4677_v4 }
  0xf2   : > { %8230 = vst [vmem:[#allocation61_spill] sm:$0xff] %v6348_v2  ;;  %v1385_v51 = vadd.f32 %v1384_v33, %v6348_v2  ;;  %v6374_v33 = vor.u32 %v5097_v0, %v4671_v1  ;;  %v6379_v59 = vor.u32 %v5098_v37, %v4679_v41  ;;  %v5102_v0 = vld [vmem:[%s8081_s1 + $0x16c] sm:$0xf]  ;;  %v4695_v1 = vld [vmem:[%s8081_s1 + $0x178] sm:$0xf0] }
  0xf4   : > { %v1474_v12 = vadd.f32 %v1473_v46, %v1385_v51  ;;  %v1567_v13 = vpop.f32.mrf.mxu2 }
  0xf5   : > { %v1568_v35 = vadd.f32 %v1567_v13, %v1479_v50  ;;  %v1656_v21 = vpop.f32.mrf.mxu3  ;;  %v1392_v2 = vpop.f32.mrf.mxu0 }
  0xf6   : > { %v1563_v62 = vadd.f32 %v1562_v36, %v1474_v12  ;;  %v1393_v61 = vadd.f32 %v1392_v2, %v6298_v52  ;;  %v1481_v60 = vpop.f32.mrf.mxu1 }
  0xf7   : > { %v6381_v22 = vadd.f32 %v1656_v21, %v1568_v35 }
  0xf8   : > { %v1482_v20 = vadd.f32 %v1481_v60, %v1393_v61  ;;  %1431 = vmatmul.bf16.gmra.mxu0 %v6372_v15  ;;  %1520 = vmatmul.bf16.gmra.mxu1 %v6374_v33  ;;  %v6385_v46 = vpop.permute.xlu0 %575  ;;  %v6387_v13 = vadd.f32 %v1651_v39, %v1563_v62 }
  0xf9   : > { %1609 = vmatmul.bf16.gmra.mxu2 %v6376_v11  ;;  %v1383_v12 = vadd.f32 %v6268_v58, %v6385_v46  ;;  %v4685_v58 = vld [vmem:[%s8081_s1 + $0x160] sm:$0xf] }
  0xfa   : > { %1698 = vmatmul.bf16.gmra.mxu3 %v6379_v59 }
  0xfb   : > { %v1472_v36 = vadd.f32 %v6270_v63, %v1383_v12  ;;  %v5103_v63 = vld [vmem:[%s8081_s1 + $0x16c] sm:$0xf0] }
  0xfc   : > { %v1570_v21 = vpop.f32.mrf.mxu2  ;;  %v6425_v4 = vor.u32 %v5103_v63, %v4685_v58 }
  0xfd   : > { %v1561_v60 = vadd.f32 %v6286_v30, %v1472_v36  ;;  %v1571_v61 = vadd.f32 %v1570_v21, %v1482_v20  ;;  %v1659_v35 = vpop.f32.mrf.mxu3  ;;  %v1394_v41 = vpop.f32.mrf.mxu0  ;;  %v5101_v20 = vld [vmem:[%s8081_s1 + $0x164] sm:$0xf]  ;;  %v4687_v30 = vld [vmem:[%s8081_s1 + $0x170] sm:$0xf0] }
  0xfe   : > { %v1395_v50 = vadd.f32 %v1394_v41, %v6256_v48  ;;  %v1483_v14 = vpop.f32.mrf.mxu1  ;;  %8232 = vst [vmem:[#allocation63_spill] sm:$0xff] %v6425_v4  ;;  %v6427_v18 = vor.u32 %v5101_v20, %v4687_v30 }
  0xff   : > { %v6396_v62 = vadd.f32 %v1659_v35, %v1571_v61  ;;  %v6399_v39 = vadd.f32 %v6288_v32, %v1561_v60  ;;  %v4693_v32 = vld [vmem:[%s8081_s1 + $0x168] sm:$0xf]  ;;  %v6432_v35 = vor.u32 %v5102_v0, %v4695_v1  ;;  %v4701_v0 = vld [vmem:[%s8081_s1 + $0x180] sm:$0xf]  ;;  %v5107_v1 = vld [vmem:[%s8081_s1 + $0x18c] sm:$0xf0] }
 0x100   : > { %v1484_v2 = vadd.f32 %v1483_v14, %v1395_v50  ;;  %8233 = vst [vmem:[#allocation64_spill] sm:$0xff] %v6427_v18  ;;  %v6429_v21 = vor.u32 %v5104_v40, %v4693_v32 }
 0x101   : > { %8231 = vst [vmem:[#allocation62_spill] sm:$0xff] %v6396_v62 }
 0x102   : > { %8234 = vst [vmem:[#allocation65_spill] sm:$0xff] %v6429_v21 }
 0x103   : > { %8235 = vst [vmem:[#allocation66_spill] sm:$0xff] %v6432_v35 }
 0x104   : > { %v1572_v51 = vpop.f32.mrf.mxu2 }
 0x105   : > { %v1573_v37 = vadd.f32 %v1572_v51, %v1484_v2  ;;  %v1661_v12 = vpop.f32.mrf.mxu3  ;;  %v1397_v36 = vpop.f32.mrf.mxu0  ;;  %v5105_v51 = vld [vmem:[%s8081_s1 + $0x184] sm:$0xf] }
 0x106   : > { %v1398_v60 = vadd.f32 %v1397_v36, %v6278_v5  ;;  %v1486_v61 = vpop.f32.mrf.mxu1  ;;  %v5108_v36 = vld [vmem:[%s8081_s1 + $0x194] sm:$0xf0] }
 0x107   : > { %v6434_v41 = vadd.f32 %v1661_v12, %v1573_v37  ;;  %v4703_v37 = vld [vmem:[%s8081_s1 + $0x190] sm:$0xf0]  ;;  %v4709_v12 = vld [vmem:[%s8081_s1 + $0x188] sm:$0xf] }
 0x108   : > { %v1487_v50 = vadd.f32 %v1486_v61, %v1398_v60  ;;  %1436 = vmatmul.bf16.gmra.mxu0 %v6425_v4  ;;  %1525 = vmatmul.bf16.gmra.mxu1 %v6427_v18  ;;  %v5106_v60 = vld [vmem:[%s8081_s1 + $0x18c] sm:$0xf]  ;;  %v4711_v61 = vld [vmem:[%s8081_s1 + $0x198] sm:$0xf0]  ;;  %v5145_v18 = vld [vmem:[%s5747_s22 + $0xc4] sm:$0xf] }
 0x109   : > { %8236 = vst [vmem:[#allocation67_spill] sm:$0xff] %v6434_v41  ;;  %1614 = vmatmul.bf16.gmra.mxu2 %v6429_v21  ;;  %v4799_v41 = vld [vmem:[%s5747_s22 + $0x48] sm:$0xf0] }
 0x10a   : > { %1703 = vmatmul.bf16.gmra.mxu3 %v6432_v35  ;;  %v6474_v35 = vor.u32 %v5106_v60, %v4711_v61 }
 0x10c   : > { %v1575_v14 = vpop.f32.mrf.mxu2  ;;  %8241 = vst [vmem:[#allocation72_spill] sm:$0xff] %v6474_v35 }
 0x10d   : > { %v1576_v2 = vadd.f32 %v1575_v14, %v1487_v50  ;;  %v1664_v58 = vpop.f32.mrf.mxu3  ;;  %v1399_v63 = vpop.f32.mrf.mxu0  ;;  %v6467_v14 = vor.u32 %v5107_v1, %v4701_v0  ;;  %v4823_v1 = vld [vmem:[%s5747_s22 + $0x78] sm:$0xf0] }
 0x10e   : > { %v1400_v20 = vadd.f32 %v1399_v63, %v6239_v24  ;;  %v1488_v30 = vpop.f32.mrf.mxu1 }
 0x10f   : > { %v6441_v32 = vadd.f32 %v1664_v58, %v1576_v2  ;;  %8238 = vst [vmem:[#allocation69_spill] sm:$0xff] %v6467_v14  ;;  %v6469_v2 = vor.u32 %v5105_v51, %v4703_v37  ;;  %v5151_v51 = vld [vmem:[%s5747_s22 + $0xf4] sm:$0xf] }
 0x110   : > { %v1489_v40 = vadd.f32 %v1488_v30, %v1400_v20  ;;  %v6471_v30 = vor.u32 %v5108_v36, %v4709_v12  ;;  %v4887_v12 = vld [vmem:[%s5747_s22 + $0xf8] sm:$0xf0]  ;;  %v5167_v36 = vld [vmem:[%s5747_s22 + $0x174] sm:$0xf] }
 0x111   : > { %8237 = vst [vmem:[#allocation68_spill] sm:$0xff] %v6441_v32  ;;  %v4890_v60 = vor.u32 %v5151_v51, %v4887_v12 }
 0x112   : > { %8239 = vst [vmem:[#allocation70_spill] sm:$0xff] %v6469_v2 }
 0x113   : > { %8240 = vst [vmem:[#allocation71_spill] sm:$0xff] %v6471_v30  ;;  %1818 = vmatpush.bf16.msrb.mxu1 %v4890_v60  ;;  %v4719_v60 = vld [vmem:[%s8081_s1 + $0x1b0] sm:$0xf0] }
 0x114   : > { %v1577_v50 = vpop.f32.mrf.mxu2 }
 0x115   : > { %v1578_v58 = vadd.f32 %v1577_v50, %v1489_v40  ;;  %v1666_v63 = vpop.f32.mrf.mxu3  ;;  %v1402_v20 = vpop.f32.mrf.mxu0  ;;  %v5135_v40 = vld [vmem:[%s5747_s22 + $0x74] sm:$0xf] }
 0x116   : > { %v1403_v32 = vadd.f32 %v1402_v20, %v6205_v57  ;;  %v1491_v24 = vpop.f32.mrf.mxu1  ;;  %v4826_v37 = vor.u32 %v5135_v40, %v4823_v1  ;;  %v5183_v50 = vld [vmem:[%s5747_s22 + $0x1f4] sm:$0xf]  ;;  %v4815_v40 = vld [vmem:[%s5747_s22 + $0x68] sm:$0xf0]  ;;  %v5149_v1 = vld [vmem:[%s5747_s22 + $0xe4] sm:$0xf] }
 0x117   : > { %v6476_v21 = vadd.f32 %v1666_v63, %v1578_v58  ;;  %v5015_v58 = vld [vmem:[%s5747_s22 + $0x1f8] sm:$0xf0]  ;;  %v5133_v63 = vld [vmem:[%s5747_s22 + $0x64] sm:$0xf] }
 0x118   : > { %v1492_v0 = vadd.f32 %v1491_v24, %v1403_v32  ;;  %1441 = vmatmul.bf16.gmra.mxu0 %v6467_v14  ;;  %1530 = vmatmul.bf16.gmra.mxu1 %v6469_v2  ;;  %v4951_v24 = vld [vmem:[%s5747_s22 + $0x178] sm:$0xf0]  ;;  %v4879_v2 = vld [vmem:[%s5747_s22 + $0xe8] sm:$0xf0]  ;;  %v4818_v51 = vor.u32 %v5133_v63, %v4815_v40 }
 0x119   : > { %8242 = vst [vmem:[#allocation73_spill] sm:$0xff] %v6476_v21  ;;  %1619 = vmatmul.bf16.gmra.mxu2 %v6471_v30  ;;  %v4954_v61 = vor.u32 %v5167_v36, %v4951_v24  ;;  %1729 = vmatpush.bf16.msrb.mxu0 %v4826_v37  ;;  %v5018_v21 = vor.u32 %v5183_v50, %v5015_v58  ;;  %v5165_v36 = vld [vmem:[%s5747_s22 + $0x164] sm:$0xf]  ;;  %v4717_v37 = vld [vmem:[%s8081_s1 + $0x1a0] sm:$0xf] }
 0x11a   : > { %1708 = vmatmul.bf16.gmra.mxu3 %v6474_v35  ;;  %v4882_v12 = vor.u32 %v5149_v1, %v4879_v2  ;;  %v5181_v24 = vld [vmem:[%s5747_s22 + $0x1e4] sm:$0xf]  ;;  %v4725_v58 = vld [vmem:[%s8081_s1 + $0x1a8] sm:$0xf]  ;;  %v4807_v40 = vld [vmem:[%s5747_s22 + $0x58] sm:$0xf0] }
 0x11b   : > { %1907 = vmatpush.bf16.msrb.mxu2 %v4954_v61  ;;  %v5109_v2 = vld [vmem:[%s8081_s1 + $0x1a4] sm:$0xf]  ;;  %1996 = vmatpush.bf16.msrb.mxu3 %v5018_v21  ;;  %v5007_v61 = vld [vmem:[%s5747_s22 + $0x1e8] sm:$0xf0]  ;;  %v5147_v1 = vld [vmem:[%s5747_s22 + $0xd4] sm:$0xf] }
 0x11c   : > { %v1580_v32 = vpop.f32.mrf.mxu2  ;;  %v5010_v63 = vor.u32 %v5181_v24, %v5007_v61  ;;  %1819 = vmatpush.bf16.msrb.mxu1 %v4882_v12  ;;  %v4999_v24 = vld [vmem:[%s5747_s22 + $0x1d8] sm:$0xf0]  ;;  %v5110_v61 = vld [vmem:[%s8081_s1 + $0x1ac] sm:$0xf] }
 0x11d   : > { %v1581_v20 = vadd.f32 %v1580_v32, %v1492_v0  ;;  %v1669_v35 = vpop.f32.mrf.mxu3  ;;  %v1404_v30 = vpop.f32.mrf.mxu0  ;;  %v4943_v0 = vld [vmem:[%s5747_s22 + $0x168] sm:$0xf0]  ;;  %1730 = vmatpush.bf16.msrb.mxu0 %v4818_v51  ;;  %v4727_v51 = vld [vmem:[%s8081_s1 + $0x1b8] sm:$0xf0] }
 0x11e   : > { %v1405_v14 = vadd.f32 %v1404_v30, %v6226_v6  ;;  %v1493_v57 = vpop.f32.mrf.mxu1  ;;  %v5111_v30 = vld [vmem:[%s8081_s1 + $0x1ac] sm:$0xf0]  ;;  %v5179_v6 = vld [vmem:[%s5747_s22 + $0x1d4] sm:$0xf] }
 0x11f   : > { %v6498_v32 = vadd.f32 %v1669_v35, %v1581_v20  ;;  %v4946_v35 = vor.u32 %v5165_v36, %v4943_v0  ;;  %v5131_v20 = vld [vmem:[%s5747_s22 + $0x54] sm:$0xf]  ;;  %v4871_v36 = vld [vmem:[%s5747_s22 + $0xd8] sm:$0xf0]  ;;  %1997 = vmatpush.bf16.msrb.mxu3 %v5010_v63  ;;  %v5002_v12 = vor.u32 %v5179_v6, %v4999_v24  ;;  %v4927_v6 = vld [vmem:[%s5747_s22 + $0x148] sm:$0xf0] }
 0x120   : > { %v1494_v50 = vadd.f32 %v1493_v57, %v1405_v14  ;;  %v4810_v21 = vor.u32 %v5131_v20, %v4807_v40  ;;  %v5163_v0 = vld [vmem:[%s5747_s22 + $0x154] sm:$0xf]  ;;  %v4874_v57 = vor.u32 %v5147_v1, %v4871_v36  ;;  %v4935_v14 = vld [vmem:[%s5747_s22 + $0x158] sm:$0xf0]  ;;  %v6535_v1 = vor.u32 %v5109_v2, %v4719_v60  ;;  %v5129_v36 = vld [vmem:[%s5747_s22 + $0x44] sm:$0xf] }
 0x121   : > { %8243 = vst [vmem:[#allocation74_spill] sm:$0xff] %v6498_v32  ;;  %v5112_v32 = vld [vmem:[%s8081_s1 + $0x1b4] sm:$0xf0]  ;;  %1908 = vmatpush.bf16.msrb.mxu2 %v4946_v35  ;;  %v4938_v20 = vor.u32 %v5163_v0, %v4935_v14  ;;  %v6533_v35 = vor.u32 %v5111_v30, %v4717_v37  ;;  %v4802_v63 = vor.u32 %v5129_v36, %v4799_v41  ;;  %v4863_v0 = vld [vmem:[%s5747_s22 + $0xc8] sm:$0xf0] }
 0x122   : > { %8245 = vst [vmem:[#allocation76_spill] sm:$0xff] %v6535_v1  ;;  %v6540_v48 = vor.u32 %v5112_v32, %v4725_v58  ;;  %1731 = vmatpush.bf16.msrb.mxu0 %v4810_v21  ;;  %v5161_v14 = vld [vmem:[%s5747_s22 + $0x144] sm:$0xf]  ;;  %v6546_v2 = vor.u32 %v5110_v61, %v4727_v51  ;;  %1820 = vmatpush.bf16.msrb.mxu1 %v4874_v57  ;;  %v4991_v24 = vld [vmem:[%s5747_s22 + $0x1c8] sm:$0xf0] }
 0x123   : > { %8244 = vst [vmem:[#allocation75_spill] sm:$0xff] %v6533_v35  ;;  %v4866_v60 = vor.u32 %v5145_v18, %v4863_v0  ;;  %1998 = vmatpush.bf16.msrb.mxu3 %v5002_v12  ;;  %v4930_v41 = vor.u32 %v5161_v14, %v4927_v6  ;;  %v5143_v18 = vld [vmem:[%s5747_s22 + $0xb4] sm:$0xf]  ;;  %v4855_v57 = vld [vmem:[%s5747_s22 + $0xb8] sm:$0xf0] }
 0x124   : > { %v1582_v40 = vpop.f32.mrf.mxu2  ;;  %8246 = vst [vmem:[#allocation77_spill] sm:$0xff] %v6540_v48  ;;  %v5159_v61 = vld [vmem:[%s5747_s22 + $0x134] sm:$0xf]  ;;  %v4919_v51 = vld [vmem:[%s5747_s22 + $0x138] sm:$0xf0]  ;;  %v4858_v12 = vor.u32 %v5143_v18, %v4855_v57 }
 0x125   : > { %v1583_v4 = vadd.f32 %v1582_v40, %v1494_v50  ;;  %v1671_v5 = vpop.f32.mrf.mxu3  ;;  %v1407_v62 = vpop.f32.mrf.mxu0  ;;  %8247 = vst [vmem:[#allocation78_spill] sm:$0xff] %v6546_v2  ;;  %1909 = vmatpush.bf16.msrb.mxu2 %v4938_v20  ;;  %v5177_v50 = vld [vmem:[%s5747_s22 + $0x1c4] sm:$0xf]  ;;  %v4922_v40 = vor.u32 %v5159_v61, %v4919_v51  ;;  %v5175_v36 = vld [vmem:[%s5747_s22 + $0x1b4] sm:$0xf] }
 0x126   : > { %v1408_v37 = vadd.f32 %v1407_v62, %v6188_v47  ;;  %v1496_v30 = vpop.f32.mrf.mxu1  ;;  %v4994_v58 = vor.u32 %v5177_v50, %v4991_v24  ;;  %1732 = vmatpush.bf16.msrb.mxu0 %v4802_v63  ;;  %1821 = vmatpush.bf16.msrb.mxu1 %v4866_v60  ;;  %v4983_v63 = vld [vmem:[%s5747_s22 + $0x1b8] sm:$0xf0]  ;;  %v5125_v0 = vld [vmem:[%s5747_s22 + $0x24] sm:$0xf]  ;;  %v4783_v60 = vld [vmem:[%s5747_s22 + $0x28] sm:$0xf0] }
 0x127   : > { %v6550_v32 = vadd.f32 %v1671_v5, %v1583_v4  ;;  %v5127_v5 = vld [vmem:[%s5747_s22 + $0x34] sm:$0xf]  ;;  %v4791_v4 = vld [vmem:[%s5747_s22 + $0x38] sm:$0xf0]  ;;  %v5141_v50 = vld [vmem:[%s5747_s22 + $0xa4] sm:$0xf] }
 0x128   : > { %v1497_v62 = vadd.f32 %v1496_v30, %v1408_v37  ;;  %1446 = vmatmul.bf16.gmra.mxu0 %v6533_v35  ;;  %1535 = vmatmul.bf16.gmra.mxu1 %v6535_v1  ;;  %v4794_v21 = vor.u32 %v5127_v5, %v4791_v4  ;;  %v4986_v30 = vor.u32 %v5175_v36, %v4983_v63  ;;  %v4847_v24 = vld [vmem:[%s5747_s22 + $0xa8] sm:$0xf0]  ;;  %v5157_v18 = vld [vmem:[%s5747_s22 + $0x124] sm:$0xf]  ;;  %v5115_v51 = vld [vmem:[%s8081_s1 + $0x1cc] sm:$0xf0] }
 0x129   : > { %8248 = vst [vmem:[#allocation79_spill] sm:$0xff] %v6550_v32  ;;  %1624 = vmatmul.bf16.gmra.mxu2 %v6540_v48  ;;  %1999 = vmatpush.bf16.msrb.mxu3 %v4994_v58  ;;  %v4786_v5 = vor.u32 %v5125_v0, %v4783_v60  ;;  %v4850_v4 = vor.u32 %v5141_v50, %v4847_v24  ;;  %v4911_v57 = vld [vmem:[%s5747_s22 + $0x128] sm:$0xf0]  ;;  %v4775_v60 = vld [vmem:[%s5747_s22 + $0x18] sm:$0xf0] }
 0x12a   : > { %1713 = vmatmul.bf16.gmra.mxu3 %v6546_v2  ;;  %1910 = vmatpush.bf16.msrb.mxu2 %v4930_v41  ;;  %v4914_v36 = vor.u32 %v5157_v18, %v4911_v57  ;;  %v4975_v63 = vld [vmem:[%s5747_s22 + $0x1a8] sm:$0xf0]  ;;  %v5139_v50 = vld [vmem:[%s5747_s22 + $0x94] sm:$0xf]  ;;  %v5116_v24 = vld [vmem:[%s8081_s1 + $0x1d4] sm:$0xf0] }
 0x12b   : > { %1733 = vmatpush.bf16.msrb.mxu0 %v4794_v21  ;;  %1822 = vmatpush.bf16.msrb.mxu1 %v4858_v12  ;;  %v4733_v21 = vld [vmem:[%s8081_s1 + $0x1c0] sm:$0xf]  ;;  %v4735_v12 = vld [vmem:[%s8081_s1 + $0x1d0] sm:$0xf0]  ;;  %v5137_v2 = vld [vmem:[%s5747_s22 + $0x84] sm:$0xf] }
 0x12c   : > { %v1585_v20 = vpop.f32.mrf.mxu2  ;;  %v5155_v18 = vld [vmem:[%s5747_s22 + $0x114] sm:$0xf]  ;;  %v4959_v35 = vld [vmem:[%s5747_s22 + $0x188] sm:$0xf0] }
 0x12d   : > { %v1586_v14 = vadd.f32 %v1585_v20, %v1497_v62  ;;  %v1674_v6 = vpop.f32.mrf.mxu3  ;;  %v1409_v37 = vpop.f32.mrf.mxu0  ;;  %v5173_v62 = vld [vmem:[%s5747_s22 + $0x1a4] sm:$0xf]  ;;  %2000 = vmatpush.bf16.msrb.mxu3 %v4986_v30  ;;  %v4839_v30 = vld [vmem:[%s5747_s22 + $0x98] sm:$0xf0]  ;;  %v5171_v57 = vld [vmem:[%s5747_s22 + $0x194] sm:$0xf] }
 0x12e   : > { %v1410_v41 = vadd.f32 %v1409_v37, %v6157_v31  ;;  %v1498_v58 = vpop.f32.mrf.mxu1  ;;  %v5113_v20 = vld [vmem:[%s8081_s1 + $0x1c4] sm:$0xf]  ;;  %1911 = vmatpush.bf16.msrb.mxu2 %v4922_v40  ;;  %v5123_v37 = vld [vmem:[%s5747_s22 + $0x14] sm:$0xf]  ;;  %v4767_v31 = vld [vmem:[%s5747_s22 + $0x8] sm:$0xf0] }
 0x12f   : > { %v6572_v61 = vadd.f32 %v1674_v6, %v1586_v14  ;;  %v4741_v14 = vld [vmem:[%s8081_s1 + $0x1c8] sm:$0xf]  ;;  %v4978_v6 = vor.u32 %v5173_v62, %v4975_v63  ;;  %1734 = vmatpush.bf16.msrb.mxu0 %v4786_v5  ;;  %v4778_v40 = vor.u32 %v5123_v37, %v4775_v60  ;;  %1823 = vmatpush.bf16.msrb.mxu1 %v4850_v4  ;;  %v5114_v62 = vld [vmem:[%s8081_s1 + $0x1cc] sm:$0xf]  ;;  %v4743_v63 = vld [vmem:[%s8081_s1 + $0x1d8] sm:$0xf0] }
 0x130   : > { %v1499_v0 = vadd.f32 %v1498_v58, %v1410_v41  ;;  %v4842_v41 = vor.u32 %v5139_v50, %v4839_v30  ;;  %v4903_v58 = vld [vmem:[%s5747_s22 + $0x118] sm:$0xf0]  ;;  %v6607_v60 = vor.u32 %v5115_v51, %v4733_v21  ;;  %v6609_v50 = vor.u32 %v5113_v20, %v4735_v12  ;;  %v5121_v30 = vld [vmem:[%s5747_s22 + $0x4] sm:$0xf] }
 0x131   : > { %8249 = vst [vmem:[#allocation80_spill] sm:$0xff] %v6572_v61  ;;  %v4967_v61 = vld [vmem:[%s5747_s22 + $0x198] sm:$0xf0]  ;;  %2001 = vmatpush.bf16.msrb.mxu3 %v4978_v6  ;;  %v4906_v5 = vor.u32 %v5155_v18, %v4903_v58  ;;  %v4770_v6 = vor.u32 %v5121_v30, %v4767_v31  ;;  %v4831_v18 = vld [vmem:[%s5747_s22 + $0x88] sm:$0xf0]  ;;  %v6620_v20 = vor.u32 %v5114_v62, %v4743_v63 }
 0x132   : > { %1912 = vmatpush.bf16.msrb.mxu2 %v4914_v36  ;;  %v4970_v4 = vor.u32 %v5171_v57, %v4967_v61  ;;  %v6614_v36 = vor.u32 %v5116_v24, %v4741_v14  ;;  %v5153_v58 = vld [vmem:[%s5747_s22 + $0x104] sm:$0xf]  ;;  %v4895_v61 = vld [vmem:[%s5747_s22 + $0x108] sm:$0xf0]  ;;  %v4834_v12 = vor.u32 %v5137_v2, %v4831_v18  ;;  %v4749_v62 = vld [vmem:[%s8081_s1 + $0x1e0] sm:$0xf] }
 0x133   : > { %1735 = vmatpush.bf16.msrb.mxu0 %v4778_v40  ;;  %1824 = vmatpush.bf16.msrb.mxu1 %v4842_v41  ;;  %v5169_v57 = vld [vmem:[%s5747_s22 + $0x184] sm:$0xf]  ;;  %v5119_v63 = vld [vmem:[%s8081_s1 + $0x1ec] sm:$0xf0]  ;;  %v5120_v30 = vld [vmem:[%s8081_s1 + $0x1f4] sm:$0xf0] }
 0x134   : > { %v1587_v37 = vpop.f32.mrf.mxu2  ;;  %v4962_v14 = vor.u32 %v5169_v57, %v4959_v35  ;;  %v4759_v18 = vld [vmem:[%s8081_s1 + $0x1f8] sm:$0xf0]  ;;  %s5185_s22 = sshll.u32 %s5575_s30, 4  ;;  %s4375_s30 = scalar_lea.sflag [#allocation6], %s5743_s21 }
 0x135   : > { %v1588_v48 = vadd.f32 %v1587_v37, %v1499_v0  ;;  %v1676_v32 = vpop.f32.mrf.mxu3  ;;  %v1412_v1 = vpop.f32.mrf.mxu0  ;;  %2002 = vmatpush.bf16.msrb.mxu3 %v4970_v4  ;;  %v4898_v0 = vor.u32 %v5153_v58, %v4895_v61  ;;  %v4751_v4 = vld [vmem:[%s8081_s1 + $0x1f0] sm:$0xf0]  ;;  %v4757_v37 = vld [vmem:[%s8081_s1 + $0x1e8] sm:$0xf]  ;;  %v6657_v61 = vor.u32 %v5119_v63, %v4749_v62  ;;  %s4386_s15 = scalar_lea.hbm %s8088_s8, %s5185_s22 }
 0x136   : > { %v1413_v21 = vadd.f32 %v1412_v1, %v6175_v38  ;;  %v1501_v51 = vpop.f32.mrf.mxu1  ;;  %1913 = vmatpush.bf16.msrb.mxu2 %v4906_v5  ;;  %v5117_v5 = vld [vmem:[%s8081_s1 + $0x1e4] sm:$0xf]  ;;  %s4390_s23 = sshll.u32 %s4386_s15, 4  ;;  %s4391_s23 = int_to_ptr.hbm [resolvable:$true] %s4390_s23 }
 0x137   : > { %v6624_v47 = vadd.f32 %v1676_v32, %v1588_v48  ;;  %1736 = vmatpush.bf16.msrb.mxu0 %v4770_v6  ;;  %1825 = vmatpush.bf16.msrb.mxu1 %v4834_v12  ;;  %v5118_v6 = vld [vmem:[%s8081_s1 + $0x1ec] sm:$0xf]  ;;  %s5511_s19 = sshra.s32 %s4391_s23, 4  ;;  %s5512_s19 = int_to_ptr.hbm [resolvable:$true] %s5511_s19 }
 0x138   : > { %v1502_v24 = vadd.f32 %v1501_v51, %v1413_v21  ;;  %1451 = vmatmul.bf16.gmra.mxu0 %v6607_v60  ;;  %1540 = vmatmul.bf16.gmra.mxu1 %v6609_v50  ;;  %v6659_v21 = vor.u32 %v5117_v5, %v4751_v4  ;;  %s5513_s24 = scalar_lea.hbm %s5512_s19, 16  ;;  %p5518_p10 = scmp.lt.s32.totalorder %s5512_s19, %s8088_s8 }
 0x139   : > { %1629 = vmatmul.bf16.gmra.mxu2 %v6614_v36  ;;  %2003 = vmatpush.bf16.msrb.mxu3 %v4962_v14  ;;  %p5514_p1 = scmp.ne.s32.totalorder %s5512_s19, %s5513_s24  ;;  %p5519_p12 = scmp.lt.s32.totalorder %s5517_s12, %s5513_s24 }
 0x13a   : > { %1718 = vmatmul.bf16.gmra.mxu3 %v6620_v20  ;;  %1914 = vmatpush.bf16.msrb.mxu2 %v4898_v0  ;;  %v6661_v0 = vor.u32 %v5120_v30, %v4757_v37  ;;  %v6675_v37 = vpop.permute.xlu1 %655 }
 0x13b   : > { %p5515_p4 = pnand %p5514_p1, %p5722_p7  ;;  %p5520_p13 = por %p5519_p12, %p5518_p10 }
 0x13c   : > { %v1590_v31 = vpop.f32.mrf.mxu2 }
 0x13d   : > { %v1591_v48 = vadd.f32 %v1590_v31, %v1502_v24  ;;  %v1679_v1 = vpop.f32.mrf.mxu3  ;;  %v1414_v2 = vpop.f32.mrf.mxu0  ;;  %v6664_v31 = vor.u32 %v5118_v6, %v4759_v18  ;;  %p5516_p8 = pneg %p5515_p4 }
 0x13e   : > { %v1415_v32 = vadd.f32 %v1414_v2, %v6103_v3  ;;  %v1503_v35 = vpop.f32.mrf.mxu1 }
 0x13f   : > { %v6631_v40 = vadd.f32 %v1679_v1, %v1591_v48  ;;  %p5521_p0 = pnand %p5520_p13, %p5516_p8 }
 0x140   : > { %v1504_v41 = vadd.f32 %v1503_v35, %v1415_v32 }
 0x144   : > { %v1592_v58 = vpop.f32.mrf.mxu2 }
 0x145   : > { %v1593_v51 = vadd.f32 %v1592_v58, %v1504_v41  ;;  %v1681_v12 = vpop.f32.mrf.mxu3  ;;  %v1417_v57 = vpop.f32.mrf.mxu0 }
 0x146   : > { %v1418_v14 = vadd.f32 %v1417_v57, %v6129_v17  ;;  %v1506_v24 = vpop.f32.mrf.mxu1 }
 0x147   : > { %v6666_v48 = vadd.f32 %v1681_v12, %v1593_v51 }
 0x148   : > { %v1507_v1 = vadd.f32 %v1506_v24, %v1418_v14  ;;  %1456 = vmatmul.bf16.gmra.mxu0 %v6657_v61  ;;  %1545 = vmatmul.bf16.gmra.mxu1 %v6659_v21  ;;  %v6684_v24 = vpop.permute.xlu2 %660 }
 0x149   : > { %1634 = vmatmul.bf16.gmra.mxu2 %v6661_v0 }
 0x14a   : > { %1723 = vmatmul.bf16.gmra.mxu3 %v6664_v31 }
 0x14c   : > { %v1595_v2 = vpop.f32.mrf.mxu2 }
 0x14d   : > { %v1596_v32 = vadd.f32 %v1595_v2, %v1507_v1  ;;  %v1684_v35 = vpop.f32.mrf.mxu3  ;;  %v1419_v41 = vpop.f32.mrf.mxu0 }
 0x14e   : > { %v1420_v62 = vadd.f32 %v1419_v41, %v6127_v16  ;;  %v1508_v63 = vpop.f32.mrf.mxu1 }
 0x14f   : > { %v6673_v5 = vadd.f32 %v1684_v35, %v1596_v32 }
 0x150   : > { %v1509_v4 = vadd.f32 %v1508_v63, %v1420_v62 }
 0x154   : > { %v1597_v30 = vpop.f32.mrf.mxu2 }
 0x155   : > { %v1598_v6 = vadd.f32 %v1597_v30, %v1509_v4  ;;  %v1686_v18 = vpop.f32.mrf.mxu3  ;;  %v1422_v58 = vpop.f32.mrf.mxu0 }
 0x156   : > { %v1511_v51 = vpop.f32.mrf.mxu1  ;;  %v1423_v12 = vadd.f32 %v1422_v58, %v6675_v37 }
 0x157   : > { %v6678_v57 = vadd.f32 %v1686_v18, %v1598_v6 }
 0x158   : > { %1737 = vmatmul.bf16.vlgmr.msrb.gmra.mxu0 %v5881_v53  ;;  %1826 = vmatmul.bf16.vlgmr.msrb.gmra.mxu1 %v5883_v54  ;;  %v1512_v14 = vadd.f32 %v1511_v51, %v1423_v12 }
 0x159   : > { %1915 = vmatmul.bf16.vlgmr.msrb.gmra.mxu2 %v5885_v55 }
 0x15a   : > { %2004 = vmatmul.bf16.vlgmr.msrb.gmra.mxu3 %v5887_v56 }
 0x15c   : > { %v1600_v1 = vpop.f32.mrf.mxu2 }
 0x15d   : > { %v1601_v2 = vadd.f32 %v1600_v1, %v1512_v14  ;;  %v1689_v32 = vpop.f32.mrf.mxu3  ;;  %v1424_v35 = vpop.f32.mrf.mxu0 }
 0x15e   : > { %v1425_v41 = vadd.f32 %v1424_v35, %v6684_v24  ;;  %v1513_v62 = vpop.f32.mrf.mxu1 }
 0x15f   : > { %v6687_v63 = vadd.f32 %v1689_v32, %v1601_v2 }
 0x160   : > { %v1514_v4 = vadd.f32 %v1513_v62, %v1425_v41 }
 0x164   : > { %v1602_v53 = vpop.f32.mrf.mxu2 }
 0x165   : > { %v1603_v30 = vadd.f32 %v1602_v53, %v1514_v4  ;;  %v1691_v54 = vpop.f32.mrf.mxu3  ;;  %v1427_v6 = vpop.f32.mrf.mxu0 }
 0x166   : > { %v1428_v55 = vadd.f32 %v1427_v6, %v6343_v34  ;;  %v1516_v18 = vpop.f32.mrf.mxu1 }
 0x167   : > { %v6690_v56 = vadd.f32 %v1691_v54, %v1603_v30 }
 0x168   : > { %v1517_v58 = vadd.f32 %v1516_v18, %v1428_v55  ;;  %1742 = vmatmul.bf16.gmra.mxu0 %v5935_v7  ;;  %1831 = vmatmul.bf16.gmra.mxu1 %v5937_v8 }
 0x169   : > { %1920 = vmatmul.bf16.gmra.mxu2 %v5939_v9 }
 0x16a   : > { %2009 = vmatmul.bf16.gmra.mxu3 %v5941_v10 }
 0x16c   : > { %v1605_v51 = vpop.f32.mrf.mxu2 }
 0x16d   : > { %v1606_v12 = vadd.f32 %v1605_v51, %v1517_v58  ;;  %v1694_v14 = vpop.f32.mrf.mxu3  ;;  %v1429_v1 = vpop.f32.mrf.mxu0 }
 0x16e   : > { %v1430_v2 = vadd.f32 %v1429_v1, %v6337_v19  ;;  %v1518_v32 = vpop.f32.mrf.mxu1 }
 0x16f   : > { %v6697_v35 = vadd.f32 %v1694_v14, %v1606_v12 }
 0x170   : > { %v1519_v41 = vadd.f32 %v1518_v32, %v1430_v2 }
 0x174   : > { %v1607_v62 = vpop.f32.mrf.mxu2 }
 0x175   : > { %v1608_v4 = vadd.f32 %v1607_v62, %v1519_v41  ;;  %v1696_v53 = vpop.f32.mrf.mxu3  ;;  %v1432_v7 = vpop.f32.mrf.mxu0 }
 0x176   : > { %v1433_v8 = vadd.f32 %v1432_v7, %v6284_v29  ;;  %v1521_v30 = vpop.f32.mrf.mxu1 }
 0x177   : > { %v6700_v9 = vadd.f32 %v1696_v53, %v1608_v4 }
 0x178   : > { %v1522_v10 = vadd.f32 %v1521_v30, %v1433_v8  ;;  %1747 = vmatmul.bf16.gmra.mxu0 %v5989_v25  ;;  %1836 = vmatmul.bf16.gmra.mxu1 %v5991_v26  ;;  %v8250_v8 = vld [vmem:[#allocation45_spill] sm:$0xff] }
 0x179   : > { %1925 = vmatmul.bf16.gmra.mxu2 %v5993_v27 }
 0x17a   : > { %2014 = vmatmul.bf16.gmra.mxu3 %v5995_v28 }
 0x17c   : > { %v1610_v54 = vpop.f32.mrf.mxu2 }
 0x17d   : > { %v1611_v6 = vadd.f32 %v1610_v54, %v1522_v10  ;;  %v1699_v55 = vpop.f32.mrf.mxu3  ;;  %v1434_v18 = vpop.f32.mrf.mxu0 }
 0x17e   : > { %v1435_v58 = vadd.f32 %v1434_v18, %v6290_v49  ;;  %v1523_v51 = vpop.f32.mrf.mxu1 }
 0x17f   : > { %v6707_v12 = vadd.f32 %v1699_v55, %v1611_v6 }
 0x180   : > { %v1524_v14 = vadd.f32 %v1523_v51, %v1435_v58  ;;  %v8251_v51 = vld [vmem:[#allocation46_spill] sm:$0xff] }
 0x184   : > { %v1612_v1 = vpop.f32.mrf.mxu2 }
 0x185   : > { %v1613_v2 = vadd.f32 %v1612_v1, %v1524_v14  ;;  %v1701_v32 = vpop.f32.mrf.mxu3  ;;  %v1437_v25 = vpop.f32.mrf.mxu0  ;;  %v8252_v1 = vld [vmem:[#allocation18_spill] sm:$0xff] }
 0x186   : > { %v1438_v26 = vadd.f32 %v1437_v25, %v6281_v23  ;;  %v1526_v41 = vpop.f32.mrf.mxu1  ;;  %v8255_v25 = vld [vmem:[#allocation21_spill] sm:$0xff] }
 0x187   : > { %v6710_v27 = vadd.f32 %v1701_v32, %v1613_v2  ;;  %v8253_v2 = vld [vmem:[#allocation19_spill] sm:$0xff]  ;;  %v8254_v32 = vld [vmem:[#allocation20_spill] sm:$0xff] }
 0x188   : > { %v1527_v28 = vadd.f32 %v1526_v41, %v1438_v26  ;;  %1752 = vmatmul.bf16.gmra.mxu0 %v6040_v42  ;;  %1841 = vmatmul.bf16.gmra.mxu1 %v6042_v43 }
 0x189   : > { %1930 = vmatmul.bf16.gmra.mxu2 %v6044_v44 }
 0x18a   : > { %2019 = vmatmul.bf16.gmra.mxu3 %v6046_v45 }
 0x18c   : > { %v1615_v62 = vpop.f32.mrf.mxu2 }
 0x18d   : > { %v1616_v4 = vadd.f32 %v1615_v62, %v1527_v28  ;;  %v1704_v53 = vpop.f32.mrf.mxu3  ;;  %v1439_v7 = vpop.f32.mrf.mxu0 }
 0x18e   : > { %v1440_v30 = vadd.f32 %v1439_v7, %v8250_v8  ;;  %v1528_v10 = vpop.f32.mrf.mxu1 }
 0x18f   : > { %v6717_v54 = vadd.f32 %v1704_v53, %v1616_v4  ;;  %v8256_v4 = vld [vmem:[#allocation44_spill] sm:$0xff] }
 0x190   : > { %v1529_v6 = vadd.f32 %v1528_v10, %v1440_v30 }
 0x194   : > { %v1617_v55 = vpop.f32.mrf.mxu2 }
 0x195   : > { %v1618_v18 = vadd.f32 %v1617_v55, %v1529_v6  ;;  %v1706_v58 = vpop.f32.mrf.mxu3  ;;  %v1442_v42 = vpop.f32.mrf.mxu0 }
 0x196   : > { %v1443_v43 = vadd.f32 %v1442_v42, %v8251_v51  ;;  %v1531_v14 = vpop.f32.mrf.mxu1  ;;  %v8258_v42 = vld [vmem:[#allocation35_spill] sm:$0xff] }
 0x197   : > { %v6720_v44 = vadd.f32 %v1706_v58, %v1618_v18 }
 0x198   : > { %v1532_v45 = vadd.f32 %v1531_v14, %v1443_v43  ;;  %1757 = vmatmul.bf16.gmra.mxu0 %v8252_v1  ;;  %1846 = vmatmul.bf16.gmra.mxu1 %v8253_v2 }
 0x199   : > { %1935 = vmatmul.bf16.gmra.mxu2 %v8254_v32  ;;  %v8260_v32 = vld [vmem:[#allocation22_spill] sm:$0xff] }
 0x19a   : > { %2024 = vmatmul.bf16.gmra.mxu3 %v8255_v25  ;;  %v8262_v25 = vld [vmem:[#allocation24_spill] sm:$0xff] }
 0x19c   : > { %v1620_v26 = vpop.f32.mrf.mxu2 }
 0x19d   : > { %v1621_v41 = vadd.f32 %v1620_v26, %v1532_v45  ;;  %v1709_v28 = vpop.f32.mrf.mxu3  ;;  %v1444_v62 = vpop.f32.mrf.mxu0  ;;  %v8261_v45 = vld [vmem:[#allocation23_spill] sm:$0xff]  ;;  %v8263_v26 = vld [vmem:[#allocation25_spill] sm:$0xff] }
 0x19e   : > { %v1445_v53 = vadd.f32 %v1444_v62, %v8256_v4  ;;  %v1533_v7 = vpop.f32.mrf.mxu1 }
 0x19f   : > { %v6727_v30 = vadd.f32 %v1709_v28, %v1621_v41 }
 0x1a0   : > { %v1534_v10 = vadd.f32 %v1533_v7, %v1445_v53  ;;  %v8264_v7 = vld [vmem:[#allocation36_spill] sm:$0xff] }
 0x1a1   : > { %8257 = vst [vmem:[#allocation45_spill] sm:$0xff] %v6727_v30  ;;  %v8268_v30 = vld [vmem:[#allocation30_spill] sm:$0xff] }
 0x1a4   : > { %v1622_v6 = vpop.f32.mrf.mxu2 }
 0x1a5   : > { %v1623_v55 = vadd.f32 %v1622_v6, %v1534_v10  ;;  %v1711_v18 = vpop.f32.mrf.mxu3  ;;  %v1447_v58 = vpop.f32.mrf.mxu0 }
 0x1a6   : > { %v1448_v43 = vadd.f32 %v1447_v58, %v8258_v42  ;;  %v1536_v14 = vpop.f32.mrf.mxu1 }
 0x1a7   : > { %v6730_v1 = vadd.f32 %v1711_v18, %v1623_v55 }
 0x1a8   : > { %v1537_v2 = vadd.f32 %v1536_v14, %v1448_v43  ;;  %1762 = vmatmul.bf16.gmra.mxu0 %v8260_v32  ;;  %1851 = vmatmul.bf16.gmra.mxu1 %v8261_v45 }
 0x1a9   : > { %8259 = vst [vmem:[#allocation46_spill] sm:$0xff] %v6730_v1  ;;  %1940 = vmatmul.bf16.gmra.mxu2 %v8262_v25  ;;  %v8266_v1 = vld [vmem:[#allocation34_spill] sm:$0xff] }
 0x1aa   : > { %2029 = vmatmul.bf16.gmra.mxu3 %v8263_v26 }
 0x1ac   : > { %v1625_v41 = vpop.f32.mrf.mxu2 }
 0x1ad   : > { %v1626_v28 = vadd.f32 %v1625_v41, %v1537_v2  ;;  %v1714_v62 = vpop.f32.mrf.mxu3  ;;  %v1449_v53 = vpop.f32.mrf.mxu0  ;;  %v8269_v2 = vld [vmem:[#allocation31_spill] sm:$0xff]  ;;  %v8270_v41 = vld [vmem:[#allocation32_spill] sm:$0xff] }
 0x1ae   : > { %v1450_v10 = vadd.f32 %v1449_v53, %v8264_v7  ;;  %v1538_v6 = vpop.f32.mrf.mxu1  ;;  %v8271_v53 = vld [vmem:[#allocation33_spill] sm:$0xff]  ;;  %v8276_v7 = vld [vmem:[#allocation39_spill] sm:$0xff] }
 0x1af   : > { %v6737_v58 = vadd.f32 %v1714_v62, %v1626_v28 }
 0x1b0   : > { %v1539_v55 = vadd.f32 %v1538_v6, %v1450_v10 }
 0x1b1   : > { %8265 = vst [vmem:[#allocation18_spill] sm:$0xff] %v6737_v58 }
 0x1b4   : > { %v1627_v18 = vpop.f32.mrf.mxu2 }
 0x1b5   : > { %v1628_v43 = vadd.f32 %v1627_v18, %v1539_v55  ;;  %v1716_v14 = vpop.f32.mrf.mxu3  ;;  %v1452_v32 = vpop.f32.mrf.mxu0  ;;  %v8272_v55 = vld [vmem:[#allocation26_spill] sm:$0xff] }
 0x1b6   : > { %v1453_v45 = vadd.f32 %v1452_v32, %v8266_v1  ;;  %v1541_v42 = vpop.f32.mrf.mxu1 }
 0x1b7   : > { %v6740_v25 = vadd.f32 %v1716_v14, %v1628_v43 }
 0x1b8   : > { %v1542_v26 = vadd.f32 %v1541_v42, %v1453_v45  ;;  %1767 = vmatmul.bf16.gmra.mxu0 %v8268_v30  ;;  %1856 = vmatmul.bf16.gmra.mxu1 %v8269_v2 }
 0x1b9   : > { %8267 = vst [vmem:[#allocation19_spill] sm:$0xff] %v6740_v25  ;;  %1945 = vmatmul.bf16.gmra.mxu2 %v8270_v41  ;;  %v8274_v25 = vld [vmem:[#allocation28_spill] sm:$0xff] }
 0x1ba   : > { %2034 = vmatmul.bf16.gmra.mxu3 %v8271_v53 }
 0x1bc   : > { %v1630_v28 = vpop.f32.mrf.mxu2 }
 0x1bd   : > { %v1631_v62 = vadd.f32 %v1630_v28, %v1542_v26  ;;  %v1719_v10 = vpop.f32.mrf.mxu3  ;;  %v1454_v6 = vpop.f32.mrf.mxu0  ;;  %v8277_v26 = vld [vmem:[#allocation40_spill] sm:$0xff]  ;;  %v8278_v28 = vld [vmem:[#allocation41_spill] sm:$0xff] }
 0x1be   : > { %v1455_v18 = vadd.f32 %v1454_v6, %v8272_v55  ;;  %v1543_v58 = vpop.f32.mrf.mxu1  ;;  %v8279_v6 = vld [vmem:[#allocation42_spill] sm:$0xff] }
 0x1bf   : > { %v6747_v32 = vadd.f32 %v1719_v10, %v1631_v62 }
 0x1c0   : > { %v1544_v43 = vadd.f32 %v1543_v58, %v1455_v18 }
 0x1c1   : > { %8273 = vst [vmem:[#allocation20_spill] sm:$0xff] %v6747_v32 }
 0x1c4   : > { %v1632_v14 = vpop.f32.mrf.mxu2 }
 0x1c5   : > { %v1633_v42 = vadd.f32 %v1632_v14, %v1544_v43  ;;  %v1721_v45 = vpop.f32.mrf.mxu3  ;;  %v1457_v30 = vpop.f32.mrf.mxu0  ;;  %v8280_v43 = vld [vmem:[#allocation27_spill] sm:$0xff] }
 0x1c6   : > { %v1458_v2 = vadd.f32 %v1457_v30, %v8274_v25  ;;  %v1546_v1 = vpop.f32.mrf.mxu1  ;;  %v8283_v25 = vld [vmem:[#allocation49_spill] sm:$0xff] }
 0x1c7   : > { %v6750_v41 = vadd.f32 %v1721_v45, %v1633_v42 }
 0x1c8   : > { %v1547_v53 = vadd.f32 %v1546_v1, %v1458_v2  ;;  %1772 = vmatmul.bf16.gmra.mxu0 %v8276_v7  ;;  %1861 = vmatmul.bf16.gmra.mxu1 %v8277_v26 }
 0x1c9   : > { %8275 = vst [vmem:[#allocation21_spill] sm:$0xff] %v6750_v41  ;;  %1950 = vmatmul.bf16.gmra.mxu2 %v8278_v28 }
 0x1ca   : > { %2039 = vmatmul.bf16.gmra.mxu3 %v8279_v6 }
 0x1cc   : > { %v1635_v62 = vpop.f32.mrf.mxu2 }
 0x1cd   : > { %v1636_v58 = vadd.f32 %v1635_v62, %v1547_v53  ;;  %v1724_v10 = vpop.f32.mrf.mxu3  ;;  %v1459_v18 = vpop.f32.mrf.mxu0  ;;  %v8284_v53 = vld [vmem:[#allocation50_spill] sm:$0xff]  ;;  %v8285_v62 = vld [vmem:[#allocation51_spill] sm:$0xff] }
 0x1ce   : > { %v1460_v14 = vadd.f32 %v1459_v18, %v8280_v43  ;;  %v1548_v32 = vpop.f32.mrf.mxu1  ;;  %v8286_v18 = vld [vmem:[#allocation52_spill] sm:$0xff] }
 0x1cf   : > { %v6757_v30 = vadd.f32 %v1724_v10, %v1636_v58 }
 0x1d0   : > { %v1549_v42 = vadd.f32 %v1548_v32, %v1460_v14 }
 0x1d1   : > { %8281 = vst [vmem:[#allocation44_spill] sm:$0xff] %v6757_v30 }
 0x1d4   : > { %v1637_v45 = vpop.f32.mrf.mxu2 }
 0x1d5   : > { %v1638_v1 = vadd.f32 %v1637_v45, %v1549_v42  ;;  %v1726_v2 = vpop.f32.mrf.mxu3  ;;  %v1738_v7 = vpop.f32.mrf.mxu0  ;;  %v8287_v42 = vld [vmem:[#allocation61_spill] sm:$0xff] }
 0x1d6   : > { %v1739_v26 = vadd.f32 %v1738_v7, %v6385_v46  ;;  %v1827_v41 = vpop.f32.mrf.mxu1 }
 0x1d7   : > { %v6760_v28 = vadd.f32 %v1726_v2, %v1638_v1  ;;  %v2085_v1 = vmax.f32 %v6399_v39, 0.0  ;;  %v8292_v39 = vld [vmem:[#allocation57_spill] sm:$0xff] }
 0x1d8   : > { %v1828_v6 = vadd.f32 %v1827_v41, %v1739_v26  ;;  %1777 = vmatmul.bf16.gmra.mxu0 %v8283_v25  ;;  %1866 = vmatmul.bf16.gmra.mxu1 %v8284_v53 }
 0x1d9   : > { %8282 = vst [vmem:[#allocation22_spill] sm:$0xff] %v6760_v28  ;;  %1955 = vmatmul.bf16.gmra.mxu2 %v8285_v62  ;;  %v8289_v28 = vld [vmem:[#allocation54_spill] sm:$0xff] }
 0x1da   : > { %2044 = vmatmul.bf16.gmra.mxu3 %v8286_v18 }
 0x1dc   : > { %v1916_v58 = vpop.f32.mrf.mxu2 }
 0x1dd   : > { %v1917_v32 = vadd.f32 %v1916_v58, %v1828_v6  ;;  %v2005_v10 = vpop.f32.mrf.mxu3  ;;  %v1740_v14 = vpop.f32.mrf.mxu0 }
 0x1de   : > { %v1741_v45 = vadd.f32 %v1740_v14, %v8287_v42  ;;  %v1829_v30 = vpop.f32.mrf.mxu1  ;;  %v8290_v14 = vld [vmem:[#allocation55_spill] sm:$0xff]  ;;  %v8293_v42 = vld [vmem:[#allocation58_spill] sm:$0xff] }
 0x1df   : > { %v2006_v46 = vadd.f32 %v2005_v10, %v1917_v32  ;;  %v8291_v32 = vld [vmem:[#allocation56_spill] sm:$0xff]  ;;  %v2087_v10 = vmax.f32 %v6387_v13, 0.0 }
 0x1e0   : > { %v1830_v7 = vadd.f32 %v1829_v30, %v1741_v45 }
 0x1e1   : > { %v2086_v41 = vmax.f32 %v2006_v46, 0.0 }
 0x1e3   : > { %v6768_v2 = vpack.c.bf16 %v2086_v41, %v2085_v1  ;;  %v6770_v25 = vadd.f32 %v2086_v41, %v2085_v1 }
 0x1e4   : > { %v1918_v26 = vpop.f32.mrf.mxu2 }
 0x1e5   : > { %8288 = vst [vmem:[#allocation23_spill] sm:$0xff] %v6768_v2  ;;  %v1919_v53 = vadd.f32 %v1918_v26, %v1830_v7  ;;  %v2007_v62 = vpop.f32.mrf.mxu3  ;;  %v1743_v18 = vpop.f32.mrf.mxu0  ;;  %v8295_v26 = vld [vmem:[#allocation59_spill] sm:$0xff] }
 0x1e6   : > { %v1744_v6 = vadd.f32 %v1743_v18, %v8289_v28  ;;  %v1832_v58 = vpop.f32.mrf.mxu1 }
 0x1e7   : > { %v2008_v43 = vadd.f32 %v2007_v62, %v1919_v53 }
 0x1e8   : > { %v1833_v55 = vadd.f32 %v1832_v58, %v1744_v6  ;;  %1782 = vmatmul.bf16.gmra.mxu0 %v8290_v14  ;;  %1871 = vmatmul.bf16.gmra.mxu1 %v8291_v32 }
 0x1e9   : > { %v2088_v30 = vmax.f32 %v2008_v43, 0.0  ;;  %1960 = vmatmul.bf16.gmra.mxu2 %v8292_v39  ;;  %v8296_v43 = vld [vmem:[#allocation60_spill] sm:$0xff] }
 0x1ea   : > { %2049 = vmatmul.bf16.gmra.mxu3 %v8293_v42  ;;  %v2089_v58 = vmax.f32 %v8296_v43, 0.0 }
 0x1eb   : > { %v6778_v45 = vadd.f32 %v2088_v30, %v2087_v10  ;;  %v6780_v46 = vpack.c.bf16 %v2088_v30, %v2087_v10 }
 0x1ec   : > { %v1921_v7 = vpop.f32.mrf.mxu2 }
 0x1ed   : > { %8294 = vst [vmem:[#allocation24_spill] sm:$0xff] %v6780_v46  ;;  %v1922_v28 = vadd.f32 %v1921_v7, %v1833_v55  ;;  %v2010_v1 = vpop.f32.mrf.mxu3  ;;  %v1745_v41 = vpop.f32.mrf.mxu0 }
 0x1ee   : > { %v1746_v53 = vadd.f32 %v1745_v41, %v8295_v26  ;;  %v1834_v62 = vpop.f32.mrf.mxu1 }
 0x1ef   : > { %v2011_v18 = vadd.f32 %v2010_v1, %v1922_v28  ;;  %v2091_v28 = vmax.f32 %v6381_v22, 0.0 }
 0x1f0   : > { %v1835_v6 = vadd.f32 %v1834_v62, %v1746_v53 }
 0x1f1   : > { %v2090_v14 = vmax.f32 %v2011_v18, 0.0 }
 0x1f3   : > { %v6784_v32 = vpack.c.bf16 %v2090_v14, %v2089_v58  ;;  %v6786_v13 = vadd.f32 %v2090_v14, %v2089_v58  ;;  %v8300_v14 = vld [vmem:[#allocation62_spill] sm:$0xff] }
 0x1f4   : > { %v1923_v39 = vpop.f32.mrf.mxu2  ;;  %v2093_v22 = vmax.f32 %v8300_v14, 0.0 }
 0x1f5   : > { %8297 = vst [vmem:[#allocation25_spill] sm:$0xff] %v6784_v32  ;;  %v1924_v42 = vadd.f32 %v1923_v39, %v1835_v6  ;;  %v2012_v30 = vpop.f32.mrf.mxu3  ;;  %v1748_v10 = vpop.f32.mrf.mxu0  ;;  %v8299_v6 = vld [vmem:[#allocation48_spill] sm:$0xff] }
 0x1f6   : > { %v1749_v55 = vadd.f32 %v1748_v10, %v6298_v52  ;;  %v1837_v7 = vpop.f32.mrf.mxu1 }
 0x1f7   : > { %v2013_v46 = vadd.f32 %v2012_v30, %v1924_v42 }
 0x1f8   : > { %v1838_v2 = vadd.f32 %v1837_v7, %v1749_v55  ;;  %1787 = vmatmul.bf16.gmra.mxu0 %v6372_v15  ;;  %1876 = vmatmul.bf16.gmra.mxu1 %v6374_v33  ;;  %v8302_v55 = vld [vmem:[#allocation53_spill] sm:$0xff] }
 0x1f9   : > { %v2092_v1 = vmax.f32 %v2013_v46, 0.0  ;;  %1965 = vmatmul.bf16.gmra.mxu2 %v6376_v11 }
 0x1fa   : > { %2054 = vmatmul.bf16.gmra.mxu3 %v6379_v59 }
 0x1fb   : > { %v6794_v41 = vpack.c.bf16 %v2092_v1, %v2091_v28  ;;  %v6796_v26 = vadd.f32 %v2092_v1, %v2091_v28  ;;  %v8303_v1 = vld [vmem:[#allocation63_spill] sm:$0xff] }
 0x1fc   : > { %v1926_v53 = vpop.f32.mrf.mxu2 }
 0x1fd   : > { %8298 = vst [vmem:[#allocation30_spill] sm:$0xff] %v6794_v41  ;;  %v1927_v52 = vadd.f32 %v1926_v53, %v1838_v2  ;;  %v2015_v62 = vpop.f32.mrf.mxu3  ;;  %v1750_v18 = vpop.f32.mrf.mxu0  ;;  %v8304_v53 = vld [vmem:[#allocation64_spill] sm:$0xff]  ;;  %v8312_v41 = vld [vmem:[#allocation69_spill] sm:$0xff] }
 0x1fe   : > { %v1751_v43 = vadd.f32 %v1750_v18, %v8299_v6  ;;  %v1839_v15 = vpop.f32.mrf.mxu1 }
 0x1ff   : > { %v2016_v58 = vadd.f32 %v2015_v62, %v1927_v52  ;;  %v8305_v52 = vld [vmem:[#allocation67_spill] sm:$0xff] }
 0x200   : > { %v1840_v33 = vadd.f32 %v1839_v15, %v1751_v43  ;;  %v2095_v62 = vmax.f32 %v8305_v52, 0.0  ;;  %v8306_v43 = vld [vmem:[#allocation65_spill] sm:$0xff]  ;;  %v8307_v15 = vld [vmem:[#allocation66_spill] sm:$0xff] }
 0x201   : > { %v2094_v46 = vmax.f32 %v2016_v58, 0.0 }
 0x203   : > { %v6800_v39 = vpack.c.bf16 %v2094_v46, %v2093_v22  ;;  %v6802_v11 = vadd.f32 %v2094_v46, %v2093_v22 }
 0x204   : > { %v1928_v59 = vpop.f32.mrf.mxu2 }
 0x205   : > { %8301 = vst [vmem:[#allocation31_spill] sm:$0xff] %v6800_v39  ;;  %v1929_v42 = vadd.f32 %v1928_v59, %v1840_v33  ;;  %v2017_v30 = vpop.f32.mrf.mxu3  ;;  %v1753_v10 = vpop.f32.mrf.mxu0 }
 0x206   : > { %v1754_v2 = vadd.f32 %v1753_v10, %v8302_v55  ;;  %v1842_v7 = vpop.f32.mrf.mxu1  ;;  %v8309_v10 = vld [vmem:[#allocation47_spill] sm:$0xff] }
 0x207   : > { %v2018_v28 = vadd.f32 %v2017_v30, %v1929_v42 }
 0x208   : > { %1792 = vmatmul.bf16.gmra.mxu0 %v8303_v1  ;;  %1881 = vmatmul.bf16.gmra.mxu1 %v8304_v53  ;;  %v1843_v6 = vadd.f32 %v1842_v7, %v1754_v2  ;;  %v8310_v1 = vld [vmem:[#allocation68_spill] sm:$0xff] }
 0x209   : > { %v2096_v18 = vmax.f32 %v2018_v28, 0.0  ;;  %1970 = vmatmul.bf16.gmra.mxu2 %v8306_v43  ;;  %v2097_v53 = vmax.f32 %v8310_v1, 0.0  ;;  %v8315_v1 = vld [vmem:[#allocation71_spill] sm:$0xff] }
 0x20a   : > { %2059 = vmatmul.bf16.gmra.mxu3 %v8307_v15 }
 0x20b   : > { %v6810_v58 = vpack.c.bf16 %v2096_v18, %v2095_v62  ;;  %v6812_v33 = vadd.f32 %v2096_v18, %v2095_v62  ;;  %v8311_v18 = vld [vmem:[#allocation38_spill] sm:$0xff] }
 0x20c   : > { %v1931_v14 = vpop.f32.mrf.mxu2 }
 0x20d   : > { %8308 = vst [vmem:[#allocation32_spill] sm:$0xff] %v6810_v58  ;;  %v1932_v22 = vadd.f32 %v1931_v14, %v1843_v6  ;;  %v2020_v46 = vpop.f32.mrf.mxu3  ;;  %v1755_v59 = vpop.f32.mrf.mxu0 }
 0x20e   : > { %v1844_v42 = vpop.f32.mrf.mxu1  ;;  %v1756_v55 = vadd.f32 %v1755_v59, %v8309_v10 }
 0x20f   : > { %v2021_v30 = vadd.f32 %v2020_v46, %v1932_v22  ;;  %v8313_v22 = vld [vmem:[#allocation70_spill] sm:$0xff]  ;;  %v8314_v46 = vld [vmem:[#allocation73_spill] sm:$0xff] }
 0x210   : > { %v1845_v7 = vadd.f32 %v1844_v42, %v1756_v55  ;;  %v2099_v59 = vmax.f32 %v8314_v46, 0.0  ;;  %v8316_v42 = vld [vmem:[#allocation72_spill] sm:$0xff] }
 0x211   : > { %v2098_v28 = vmax.f32 %v2021_v30, 0.0 }
 0x213   : > { %v6816_v2 = vpack.c.bf16 %v2098_v28, %v2097_v53  ;;  %v2199_v52 = vadd.f32 %v2098_v28, %v2097_v53 }
 0x214   : > { %v1933_v43 = vpop.f32.mrf.mxu2 }
 0x215   : > { %v1934_v15 = vadd.f32 %v1933_v43, %v1845_v7  ;;  %v2022_v39 = vpop.f32.mrf.mxu3  ;;  %2200 = vadd.xlane.f32.xlu1 %v2199_v52  ;;  %v1758_v62 = vpop.f32.mrf.mxu0 }
 0x216   : > { %v1759_v6 = vadd.f32 %v1758_v62, %v8311_v18  ;;  %v1847_v14 = vpop.f32.mrf.mxu1  ;;  %v8319_v18 = vld [vmem:[#allocation74_spill] sm:$0xff] }
 0x217   : > { %v2023_v58 = vadd.f32 %v2022_v39, %v1934_v15  ;;  %v8318_v15 = vld [vmem:[#allocation43_spill] sm:$0xff] }
 0x218   : > { %1797 = vmatmul.bf16.gmra.mxu0 %v8312_v41  ;;  %1886 = vmatmul.bf16.gmra.mxu1 %v8313_v22  ;;  %v1848_v10 = vadd.f32 %v1847_v14, %v1759_v6  ;;  %v2101_v22 = vmax.f32 %v8319_v18, 0.0  ;;  %v8324_v18 = vld [vmem:[#allocation77_spill] sm:$0xff] }
 0x219   : > { %v2100_v30 = vmax.f32 %v2023_v58, 0.0  ;;  %1975 = vmatmul.bf16.gmra.mxu2 %v8315_v1 }
 0x21a   : > { %2064 = vmatmul.bf16.gmra.mxu3 %v8316_v42 }
 0x21b   : > { %v6824_v55 = vpack.c.bf16 %v2100_v30, %v2099_v59  ;;  %v2202_v53 = vadd.f32 %v2100_v30, %v2099_v59  ;;  %v8320_v30 = vld [vmem:[#allocation37_spill] sm:$0xff] }
 0x21c   : > { %v1936_v28 = vpop.f32.mrf.mxu2 }
 0x21d   : > { %8317 = vst [vmem:[#allocation33_spill] sm:$0xff] %v6824_v55  ;;  %v1937_v7 = vadd.f32 %v1936_v28, %v1848_v10  ;;  %v2025_v52 = vpop.f32.mrf.mxu3  ;;  %2203 = vadd.xlane.f32.xlu2 %v2202_v53  ;;  %v1760_v39 = vpop.f32.mrf.mxu0  ;;  %v8321_v55 = vld [vmem:[#allocation75_spill] sm:$0xff] }
 0x21e   : > { %v1849_v43 = vpop.f32.mrf.mxu1  ;;  %v1761_v62 = vadd.f32 %v1760_v39, %v8318_v15 }
 0x21f   : > { %v2026_v41 = vadd.f32 %v2025_v52, %v1937_v7  ;;  %v8322_v7 = vld [vmem:[#allocation76_spill] sm:$0xff]  ;;  %v8323_v52 = vld [vmem:[#allocation79_spill] sm:$0xff] }
 0x220   : > { %v1850_v14 = vadd.f32 %v1849_v43, %v1761_v62  ;;  %v2103_v39 = vmax.f32 %v8323_v52, 0.0  ;;  %v8325_v43 = vld [vmem:[#allocation78_spill] sm:$0xff] }
 0x221   : > { %v2102_v58 = vmax.f32 %v2026_v41, 0.0 }
 0x223   : > { %v6828_v6 = vpack.c.bf16 %v2102_v58, %v2101_v22  ;;  %v2205_v46 = vadd.f32 %v2102_v58, %v2101_v22 }
 0x224   : > { %v1938_v1 = vpop.f32.mrf.mxu2 }
 0x225   : > { %v1939_v42 = vadd.f32 %v1938_v1, %v1850_v14  ;;  %v2027_v32 = vpop.f32.mrf.mxu3  ;;  %2206 = vadd.xlane.f32.xlu0 %v2205_v46  ;;  %v1763_v59 = vpop.f32.mrf.mxu0 }
 0x226   : > { %v1764_v10 = vadd.f32 %v1763_v59, %v8320_v30  ;;  %v1852_v53 = vpop.f32.mrf.mxu1  ;;  %v8328_v30 = vld [vmem:[#allocation80_spill] sm:$0xff] }
 0x227   : > { %v2028_v28 = vadd.f32 %v2027_v32, %v1939_v42  ;;  %v8327_v42 = vld [vmem:[#allocation29_spill] sm:$0xff] }
 0x228   : > { %1802 = vmatmul.bf16.gmra.mxu0 %v8321_v55  ;;  %1891 = vmatmul.bf16.gmra.mxu1 %v8322_v7  ;;  %v1853_v15 = vadd.f32 %v1852_v53, %v1764_v10  ;;  %v2105_v7 = vmax.f32 %v8328_v30, 0.0 }
 0x229   : > { %v2104_v41 = vmax.f32 %v2028_v28, 0.0  ;;  %1980 = vmatmul.bf16.gmra.mxu2 %v8324_v18 }
 0x22a   : > { %2069 = vmatmul.bf16.gmra.mxu3 %v8325_v43 }
 0x22b   : > { %v6836_v62 = vpack.c.bf16 %v2104_v41, %v2103_v39  ;;  %v2208_v22 = vadd.f32 %v2104_v41, %v2103_v39 }
 0x22c   : > { %v1941_v58 = vpop.f32.mrf.mxu2 }
 0x22d   : > { %8326 = vst [vmem:[#allocation39_spill] sm:$0xff] %v6836_v62  ;;  %v1942_v14 = vadd.f32 %v1941_v58, %v1853_v15  ;;  %v2030_v46 = vpop.f32.mrf.mxu3  ;;  %2209 = vadd.xlane.f32.xlu1 %v2208_v22  ;;  %v1765_v32 = vpop.f32.mrf.mxu0  ;;  %v2107_v58 = vmax.f32 %v6624_v47, 0.0  ;;  %v2109_v47 = vmax.f32 %v6631_v40, 0.0 }
 0x22e   : > { %v1854_v1 = vpop.f32.mrf.mxu1  ;;  %v1766_v59 = vadd.f32 %v1765_v32, %v8327_v42 }
 0x22f   : > { %v2031_v55 = vadd.f32 %v2030_v46, %v1942_v14 }
 0x230   : > { %v1855_v53 = vadd.f32 %v1854_v1, %v1766_v59 }
 0x231   : > { %v2106_v28 = vmax.f32 %v2031_v55, 0.0 }
 0x233   : > { %v6840_v10 = vpack.c.bf16 %v2106_v28, %v2105_v7  ;;  %v2211_v52 = vadd.f32 %v2106_v28, %v2105_v7 }
 0x234   : > { %v1943_v18 = vpop.f32.mrf.mxu2 }
 0x235   : > { %v1944_v43 = vadd.f32 %v1943_v18, %v1855_v53  ;;  %v2032_v62 = vpop.f32.mrf.mxu3  ;;  %2212 = vadd.xlane.f32.xlu2 %v2211_v52  ;;  %v1768_v39 = vpop.f32.mrf.mxu0 }
 0x236   : > { %v1769_v41 = vadd.f32 %v1768_v39, %v6175_v38  ;;  %v1857_v15 = vpop.f32.mrf.mxu1 }
 0x237   : > { %v2033_v22 = vadd.f32 %v2032_v62, %v1944_v43 }
 0x238   : > { %1807 = vmatmul.bf16.gmra.mxu0 %v6607_v60  ;;  %1896 = vmatmul.bf16.gmra.mxu1 %v6609_v50  ;;  %v1858_v46 = vadd.f32 %v1857_v15, %v1769_v41 }
 0x239   : > { %v2108_v14 = vmax.f32 %v2033_v22, 0.0  ;;  %1985 = vmatmul.bf16.gmra.mxu2 %v6614_v36 }
 0x23a   : > { %2074 = vmatmul.bf16.gmra.mxu3 %v6620_v20 }
 0x23b   : > { %v6848_v32 = vpack.c.bf16 %v2108_v14, %v2107_v58  ;;  %v2214_v1 = vadd.f32 %v2108_v14, %v2107_v58 }
 0x23c   : > { %v1946_v55 = vpop.f32.mrf.mxu2 }
 0x23d   : > { %v1947_v42 = vadd.f32 %v1946_v55, %v1858_v46  ;;  %v2035_v38 = vpop.f32.mrf.mxu3  ;;  %2215 = vadd.xlane.f32.xlu0 %v2214_v1  ;;  %v1770_v62 = vpop.f32.mrf.mxu0 }
 0x23e   : > { %v1859_v59 = vpop.f32.mrf.mxu1  ;;  %v1771_v50 = vadd.f32 %v1770_v62, %v6103_v3  ;;  %v2111_v3 = vmax.f32 %v6666_v48, 0.0  ;;  %v2113_v48 = vmax.f32 %v6673_v5, 0.0 }
 0x23f   : > { %v2036_v60 = vadd.f32 %v2035_v38, %v1947_v42 }
 0x240   : > { %v1860_v36 = vadd.f32 %v1859_v59, %v1771_v50 }
 0x241   : > { %v2110_v30 = vmax.f32 %v2036_v60, 0.0 }
 0x243   : > { %v6852_v7 = vpack.c.bf16 %v2110_v30, %v2109_v47  ;;  %v2217_v28 = vadd.f32 %v2110_v30, %v2109_v47 }
 0x244   : > { %v1948_v20 = vpop.f32.mrf.mxu2 }
 0x245   : > { %v1949_v53 = vadd.f32 %v1948_v20, %v1860_v36  ;;  %v2037_v52 = vpop.f32.mrf.mxu3  ;;  %2218 = vadd.xlane.f32.xlu1 %v2217_v28  ;;  %v1773_v18 = vpop.f32.mrf.mxu0  ;;  %v2115_v28 = vmax.f32 %v6678_v57, 0.0  ;;  %v5592_v57 = vmov 0.0  }
 0x246   : > { %v1774_v43 = vadd.f32 %v1773_v18, %v6129_v17  ;;  %v1862_v39 = vpop.f32.mrf.mxu1  ;;  %387 = vst.msk [vmem:[#allocation3 + $0x30] sm:$0xff] %vm380_vm0, %v5592_v57 }
 0x247   : > { %v2038_v41 = vadd.f32 %v2037_v52, %v1949_v53  ;;  %381 = vst.msk [vmem:[#allocation3] sm:$0xff] %vm380_vm0, %v5592_v57 }
 0x248   : > { %1812 = vmatmul.bf16.gmra.mxu0 %v6657_v61  ;;  %1901 = vmatmul.bf16.gmra.mxu1 %v6659_v21  ;;  %v1863_v15 = vadd.f32 %v1862_v39, %v1774_v43  ;;  %382 = vst.msk [vmem:[#allocation3 + $0x8] sm:$0xff] %vm380_vm0, %v5592_v57 }
 0x249   : > { %v2112_v40 = vmax.f32 %v2038_v41, 0.0  ;;  %1990 = vmatmul.bf16.gmra.mxu2 %v6661_v0  ;;  %383 = vst.msk [vmem:[#allocation3 + $0x10] sm:$0xff] %vm380_vm0, %v5592_v57 }
 0x24a   : > { %2079 = vmatmul.bf16.gmra.mxu3 %v6664_v31  ;;  %384 = vst.msk [vmem:[#allocation3 + $0x18] sm:$0xff] %vm380_vm0, %v5592_v57 }
 0x24b   : > { %v6860_v22 = vpack.c.bf16 %v2112_v40, %v2111_v3  ;;  %v2220_v58 = vadd.f32 %v2112_v40, %v2111_v3  ;;  %385 = vst.msk [vmem:[#allocation3 + $0x20] sm:$0xff] %vm380_vm0, %v5592_v57 }
 0x24c   : > { %v1951_v14 = vpop.f32.mrf.mxu2  ;;  %386 = vst.msk [vmem:[#allocation3 + $0x28] sm:$0xff] %vm380_vm0, %v5592_v57 }
 0x24d   : > { %v1952_v46 = vadd.f32 %v1951_v14, %v1863_v15  ;;  %v2040_v17 = vpop.f32.mrf.mxu3  ;;  %2221 = vadd.xlane.f32.xlu2 %v2220_v58  ;;  %v1775_v1 = vpop.f32.mrf.mxu0  ;;  %388 = vst.msk [vmem:[#allocation3 + $0x38] sm:$0xff] %vm380_vm0, %v5592_v57 }
 0x24e   : > { %v1864_v55 = vpop.f32.mrf.mxu1  ;;  %v1776_v21 = vadd.f32 %v1775_v1, %v6127_v16  ;;  %389 = vst.msk [vmem:[#allocation3 + $0x40] sm:$0xff] %vm380_vm0, %v5592_v57 }
 0x24f   : > { %v2041_v61 = vadd.f32 %v2040_v17, %v1952_v46  ;;  %390 = vst.msk [vmem:[#allocation3 + $0x48] sm:$0xff] %vm380_vm0, %v5592_v57 }
 0x250   : > { %v1865_v0 = vadd.f32 %v1864_v55, %v1776_v21  ;;  %391 = vst.msk [vmem:[#allocation3 + $0x50] sm:$0xff] %vm380_vm0, %v5592_v57 }
 0x251   : > { %v2114_v42 = vmax.f32 %v2041_v61, 0.0  ;;  %392 = vst.msk [vmem:[#allocation3 + $0x58] sm:$0xff] %vm380_vm0, %v5592_v57 }
 0x252   : > { %393 = vst.msk [vmem:[#allocation3 + $0x60] sm:$0xff] %vm380_vm0, %v5592_v57 }
 0x253   : > { %v6864_v38 = vpack.c.bf16 %v2114_v42, %v2113_v48  ;;  %v2223_v62 = vadd.f32 %v2114_v42, %v2113_v48  ;;  %v8158_v48 = vmax.f32 %v6690_v56, 0.0  ;;  %394 = vst.msk [vmem:[#allocation3 + $0x68] sm:$0xff] %vm380_vm0, %v5592_v57 }
 0x254   : > { %v1953_v31 = vpop.f32.mrf.mxu2  ;;  %395 = vst.msk [vmem:[#allocation3 + $0x70] sm:$0xff] %vm380_vm0, %v5592_v57 }
 0x255   : > { %v1954_v59 = vadd.f32 %v1953_v31, %v1865_v0  ;;  %v2042_v60 = vpop.f32.mrf.mxu3  ;;  %2224 = vadd.xlane.f32.xlu1 %v2223_v62  ;;  %v1778_v50 = vpop.f32.mrf.mxu0  ;;  %396 = vst.msk [vmem:[#allocation3 + $0x78] sm:$0xff] %vm380_vm0, %v5592_v57 }
 0x256   : > { %v1779_v47 = vadd.f32 %v1778_v50, %v6675_v37  ;;  %v1867_v30 = vpop.f32.mrf.mxu1  ;;  %v2117_v37 = vmax.f32 %v6687_v63, 0.0  ;;  %397 = vst.msk [vmem:[#allocation3 + $0x80] sm:$0xff] %vm380_vm0, %v5592_v57 }
 0x257   : > { %v2043_v36 = vadd.f32 %v2042_v60, %v1954_v59  ;;  %398 = vst.msk [vmem:[#allocation3 + $0x88] sm:$0xff] %vm380_vm0, %v5592_v57 }
 0x258   : > { %v1868_v16 = vadd.f32 %v1867_v30, %v1779_v47  ;;  %399 = vst.msk [vmem:[#allocation3 + $0x90] sm:$0xff] %vm380_vm0, %v5592_v57 }
 0x259   : > { %v2116_v20 = vmax.f32 %v2043_v36, 0.0  ;;  %v2121_v36 = vmax.f32 %v6697_v35, 0.0  ;;  %400 = vst.msk [vmem:[#allocation3 + $0x98] sm:$0xff] %vm380_vm0, %v5592_v57 }
 0x25a   : > { %401 = vst.msk [vmem:[#allocation3 + $0xa0] sm:$0xff] %vm380_vm0, %v5592_v57 }
 0x25b   : > { %v6868_v53 = vpack.c.bf16 %v2116_v20, %v2115_v28  ;;  %v2226_v5 = vadd.f32 %v2116_v20, %v2115_v28  ;;  %402 = vst.msk [vmem:[#allocation3 + $0xa8] sm:$0xff] %vm380_vm0, %v5592_v57 }
 0x25c   : > { %v1956_v52 = vpop.f32.mrf.mxu2  ;;  %403 = vst.msk [vmem:[#allocation3 + $0xb0] sm:$0xff] %vm380_vm0, %v5592_v57 }
 0x25d   : > { %v1957_v18 = vadd.f32 %v1956_v52, %v1868_v16  ;;  %v2045_v43 = vpop.f32.mrf.mxu3  ;;  %2227 = vadd.xlane.f32.xlu2 %v2226_v5  ;;  %v1780_v39 = vpop.f32.mrf.mxu0  ;;  %404 = vst.msk [vmem:[#allocation3 + $0xb8] sm:$0xff] %vm380_vm0, %v5592_v57 }
 0x25e   : > { %v1869_v41 = vpop.f32.mrf.mxu1  ;;  %v1781_v40 = vadd.f32 %v1780_v39, %v6684_v24  ;;  %405 = vst.msk [vmem:[#allocation3 + $0xc0] sm:$0xff] %vm380_vm0, %v5592_v57 }
 0x25f   : > { %v6870_v3 = vadd.f32 %v2045_v43, %v1957_v18  ;;  %406 = vst.msk [vmem:[#allocation3 + $0xc8] sm:$0xff] %vm380_vm0, %v5592_v57 }
 0x260   : > { %v1870_v14 = vadd.f32 %v1869_v41, %v1781_v40  ;;  %v2123_v40 = vmax.f32 %v6700_v9, 0.0  ;;  %407 = vst.msk [vmem:[#allocation3 + $0xd0] sm:$0xff] %vm380_vm0, %v5592_v57 }
 0x261   : > { %v2118_v15 = vmax.f32 %v6870_v3, 0.0  ;;  %408 = vst.msk [vmem:[#allocation3 + $0xd8] sm:$0xff] %vm380_vm0, %v5592_v57 }
 0x262   : > { %409 = vst.msk [vmem:[#allocation3 + $0xe0] sm:$0xff] %vm380_vm0, %v5592_v57 }
 0x263   : > { %v6881_v58 = vpack.c.bf16 %v2118_v15, %v2117_v37  ;;  %410 = vst.msk [vmem:[#allocation3 + $0xe8] sm:$0xff] %vm380_vm0, %v5592_v57 }
 0x264   : > { %v1958_v24 = vpop.f32.mrf.mxu2  ;;  %411 = vst.msk [vmem:[#allocation3 + $0xf0] sm:$0xff] %vm380_vm0, %v5592_v57 }
 0x265   : > { %8329 = vst [vmem:[#allocation40_spill] sm:$0xff] %v6881_v58  ;;  %v1959_v46 = vadd.f32 %v1958_v24, %v1870_v14  ;;  %v2047_v17 = vpop.f32.mrf.mxu3  ;;  %v1783_v1 = vpop.f32.mrf.mxu0  ;;  %v2173_v3 = vld [vmem:[#allocation3 + $0xc0] sm:$0xff] }
 0x266   : > { %v1784_v55 = vadd.f32 %v1783_v1, %v6343_v34  ;;  %v1872_v61 = vpop.f32.mrf.mxu1  ;;  %412 = vst.msk [vmem:[#allocation3 + $0xf8] sm:$0xff] %vm380_vm0, %v5592_v57 }
 0x267   : > { %v6892_v21 = vadd.f32 %v2047_v17, %v1959_v46 }
 0x268   : > { %v1873_v0 = vadd.f32 %v1872_v61, %v1784_v55 }
 0x269   : > { %v8157_v42 = vmax.f32 %v6892_v21, 0.0 }
 0x26b   : > { %v6908_v34 = vpack.c.bf16 %v8157_v42, %v8158_v48 }
 0x26c   : > { %v1961_v62 = vpop.f32.mrf.mxu2 }
 0x26d   : > { %8330 = vst [vmem:[#allocation41_spill] sm:$0xff] %v6908_v34  ;;  %v1962_v31 = vadd.f32 %v1961_v62, %v1873_v0  ;;  %v2050_v59 = vpop.f32.mrf.mxu3  ;;  %v1785_v60 = vpop.f32.mrf.mxu0 }
 0x26e   : > { %v1874_v50 = vpop.f32.mrf.mxu1  ;;  %v1786_v30 = vadd.f32 %v1785_v60, %v6337_v19 }
 0x26f   : > { %v2051_v47 = vadd.f32 %v2050_v59, %v1962_v31  ;;  %v2125_v31 = vmax.f32 %v6707_v12, 0.0  ;;  %v8356_v12 = vmax.f32 %v6690_v56, 0.0  ;;  %v2174_v56 = vld [vmem:[#allocation3 + $0xc8] sm:$0xff] }
 0x270   : > { %v1875_v16 = vadd.f32 %v1874_v50, %v1786_v30 }
 0x271   : > { %v2122_v28 = vmax.f32 %v2051_v47, 0.0 }
 0x273   : > { %v6928_v20 = vpack.c.bf16 %v2122_v28, %v2121_v36  ;;  %v6932_v19 = vadd.f32 %v2122_v28, %v2121_v36 }
 0x274   : > { %v1963_v5 = vpop.f32.mrf.mxu2 }
 0x275   : > { %8331 = vst [vmem:[#allocation42_spill] sm:$0xff] %v6928_v20  ;;  %v1964_v35 = vadd.f32 %v1963_v5, %v1875_v16  ;;  %v2052_v52 = vpop.f32.mrf.mxu3  ;;  %v1788_v18 = vpop.f32.mrf.mxu0  ;;  %v2155_v16 = vld [vmem:[#allocation3 + $0x30] sm:$0xff] }
 0x276   : > { %v1789_v43 = vadd.f32 %v1788_v18, %v6284_v29  ;;  %v1877_v39 = vpop.f32.mrf.mxu1  ;;  %v2127_v18 = vmax.f32 %v6710_v27, 0.0  ;;  %v2129_v27 = vmax.f32 %v6717_v54, 0.0  ;;  %v2131_v54 = vmax.f32 %v6720_v44, 0.0  ;;  %v8335_v44 = vld [vmem:[#allocation45_spill] sm:$0xff] }
 0x277   : > { %v6941_v41 = vadd.f32 %v2052_v52, %v1964_v35 }
 0x278   : > { %v1878_v24 = vadd.f32 %v1877_v39, %v1789_v43 }
 0x279   : > { %v2124_v14 = vmax.f32 %v6941_v41, 0.0 }
 0x27b   : > { %v6957_v29 = vpack.c.bf16 %v2124_v14, %v2123_v40 }
 0x27c   : > { %v1966_v46 = vpop.f32.mrf.mxu2 }
 0x27d   : > { %8332 = vst [vmem:[#allocation49_spill] sm:$0xff] %v6957_v29  ;;  %v1967_v17 = vadd.f32 %v1966_v46, %v1878_v24  ;;  %v2055_v1 = vpop.f32.mrf.mxu3  ;;  %v1790_v55 = vpop.f32.mrf.mxu0 }
 0x27e   : > { %v1879_v61 = vpop.f32.mrf.mxu1  ;;  %v1791_v62 = vadd.f32 %v1790_v55, %v6290_v49 }
 0x27f   : > { %v6967_v0 = vadd.f32 %v2055_v1, %v1967_v17 }
 0x280   : > { %v1880_v49 = vadd.f32 %v1879_v61, %v1791_v62 }
 0x281   : > { %v2126_v59 = vmax.f32 %v6967_v0, 0.0  ;;  %v8357_v0 = vmax.f32 %v6892_v21, 0.0 }
 0x283   : > { %v6982_v60 = vpack.c.bf16 %v2126_v59, %v2125_v31  ;;  %v2241_v9 = vadd.f32 %v2126_v59, %v2125_v31  ;;  %v2232_v31 = vadd.f32 %v8357_v0, %v8356_v12  ;;  %v2171_v59 = vld [vmem:[#allocation3 + $0xb0] sm:$0xff]  ;;  %v2153_v12 = vld [vmem:[#allocation3 + $0x20] sm:$0xff] }
 0x284   : > { %v1968_v50 = vpop.f32.mrf.mxu2  ;;  %v2149_v0 = vld [vmem:[#allocation3] sm:$0xff] }
 0x285   : > { %8333 = vst [vmem:[#allocation50_spill] sm:$0xff] %v6982_v60  ;;  %v1969_v47 = vadd.f32 %v1968_v50, %v1880_v49  ;;  %v2057_v30 = vpop.f32.mrf.mxu3  ;;  %v1793_v36 = vpop.f32.mrf.mxu0  ;;  %v2156_v49 = vld [vmem:[#allocation3 + $0x38] sm:$0xff] }
 0x286   : > { %v1882_v28 = vpop.f32.mrf.mxu1  ;;  %v1794_v35 = vadd.f32 %v1793_v36, %v6281_v23 }
 0x287   : > { %v2058_v5 = vadd.f32 %v2057_v30, %v1969_v47 }
 0x288   : > { %v2201_v52 = vpop.xlane.xlu1 %2200  ;;  %v1883_v24 = vadd.f32 %v1882_v28, %v1794_v35 }
 0x289   : > { %v2128_v57 = vmax.f32 %v2058_v5, 0.0  ;;  %v2283_v43 = vadd.f32 %v2201_v52, %v2155_v16 }
 0x28b   : > { %v6986_v39 = vpack.c.bf16 %v2128_v57, %v2127_v18  ;;  %2316 = vst.msk [vmem:[#allocation3 + $0x30] sm:$0xff] %vm380_vm0, %v2283_v43  ;;  %v6989_v46 = vadd.f32 %v2128_v57, %v2127_v18 }
 0x28c   : > { %v1971_v17 = vpop.f32.mrf.mxu2 }
 0x28d   : > { %8334 = vst [vmem:[#allocation51_spill] sm:$0xff] %v6986_v39  ;;  %v1972_v1 = vadd.f32 %v1971_v17, %v1883_v24  ;;  %v2060_v55 = vpop.f32.mrf.mxu3  ;;  %v1795_v61 = vpop.f32.mrf.mxu0  ;;  %v2157_v24 = vld [vmem:[#allocation3 + $0x40] sm:$0xff] }
 0x28e   : > { %v1884_v62 = vpop.f32.mrf.mxu1  ;;  %v1796_v23 = vadd.f32 %v1795_v61, %v8250_v8 }
 0x28f   : > { %v2061_v50 = vadd.f32 %v2060_v55, %v1972_v1 }
 0x290   : > { %v2204_v47 = vpop.xlane.xlu2 %2203  ;;  %v1885_v28 = vadd.f32 %v1884_v62, %v1796_v23 }
 0x291   : > { %v2130_v30 = vmax.f32 %v2061_v50, 0.0  ;;  %v2284_v36 = vadd.f32 %v2204_v47, %v2156_v49 }
 0x292   : > { %v2420_v41 = vld [vmem:[#allocation3 + $0x30] sm:$0xff] }
 0x293   : > { %v6993_v16 = vpack.c.bf16 %v2130_v30, %v2129_v27  ;;  %2317 = vst.msk [vmem:[#allocation3 + $0x38] sm:$0xff] %vm380_vm0, %v2284_v36  ;;  %v2247_v5 = vadd.f32 %v2130_v30, %v2129_v27 }
 0x294   : > { %v1973_v35 = vpop.f32.mrf.mxu2 }
 0x295   : > { %v1974_v52 = vadd.f32 %v1973_v35, %v1885_v28  ;;  %v2062_v18 = vpop.f32.mrf.mxu3  ;;  %2248 = vadd.xlane.f32.xlu2 %v2247_v5  ;;  %v1798_v57 = vpop.f32.mrf.mxu0  ;;  %v2158_v28 = vld [vmem:[#allocation3 + $0x48] sm:$0xff] }
 0x296   : > { %v1887_v43 = vpop.f32.mrf.mxu1  ;;  %v1799_v8 = vadd.f32 %v1798_v57, %v8251_v51 }
 0x297   : > { %v2063_v17 = vadd.f32 %v2062_v18, %v1974_v52  ;;  %v2133_v52 = vmax.f32 %v8335_v44, 0.0 }
 0x298   : > { %v2207_v1 = vpop.xlane.xlu0 %2206  ;;  %v1888_v62 = vadd.f32 %v1887_v43, %v1799_v8 }
 0x299   : > { %v2132_v55 = vmax.f32 %v2063_v17, 0.0  ;;  %v2285_v61 = vadd.f32 %v2207_v1, %v2157_v24 }
 0x29b   : > { %v6998_v49 = vpack.c.bf16 %v2132_v55, %v2131_v54  ;;  %2318 = vst.msk [vmem:[#allocation3 + $0x40] sm:$0xff] %vm380_vm0, %v2285_v61  ;;  %v2250_v50 = vadd.f32 %v2132_v55, %v2131_v54 }
 0x29c   : > { %v1976_v23 = vpop.f32.mrf.mxu2 }
 0x29d   : > { %v1977_v47 = vadd.f32 %v1976_v23, %v1888_v62  ;;  %v2065_v27 = vpop.f32.mrf.mxu3  ;;  %2251 = vadd.xlane.f32.xlu0 %v2250_v50  ;;  %v1800_v30 = vpop.f32.mrf.mxu0  ;;  %v2159_v62 = vld [vmem:[#allocation3 + $0x50] sm:$0xff] }
 0x29e   : > { %v1889_v36 = vpop.f32.mrf.mxu1  ;;  %v1801_v51 = vadd.f32 %v1800_v30, %v8256_v4  ;;  %v8336_v4 = vld [vmem:[#allocation35_spill] sm:$0xff] }
 0x29f   : > { %v2066_v5 = vadd.f32 %v2065_v27, %v1977_v47  ;;  %v8337_v27 = vld [vmem:[#allocation46_spill] sm:$0xff] }
 0x2a0   : > { %v2210_v35 = vpop.xlane.xlu1 %2209  ;;  %v1890_v43 = vadd.f32 %v1889_v36, %v1801_v51  ;;  %v2135_v30 = vmax.f32 %v8337_v27, 0.0 }
 0x2a1   : > { %v2134_v18 = vmax.f32 %v2066_v5, 0.0  ;;  %v2286_v57 = vadd.f32 %v2210_v35, %v2158_v28 }
 0x2a3   : > { %v7003_v24 = vpack.c.bf16 %v2134_v18, %v2133_v52  ;;  %2319 = vst.msk [vmem:[#allocation3 + $0x48] sm:$0xff] %vm380_vm0, %v2286_v57  ;;  %v2253_v17 = vadd.f32 %v2134_v18, %v2133_v52 }
 0x2a4   : > { %v1978_v8 = vpop.f32.mrf.mxu2 }
 0x2a5   : > { %v1979_v1 = vadd.f32 %v1978_v8, %v1890_v43  ;;  %v2067_v54 = vpop.f32.mrf.mxu3  ;;  %2254 = vadd.xlane.f32.xlu1 %v2253_v17  ;;  %v1803_v55 = vpop.f32.mrf.mxu0  ;;  %v2160_v17 = vld [vmem:[#allocation3 + $0x58] sm:$0xff] }
 0x2a6   : > { %v1892_v61 = vpop.f32.mrf.mxu1  ;;  %v1804_v23 = vadd.f32 %v1803_v55, %v8336_v4  ;;  %v8340_v4 = vld [vmem:[#allocation18_spill] sm:$0xff] }
 0x2a7   : > { %v2068_v50 = vadd.f32 %v2067_v54, %v1979_v1  ;;  %v8339_v1 = vld [vmem:[#allocation36_spill] sm:$0xff] }
 0x2a8   : > { %v2213_v47 = vpop.xlane.xlu2 %2212  ;;  %v1893_v36 = vadd.f32 %v1892_v61, %v1804_v23 }
 0x2a9   : > { %v2136_v28 = vmax.f32 %v2068_v50, 0.0  ;;  %v2287_v5 = vadd.f32 %v2213_v47, %v2159_v62  ;;  %v2137_v50 = vmax.f32 %v8340_v4, 0.0  ;;  %v8343_v4 = vld [vmem:[#allocation19_spill] sm:$0xff] }
 0x2ab   : > { %v7008_v35 = vpack.c.bf16 %v2136_v28, %v2135_v30  ;;  %2320 = vst.msk [vmem:[#allocation3 + $0x50] sm:$0xff] %vm380_vm0, %v2287_v5  ;;  %v2256_v51 = vadd.f32 %v2136_v28, %v2135_v30 }
 0x2ac   : > { %v1981_v44 = vpop.f32.mrf.mxu2 }
 0x2ad   : > { %8338 = vst [vmem:[#allocation52_spill] sm:$0xff] %v7008_v35  ;;  %v1982_v52 = vadd.f32 %v1981_v44, %v1893_v36  ;;  %v2070_v18 = vpop.f32.mrf.mxu3  ;;  %2257 = vadd.xlane.f32.xlu2 %v2256_v51  ;;  %v1805_v57 = vpop.f32.mrf.mxu0  ;;  %v2161_v44 = vld [vmem:[#allocation3 + $0x60] sm:$0xff] }
 0x2ae   : > { %v1894_v43 = vpop.f32.mrf.mxu1  ;;  %v1806_v54 = vadd.f32 %v1805_v57, %v8339_v1 }
 0x2af   : > { %v2071_v8 = vadd.f32 %v2070_v18, %v1982_v52  ;;  %v8342_v18 = vld [vmem:[#allocation34_spill] sm:$0xff] }
 0x2b0   : > { %v2216_v55 = vpop.xlane.xlu0 %2215  ;;  %v1895_v61 = vadd.f32 %v1894_v43, %v1806_v54 }
 0x2b1   : > { %v2138_v62 = vmax.f32 %v2071_v8, 0.0  ;;  %v2288_v47 = vadd.f32 %v2216_v55, %v2160_v17  ;;  %v2139_v8 = vmax.f32 %v8343_v4, 0.0  ;;  %v8346_v4 = vld [vmem:[#allocation20_spill] sm:$0xff] }
 0x2b3   : > { %v7013_v27 = vpack.c.bf16 %v2138_v62, %v2137_v50  ;;  %2321 = vst.msk [vmem:[#allocation3 + $0x58] sm:$0xff] %vm380_vm0, %v2288_v47  ;;  %v2259_v23 = vadd.f32 %v2138_v62, %v2137_v50 }
 0x2b4   : > { %v1983_v30 = vpop.f32.mrf.mxu2 }
 0x2b5   : > { %8341 = vst [vmem:[#allocation61_spill] sm:$0xff] %v7013_v27  ;;  %v1984_v28 = vadd.f32 %v1983_v30, %v1895_v61  ;;  %v2072_v5 = vpop.f32.mrf.mxu3  ;;  %2260 = vadd.xlane.f32.xlu0 %v2259_v23  ;;  %v1808_v36 = vpop.f32.mrf.mxu0  ;;  %v2162_v30 = vld [vmem:[#allocation3 + $0x68] sm:$0xff]  ;;  %v8379_v27 = vunpack.c.h.bf16 %v6860_v22 }
 0x2b6   : > { %v1897_v51 = vpop.f32.mrf.mxu1  ;;  %v1809_v57 = vadd.f32 %v1808_v36, %v8342_v18 }
 0x2b7   : > { %v2073_v52 = vadd.f32 %v2072_v5, %v1984_v28  ;;  %v8345_v5 = vld [vmem:[#allocation26_spill] sm:$0xff] }
 0x2b8   : > { %v2219_v1 = vpop.xlane.xlu1 %2218  ;;  %v1898_v43 = vadd.f32 %v1897_v51, %v1809_v57 }
 0x2b9   : > { %v2140_v17 = vmax.f32 %v2073_v52, 0.0  ;;  %v2289_v55 = vadd.f32 %v2219_v1, %v2161_v44  ;;  %v2141_v52 = vmax.f32 %v8346_v4, 0.0 }
 0x2bb   : > { %v7018_v42 = vpack.c.bf16 %v2140_v17, %v2139_v8  ;;  %2322 = vst.msk [vmem:[#allocation3 + $0x60] sm:$0xff] %vm380_vm0, %v2289_v55  ;;  %v2262_v54 = vadd.f32 %v2140_v17, %v2139_v8 }
 0x2bc   : > { %v1986_v50 = vpop.f32.mrf.mxu2 }
 0x2bd   : > { %8344 = vst [vmem:[#allocation54_spill] sm:$0xff] %v7018_v42  ;;  %v1987_v62 = vadd.f32 %v1986_v50, %v1898_v43  ;;  %v2075_v47 = vpop.f32.mrf.mxu3  ;;  %2263 = vadd.xlane.f32.xlu1 %v2262_v54  ;;  %v1810_v61 = vpop.f32.mrf.mxu0  ;;  %v2163_v54 = vld [vmem:[#allocation3 + $0x70] sm:$0xff] }
 0x2be   : > { %v1899_v23 = vpop.f32.mrf.mxu1  ;;  %v1811_v36 = vadd.f32 %v1810_v61, %v8345_v5 }
 0x2bf   : > { %v2076_v28 = vadd.f32 %v2075_v47, %v1987_v62  ;;  %v8348_v62 = vld [vmem:[#allocation28_spill] sm:$0xff] }
 0x2c0   : > { %v2222_v18 = vpop.xlane.xlu2 %2221  ;;  %v1900_v51 = vadd.f32 %v1899_v23, %v1811_v36 }
 0x2c1   : > { %v2142_v44 = vmax.f32 %v2076_v28, 0.0  ;;  %v2290_v1 = vadd.f32 %v2222_v18, %v2162_v30  ;;  %v8349_v30 = vld [vmem:[#allocation21_spill] sm:$0xff] }
 0x2c2   : > { %v2143_v5 = vmax.f32 %v8349_v30, 0.0 }
 0x2c3   : > { %v7023_v48 = vpack.c.bf16 %v2142_v44, %v2141_v52  ;;  %2323 = vst.msk [vmem:[#allocation3 + $0x68] sm:$0xff] %vm380_vm0, %v2290_v1  ;;  %v2265_v57 = vadd.f32 %v2142_v44, %v2141_v52 }
 0x2c4   : > { %v1988_v8 = vpop.f32.mrf.mxu2 }
 0x2c5   : > { %8347 = vst [vmem:[#allocation55_spill] sm:$0xff] %v7023_v48  ;;  %v1989_v17 = vadd.f32 %v1988_v8, %v1900_v51  ;;  %v2077_v55 = vpop.f32.mrf.mxu3  ;;  %2266 = vadd.xlane.f32.xlu2 %v2265_v57  ;;  %2245 = vadd.xlane.f32.xlu1 %v6989_v46  ;;  %v1813_v43 = vpop.f32.mrf.mxu0  ;;  %v2164_v57 = vld [vmem:[#allocation3 + $0x78] sm:$0xff] }
 0x2c6   : > { %v1814_v47 = vadd.f32 %v1813_v43, %v8348_v62  ;;  %v1902_v61 = vpop.f32.mrf.mxu1 }
 0x2c7   : > { %v2078_v50 = vadd.f32 %v2077_v55, %v1989_v17  ;;  %v8351_v17 = vld [vmem:[#allocation27_spill] sm:$0xff] }
 0x2c8   : > { %v2225_v28 = vpop.xlane.xlu1 %2224  ;;  %v1903_v4 = vadd.f32 %v1902_v61, %v1814_v47 }
 0x2c9   : > { %v2144_v18 = vmax.f32 %v2078_v50, 0.0  ;;  %v2291_v23 = vadd.f32 %v2225_v28, %v2163_v54  ;;  %v8352_v50 = vld [vmem:[#allocation44_spill] sm:$0xff] }
 0x2ca   : > { %v2145_v54 = vmax.f32 %v8352_v50, 0.0 }
 0x2cb   : > { %v7029_v36 = vpack.c.bf16 %v2144_v18, %v2143_v5  ;;  %2324 = vst.msk [vmem:[#allocation3 + $0x70] sm:$0xff] %vm380_vm0, %v2291_v23  ;;  %v2268_v52 = vadd.f32 %v2144_v18, %v2143_v5 }
 0x2cc   : > { %v1991_v44 = vpop.f32.mrf.mxu2 }
 0x2cd   : > { %8350 = vst [vmem:[#allocation56_spill] sm:$0xff] %v7029_v36  ;;  %v1992_v1 = vadd.f32 %v1991_v44, %v1903_v4  ;;  %v2080_v46 = vpop.f32.mrf.mxu3  ;;  %2269 = vadd.xlane.f32.xlu0 %v2268_v52  ;;  %2191 = vadd.xlane.f32.xlu1 %v6796_v26  ;;  %v1815_v51 = vpop.f32.mrf.mxu0  ;;  %v8354_v52 = vld [vmem:[#allocation22_spill] sm:$0xff] }
 0x2ce   : > { %v1816_v55 = vadd.f32 %v1815_v51, %v8351_v17  ;;  %v1904_v47 = vpop.f32.mrf.mxu1  ;;  %v2147_v44 = vmax.f32 %v8354_v52, 0.0  ;;  %v2172_v52 = vld [vmem:[#allocation3 + $0xb8] sm:$0xff] }
 0x2cf   : > { %v2081_v8 = vadd.f32 %v2080_v46, %v1992_v1 }
 0x2d0   : > { %v2228_v43 = vpop.xlane.xlu2 %2227  ;;  %v1905_v30 = vadd.f32 %v1904_v47, %v1816_v55  ;;  %v2427_v55 = vld [vmem:[#allocation3 + $0x68] sm:$0xff]  ;;  %v2424_v47 = vld [vmem:[#allocation3 + $0x50] sm:$0xff] }
 0x2d1   : > { %v2146_v62 = vmax.f32 %v2081_v8, 0.0  ;;  %v2292_v28 = vadd.f32 %v2228_v43, %v2164_v57  ;;  %v2459_v50 = vmul.f32 0.00390625, %v2427_v55 }
 0x2d2   : > { %v2428_v17 = vld [vmem:[#allocation3 + $0x70] sm:$0xff] }
 0x2d3   : > { %v7035_v61 = vpack.c.bf16 %v2146_v62, %v2145_v54  ;;  %2325 = vst.msk [vmem:[#allocation3 + $0x78] sm:$0xff] %vm380_vm0, %v2292_v28  ;;  %v2271_v5 = vadd.f32 %v2146_v62, %v2145_v54  ;;  %v2460_v43 = vmul.f32 0.00390625, %v2428_v17  ;;  %v2425_v54 = vld [vmem:[#allocation3 + $0x58] sm:$0xff]  ;;  %v2238_v28 = vadd.f32 %v2124_v14, %v2123_v40 }
 0x2d4   : > { %v1993_v18 = vpop.f32.mrf.mxu2  ;;  %v2229_v14 = vadd.f32 %v2118_v15, %v2117_v37 }
 0x2d5   : > { %8353 = vst [vmem:[#allocation57_spill] sm:$0xff] %v7035_v61  ;;  %v1994_v23 = vadd.f32 %v1993_v18, %v1905_v30  ;;  %2272 = vadd.xlane.f32.xlu2 %v2271_v5  ;;  %2236 = vadd.xlane.f32.xlu1 %v6932_v19  ;;  %v2082_v26 = vpop.f32.mrf.mxu3  ;;  %v2426_v19 = vld [vmem:[#allocation3 + $0x60] sm:$0xff]  ;;  %v2457_v30 = vmul.f32 0.00390625, %v2425_v54 }
 0x2d6   : > { %v2458_v62 = vmul.f32 0.00390625, %v2426_v19  ;;  %v2422_v5 = vld [vmem:[#allocation3 + $0x40] sm:$0xff]  ;;  %v2170_v19 = vld [vmem:[#allocation3 + $0xa8] sm:$0xff] }
 0x2d7   : > { %v2083_v4 = vadd.f32 %v2082_v26, %v1994_v23  ;;  %v2421_v23 = vld [vmem:[#allocation3 + $0x38] sm:$0xff]  ;;  %v2454_v26 = vmul.f32 0.00390625, %v2422_v5 }
 0x2d8   : > { %v2453_v40 = vmul.f32 0.00390625, %v2421_v23  ;;  %v2179_v23 = vld [vmem:[#allocation3 + $0xf0] sm:$0xff] }
 0x2d9   : > { %v2148_v1 = vmax.f32 %v2083_v4, 0.0 }
 0x2da   : > { %v2429_v46 = vld [vmem:[#allocation3 + $0x78] sm:$0xff] }
 0x2db   : > { %v7040_v51 = vpack.c.bf16 %v2148_v1, %v2147_v44  ;;  %v2274_v57 = vadd.f32 %v2148_v1, %v2147_v44  ;;  %v2461_v8 = vmul.f32 0.00390625, %v2429_v46  ;;  %v2175_v1 = vld [vmem:[#allocation3 + $0xd0] sm:$0xff] }
 0x2dd   : > { %8355 = vst [vmem:[#allocation58_spill] sm:$0xff] %v7040_v51  ;;  %2275 = vadd.xlane.f32.xlu0 %v2274_v57  ;;  %2194 = vadd.xlane.f32.xlu2 %v6802_v11  ;;  %v2456_v11 = vmul.f32 0.00390625, %v2424_v47  ;;  %v2178_v47 = vld [vmem:[#allocation3 + $0xe8] sm:$0xff] }
 0x2de   : > { %2182 = vadd.xlane.f32.xlu1 %v6770_v25  ;;  %2542 = vmatpush.msra.mxu0 %v2461_v8  ;;  %v2423_v25 = vld [vmem:[#allocation3 + $0x48] sm:$0xff]  ;;  %v2176_v8 = vld [vmem:[#allocation3 + $0xd8] sm:$0xff] }
 0x2df   : > { %v2455_v18 = vmul.f32 0.00390625, %v2423_v25 }
 0x2e0   : > { %2543 = vmatpush.msra.mxu0 %v2460_v43  ;;  %v2177_v43 = vld [vmem:[#allocation3 + $0xe0] sm:$0xff] }
 0x2e2   : > { %2544 = vmatpush.msra.mxu0 %v2459_v50 }
 0x2e4   : > { %2545 = vmatpush.msra.mxu0 %v2458_v62 }
 0x2e5   : > { %2197 = vadd.xlane.f32.xlu0 %v6812_v33  ;;  %2239 = vadd.xlane.f32.xlu2 %v2238_v28  ;;  %v2452_v33 = vmul.f32 0.00390625, %v2420_v41 }
 0x2e6   : > { %2546 = vmatpush.msra.mxu0 %v2457_v30  ;;  %v2152_v30 = vld [vmem:[#allocation3 + $0x18] sm:$0xff] }
 0x2e8   : > { %2547 = vmatpush.msra.mxu0 %v2456_v11 }
 0x2ea   : > { %2548 = vmatpush.msra.mxu0 %v2455_v18 }
 0x2ec   : > { %2549 = vmatpush.msra.mxu0 %v2454_v26  ;;  %v2167_v26 = vld [vmem:[#allocation3 + $0x90] sm:$0xff] }
 0x2ed   : > { %2242 = vadd.xlane.f32.xlu0 %v2241_v9  ;;  %2185 = vadd.xlane.f32.xlu2 %v6778_v45 }
 0x2ee   : > { %2550 = vmatpush.msra.mxu0 %v2453_v40 }
 0x2f0   : > { %2551 = vmatpush.msra.mxu0 %v2452_v33 }
 0x2f5   : > { %2188 = vadd.xlane.f32.xlu0 %v6786_v13  ;;  %2230 = vadd.xlane.f32.xlu2 %v2229_v14  ;;  %v2180_v14 = vld [vmem:[#allocation3 + $0xf8] sm:$0xff] }
 0x2fd   : > { %2233 = vadd.xlane.f32.xlu0 %v2232_v31 }
 0x308   : > { %v2249_v4 = vpop.xlane.xlu2 %2248 }
 0x309   : > { %v2299_v45 = vadd.f32 %v2249_v4, %v2171_v59 }
 0x30b   : > { %2332 = vst.msk [vmem:[#allocation3 + $0xb0] sm:$0xff] %vm380_vm0, %v2299_v45 }
 0x310   : > { %v2252_v44 = vpop.xlane.xlu0 %2251 }
 0x311   : > { %v2300_v63 = vadd.f32 %v2252_v44, %v2172_v52 }
 0x313   : > { %2333 = vst.msk [vmem:[#allocation3 + $0xb8] sm:$0xff] %vm380_vm0, %v2300_v63  ;;  %v2154_v63 = vld [vmem:[#allocation3 + $0x28] sm:$0xff] }
 0x318   : > { %v2255_v37 = vpop.xlane.xlu1 %2254 }
 0x319   : > { %v2301_v13 = vadd.f32 %v2255_v37, %v2173_v3  ;;  %v2168_v3 = vld [vmem:[#allocation3 + $0x98] sm:$0xff] }
 0x31b   : > { %2334 = vst.msk [vmem:[#allocation3 + $0xc0] sm:$0xff] %vm380_vm0, %v2301_v13 }
 0x320   : > { %v2258_v15 = vpop.xlane.xlu2 %2257 }
 0x321   : > { %v2302_v21 = vadd.f32 %v2258_v15, %v2174_v56 }
 0x323   : > { %2335 = vst.msk [vmem:[#allocation3 + $0xc8] sm:$0xff] %vm380_vm0, %v2302_v21 }
 0x328   : > { %v2261_v46 = vpop.xlane.xlu0 %2260 }
 0x329   : > { %v2303_v57 = vadd.f32 %v2261_v46, %v2175_v1 }
 0x32b   : > { %2336 = vst.msk [vmem:[#allocation3 + $0xd0] sm:$0xff] %vm380_vm0, %v2303_v57 }
 0x330   : > { %v2264_v17 = vpop.xlane.xlu1 %2263 }
 0x331   : > { %v2304_v55 = vadd.f32 %v2264_v17, %v2176_v8  ;;  %v2169_v17 = vld [vmem:[#allocation3 + $0xa0] sm:$0xff] }
 0x333   : > { %2337 = vst.msk [vmem:[#allocation3 + $0xd8] sm:$0xff] %vm380_vm0, %v2304_v55  ;;  %v2150_v55 = vld [vmem:[#allocation3 + $0x8] sm:$0xff] }
 0x338   : > { %v2267_v50 = vpop.xlane.xlu2 %2266  ;;  %v2246_v54 = vpop.xlane.xlu1 %2245 }
 0x339   : > { %v2305_v62 = vadd.f32 %v2267_v50, %v2177_v43  ;;  %v2298_v28 = vadd.f32 %v2246_v54, %v2170_v19 }
 0x33b   : > { %2338 = vst.msk [vmem:[#allocation3 + $0xe0] sm:$0xff] %vm380_vm0, %v2305_v62  ;;  %v2441_v62 = vld [vmem:[#allocation3 + $0xd8] sm:$0xff] }
 0x33c   : > { %2331 = vst.msk [vmem:[#allocation3 + $0xa8] sm:$0xff] %vm380_vm0, %v2298_v28 }
 0x340   : > { %v2270_v25 = vpop.xlane.xlu0 %2269  ;;  %v2192_v11 = vpop.xlane.xlu1 %2191 }
 0x341   : > { %v2306_v5 = vadd.f32 %v2270_v25, %v2178_v47  ;;  %v2280_v18 = vadd.f32 %v2192_v11, %v2152_v30 }
 0x342   : > { %v2442_v43 = vld [vmem:[#allocation3 + $0xe0] sm:$0xff] }
 0x343   : > { %2339 = vst.msk [vmem:[#allocation3 + $0xe8] sm:$0xff] %vm380_vm0, %v2306_v5  ;;  %v2474_v30 = vmul.f32 0.00390625, %v2442_v43  ;;  %v2440_v5 = vld [vmem:[#allocation3 + $0xd0] sm:$0xff] }
 0x344   : > { %2313 = vst.msk [vmem:[#allocation3 + $0x18] sm:$0xff] %vm380_vm0, %v2280_v18 }
 0x348   : > { %v2273_v9 = vpop.xlane.xlu2 %2272  ;;  %v2237_v41 = vpop.xlane.xlu1 %2236 }
 0x349   : > { %v2307_v40 = vadd.f32 %v2273_v9, %v2179_v23  ;;  %v2295_v33 = vadd.f32 %v2237_v41, %v2167_v26  ;;  %v2473_v23 = vmul.f32 0.00390625, %v2441_v62  ;;  %v2439_v9 = vld [vmem:[#allocation3 + $0xc8] sm:$0xff] }
 0x34a   : > { %v2443_v57 = vld [vmem:[#allocation3 + $0xe8] sm:$0xff] }
 0x34b   : > { %2340 = vst.msk [vmem:[#allocation3 + $0xf0] sm:$0xff] %vm380_vm0, %v2307_v40  ;;  %v2475_v19 = vmul.f32 0.00390625, %v2443_v57  ;;  %v2417_v26 = vld [vmem:[#allocation3 + $0x18] sm:$0xff]  ;;  %v2472_v40 = vmul.f32 0.00390625, %v2440_v5 }
 0x34c   : > { %2328 = vst.msk [vmem:[#allocation3 + $0x90] sm:$0xff] %vm380_vm0, %v2295_v33  ;;  %v2151_v33 = vld [vmem:[#allocation3 + $0x10] sm:$0xff] }
 0x350   : > { %v2276_v31 = vpop.xlane.xlu0 %2275  ;;  %v2195_v59 = vpop.xlane.xlu2 %2194 }
 0x351   : > { %v2308_v4 = vadd.f32 %v2276_v31, %v2180_v14  ;;  %v2281_v45 = vadd.f32 %v2195_v59, %v2153_v12  ;;  %v2183_v52 = vpop.xlane.xlu1 %2182  ;;  %v2165_v14 = vld [vmem:[#allocation3 + $0x80] sm:$0xff]  ;;  %v2471_v31 = vmul.f32 0.00390625, %v2439_v9  ;;  %v2480_v9 = vld [vmem:[#allocation7 + $0x10] sm:$0xff] }
 0x352   : > { %v2277_v44 = vadd.f32 %v2183_v52, %v2149_v0  ;;  %v2444_v1 = vld [vmem:[#allocation3 + $0xf0] sm:$0xff]  ;;  %v2438_v12 = vld [vmem:[#allocation3 + $0xc0] sm:$0xff]  ;;  %v2449_v0 = vmul.f32 0.00390625, %v2417_v26  ;;  %v2479_v26 = vld [vmem:[#allocation7 + $0x8] sm:$0xff] }
 0x353   : > { %2341 = vst.msk [vmem:[#allocation3 + $0xf8] sm:$0xff] %vm380_vm0, %v2308_v4  ;;  %v2476_v8 = vmul.f32 0.00390625, %v2444_v1 }
 0x354   : > { %2314 = vst.msk [vmem:[#allocation3 + $0x20] sm:$0xff] %vm380_vm0, %v2281_v45  ;;  %v2437_v45 = vld [vmem:[#allocation3 + $0xb8] sm:$0xff] }
 0x355   : > { %2310 = vst.msk [vmem:[#allocation3] sm:$0xff] %vm380_vm0, %v2277_v44 }
 0x358   : > { %v2198_v37 = vpop.xlane.xlu0 %2197  ;;  %v2240_v13 = vpop.xlane.xlu2 %2239 }
 0x359   : > { %v2282_v56 = vadd.f32 %v2198_v37, %v2154_v63  ;;  %v2296_v15 = vadd.f32 %v2240_v13, %v2168_v3  ;;  %v2470_v63 = vmul.f32 0.00390625, %v2438_v12  ;;  %v2436_v3 = vld [vmem:[#allocation3 + $0xb0] sm:$0xff]  ;;  %v2469_v37 = vmul.f32 0.00390625, %v2437_v45  ;;  %v2435_v13 = vld [vmem:[#allocation3 + $0xa8] sm:$0xff]  ;;  %v2485_v12 = vld [vmem:[#allocation7 + $0x38] sm:$0xff] }
 0x35a   : > { %v2445_v21 = vld [vmem:[#allocation3 + $0xf8] sm:$0xff]  ;;  %v2467_v1 = vmul.f32 0.00390625, %v2435_v13  ;;  %v2490_v45 = vld [vmem:[#allocation7 + $0x60] sm:$0xff]  ;;  %v2496_v13 = vld [vmem:[#allocation7 + $0x90] sm:$0xff] }
 0x35b   : > { %2315 = vst.msk [vmem:[#allocation3 + $0x28] sm:$0xff] %vm380_vm0, %v2282_v56  ;;  %v2477_v46 = vmul.f32 0.00390625, %v2445_v21  ;;  %v2418_v11 = vld [vmem:[#allocation3 + $0x20] sm:$0xff]  ;;  %v2468_v56 = vmul.f32 0.00390625, %v2436_v3 }
 0x35c   : > { %2329 = vst.msk [vmem:[#allocation3 + $0x98] sm:$0xff] %vm380_vm0, %v2296_v15  ;;  %v2450_v41 = vmul.f32 0.00390625, %v2418_v11  ;;  %v2166_v15 = vld [vmem:[#allocation3 + $0x88] sm:$0xff]  ;;  %v2414_v62 = vld [vmem:[#allocation3] sm:$0xff] }
 0x35d   : > { %2655 = vmatpush.msra.mxu1 %v2477_v46  ;;  %v2494_v3 = vld [vmem:[#allocation7 + $0x80] sm:$0xff] }
 0x35f   : > { %2656 = vmatpush.msra.mxu1 %v2476_v8 }
 0x360   : > { %v2243_v50 = vpop.xlane.xlu0 %2242  ;;  %v2186_v54 = vpop.xlane.xlu2 %2185 }
 0x361   : > { %v2297_v28 = vadd.f32 %v2243_v50, %v2169_v17  ;;  %v2278_v47 = vadd.f32 %v2186_v54, %v2150_v55  ;;  %2657 = vmatpush.msra.mxu1 %v2475_v19  ;;  %v2432_v19 = vld [vmem:[#allocation3 + $0x90] sm:$0xff] }
 0x362   : > { %v2419_v25 = vld [vmem:[#allocation3 + $0x28] sm:$0xff] }
 0x363   : > { %2330 = vst.msk [vmem:[#allocation3 + $0xa0] sm:$0xff] %vm380_vm0, %v2297_v28  ;;  %2658 = vmatpush.msra.mxu1 %v2474_v30  ;;  %v2451_v18 = vmul.f32 0.00390625, %v2419_v25  ;;  %v2433_v57 = vld [vmem:[#allocation3 + $0x98] sm:$0xff]  ;;  %v2446_v30 = vmul.f32 0.00390625, %v2414_v62  ;;  %v2478_v25 = vld [vmem:[#allocation7] sm:$0xff] }
 0x364   : > { %2311 = vst.msk [vmem:[#allocation3 + $0x8] sm:$0xff] %vm380_vm0, %v2278_v47  ;;  %v2465_v54 = vmul.f32 0.00390625, %v2433_v57  ;;  %v2464_v47 = vmul.f32 0.00390625, %v2432_v19  ;;  %v2502_v57 = vld [vmem:[#allocation7 + $0xc0] sm:$0xff]  ;;  %v2507_v19 = vld [vmem:[#allocation7 + $0xe8] sm:$0xff] }
 0x365   : > { %2552 = vmatpush.msra.mxu0 %v2451_v18  ;;  %2659 = vmatpush.msra.mxu1 %v2473_v23 }
 0x367   : > { %2553 = vmatpush.msra.mxu0 %v2450_v41  ;;  %2660 = vmatpush.msra.mxu1 %v2472_v40  ;;  %v2481_v41 = vld [vmem:[#allocation7 + $0x18] sm:$0xff]  ;;  %v2482_v40 = vld [vmem:[#allocation7 + $0x20] sm:$0xff] }
 0x368   : > { %v2189_v59 = vpop.xlane.xlu0 %2188  ;;  %v2231_v4 = vpop.xlane.xlu2 %2230 }
 0x369   : > { %v2279_v52 = vadd.f32 %v2189_v59, %v2151_v33  ;;  %v2293_v44 = vadd.f32 %v2231_v4, %v2165_v14  ;;  %2554 = vmatpush.msra.mxu0 %v2449_v0  ;;  %2661 = vmatpush.msra.mxu1 %v2471_v31  ;;  %v2483_v33 = vld [vmem:[#allocation7 + $0x28] sm:$0xff]  ;;  %v2484_v14 = vld [vmem:[#allocation7 + $0x30] sm:$0xff]  ;;  %v2486_v0 = vld [vmem:[#allocation7 + $0x40] sm:$0xff] }
 0x36a   : > { %v2434_v21 = vld [vmem:[#allocation3 + $0xa0] sm:$0xff]  ;;  %v2487_v31 = vld [vmem:[#allocation7 + $0x48] sm:$0xff]  ;;  %v2488_v59 = vld [vmem:[#allocation7 + $0x50] sm:$0xff] }
 0x36b   : > { %2312 = vst.msk [vmem:[#allocation3 + $0x10] sm:$0xff] %vm380_vm0, %v2279_v52  ;;  %2662 = vmatpush.msra.mxu1 %v2470_v63  ;;  %v2466_v17 = vmul.f32 0.00390625, %v2434_v21  ;;  %v2415_v43 = vld [vmem:[#allocation3 + $0x8] sm:$0xff]  ;;  %v2489_v4 = vld [vmem:[#allocation7 + $0x58] sm:$0xff] }
 0x36c   : > { %2326 = vst.msk [vmem:[#allocation3 + $0x80] sm:$0xff] %vm380_vm0, %v2293_v44  ;;  %v2447_v28 = vmul.f32 0.00390625, %v2415_v43  ;;  %v2491_v52 = vld [vmem:[#allocation7 + $0x68] sm:$0xff]  ;;  %v2492_v44 = vld [vmem:[#allocation7 + $0x70] sm:$0xff]  ;;  %v2493_v63 = vld [vmem:[#allocation7 + $0x78] sm:$0xff] }
 0x36d   : > { %2663 = vmatpush.msra.mxu1 %v2469_v37  ;;  %v2495_v37 = vld [vmem:[#allocation7 + $0x88] sm:$0xff]  ;;  %v2506_v43 = vld [vmem:[#allocation7 + $0xe0] sm:$0xff] }
 0x36e   : > { %v2499_v21 = vld [vmem:[#allocation7 + $0xa8] sm:$0xff] }
 0x36f   : > { %2664 = vmatpush.msra.mxu1 %v2468_v56  ;;  %v2497_v56 = vld [vmem:[#allocation7 + $0x98] sm:$0xff] }
 0x370   : > { %v2234_v46 = vpop.xlane.xlu0 %2233 }
 0x371   : > { %v2294_v8 = vadd.f32 %v2234_v46, %v2166_v15  ;;  %2665 = vmatpush.msra.mxu1 %v2467_v1  ;;  %v2498_v15 = vld [vmem:[#allocation7 + $0xa0] sm:$0xff]  ;;  %v2500_v1 = vld [vmem:[#allocation7 + $0xb0] sm:$0xff]  ;;  %v2501_v46 = vld [vmem:[#allocation7 + $0xb8] sm:$0xff] }
 0x372   : > { %v2416_v55 = vld [vmem:[#allocation3 + $0x10] sm:$0xff] }
 0x373   : > { %2327 = vst.msk [vmem:[#allocation3 + $0x88] sm:$0xff] %vm380_vm0, %v2294_v8  ;;  %2666 = vmatpush.msra.mxu1 %v2466_v17  ;;  %v2448_v50 = vmul.f32 0.00390625, %v2416_v55  ;;  %v2430_v5 = vld [vmem:[#allocation3 + $0x80] sm:$0xff]  ;;  %v2503_v8 = vld [vmem:[#allocation7 + $0xc8] sm:$0xff]  ;;  %v2504_v17 = vld [vmem:[#allocation7 + $0xd0] sm:$0xff] }
 0x374   : > { %v2462_v23 = vmul.f32 0.00390625, %v2430_v5  ;;  %v2505_v55 = vld [vmem:[#allocation7 + $0xd8] sm:$0xff] }
 0x375   : > { %2555 = vmatpush.msra.mxu0 %v2448_v50  ;;  %2667 = vmatpush.msra.mxu1 %v2465_v54  ;;  %v2508_v50 = vld [vmem:[#allocation7 + $0xf0] sm:$0xff]  ;;  %v2509_v54 = vld [vmem:[#allocation7 + $0xf8] sm:$0xff] }
 0x377   : > { %2556 = vmatpush.msra.mxu0 %v2447_v28  ;;  %2668 = vmatpush.msra.mxu1 %v2464_v47  ;;  %v2510_v28 = vld [vmem:[#allocation7 + $0x100] sm:$0xff] }
 0x379   : > { %2557 = vmatpush.msra.mxu0 %v2446_v30  ;;  %v2511_v30 = vld [vmem:[#allocation7 + $0x108] sm:$0xff] }
 0x37a   : > { %v2431_v11 = vld [vmem:[#allocation3 + $0x88] sm:$0xff]  ;;  %2558 = vmatmul.f32.vlgmr.msra.gmra.mxu0 %v2478_v25 }
 0x37b   : > { %v2463_v18 = vmul.f32 0.00390625, %v2431_v11  ;;  %v2512_v11 = vld [vmem:[#allocation7 + $0x110] sm:$0xff] }
 0x37d   : > { %2669 = vmatpush.msra.mxu1 %v2463_v18  ;;  %v2513_v18 = vld [vmem:[#allocation7 + $0x118] sm:$0xff] }
 0x37f   : > { %2670 = vmatpush.msra.mxu1 %v2462_v23 }
 0x380   : > { %2671 = vmatmul.f32.vlgmr.msra.gmra.mxu1 %v2479_v26  ;;  %v2514_v26 = vld [vmem:[#allocation7 + $0x120] sm:$0xff] }
 0x382   : > { %2561 = vmatmul.f32.gmra.mxu0 %v2480_v9 }
 0x388   : > { %2674 = vmatmul.f32.gmra.mxu1 %v2481_v41  ;;  %v2515_v41 = vld [vmem:[#allocation7 + $0x128] sm:$0xff] }
 0x38a   : > { %2564 = vmatmul.f32.gmra.mxu0 %v2482_v40 }
 0x390   : > { %2677 = vmatmul.f32.gmra.mxu1 %v2483_v33  ;;  %v2516_v33 = vld [vmem:[#allocation7 + $0x130] sm:$0xff] }
 0x392   : > { %2567 = vmatmul.f32.gmra.mxu0 %v2484_v14 }
 0x398   : > { %2680 = vmatmul.f32.gmra.mxu1 %v2485_v12  ;;  %v2517_v12 = vld [vmem:[#allocation7 + $0x138] sm:$0xff] }
 0x39a   : > { %2570 = vmatmul.f32.gmra.mxu0 %v2486_v0 }
 0x3a0   : > { %2683 = vmatmul.f32.gmra.mxu1 %v2487_v31  ;;  %v2518_v31 = vld [vmem:[#allocation7 + $0x140] sm:$0xff] }
 0x3a2   : > { %2573 = vmatmul.f32.gmra.mxu0 %v2488_v59 }
 0x3a8   : > { %2686 = vmatmul.f32.gmra.mxu1 %v2489_v4  ;;  %v2519_v4 = vld [vmem:[#allocation7 + $0x148] sm:$0xff] }
 0x3aa   : > { %2576 = vmatmul.f32.gmra.mxu0 %v2490_v45 }
 0x3b0   : > { %2689 = vmatmul.f32.gmra.mxu1 %v2491_v52  ;;  %v2520_v52 = vld [vmem:[#allocation7 + $0x150] sm:$0xff] }
 0x3b2   : > { %2579 = vmatmul.f32.gmra.mxu0 %v2492_v44 }
 0x3b8   : > { %2692 = vmatmul.f32.gmra.mxu1 %v2493_v63  ;;  %v2521_v63 = vld [vmem:[#allocation7 + $0x158] sm:$0xff] }
 0x3ba   : > { %2582 = vmatmul.f32.gmra.mxu0 %v2494_v3 }
 0x3c0   : > { %2695 = vmatmul.f32.gmra.mxu1 %v2495_v37  ;;  %v2522_v37 = vld [vmem:[#allocation7 + $0x160] sm:$0xff] }
 0x3c2   : > { %2585 = vmatmul.f32.gmra.mxu0 %v2496_v13 }
 0x3c8   : > { %2698 = vmatmul.f32.gmra.mxu1 %v2497_v56  ;;  %v2523_v56 = vld [vmem:[#allocation7 + $0x168] sm:$0xff] }
 0x3ca   : > { %2588 = vmatmul.f32.gmra.mxu0 %v2498_v15 }
 0x3d0   : > { %2701 = vmatmul.f32.gmra.mxu1 %v2499_v21  ;;  %v2524_v21 = vld [vmem:[#allocation7 + $0x170] sm:$0xff] }
 0x3d2   : > { %2591 = vmatmul.f32.gmra.mxu0 %v2500_v1 }
 0x3d8   : > { %2704 = vmatmul.f32.gmra.mxu1 %v2501_v46  ;;  %v2525_v46 = vld [vmem:[#allocation7 + $0x178] sm:$0xff] }
 0x3da   : > { %2594 = vmatmul.f32.gmra.mxu0 %v2502_v57 }
 0x3e0   : > { %2707 = vmatmul.f32.gmra.mxu1 %v2503_v8  ;;  %v2526_v8 = vld [vmem:[#allocation7 + $0x180] sm:$0xff] }
 0x3e2   : > { %2597 = vmatmul.f32.gmra.mxu0 %v2504_v17 }
 0x3e8   : > { %2710 = vmatmul.f32.gmra.mxu1 %v2505_v55  ;;  %v2527_v55 = vld [vmem:[#allocation7 + $0x188] sm:$0xff] }
 0x3ea   : > { %2600 = vmatmul.f32.gmra.mxu0 %v2506_v43 }
 0x3f0   : > { %2713 = vmatmul.f32.gmra.mxu1 %v2507_v19 }
 0x3f2   : > { %2603 = vmatmul.f32.gmra.mxu0 %v2508_v50  ;;  %v2528_v50 = vld [vmem:[#allocation7 + $0x190] sm:$0xff] }
 0x3f7   : > { %v7085_v62 = vpop.f32.mrf.mxu0 }
 0x3f8   : > { %2716 = vmatmul.f32.gmra.mxu1 %v2509_v54 }
 0x3fa   : > { %2606 = vmatmul.f32.gmra.mxu0 %v2510_v28  ;;  %v2529_v28 = vld [vmem:[#allocation7 + $0x198] sm:$0xff] }
 0x3fd   : > { %v7087_v47 = vpop.f32.mrf.mxu1 }
 0x3ff   : > { %v7089_v25 = vpop.f32.mrf.mxu0 }
 0x400   : > { %2719 = vmatmul.f32.gmra.mxu1 %v2511_v30 }
 0x402   : > { %2609 = vmatmul.f32.gmra.mxu0 %v2512_v11  ;;  %v2530_v11 = vld [vmem:[#allocation7 + $0x1a0] sm:$0xff] }
 0x405   : > { %v7091_v5 = vpop.f32.mrf.mxu1 }
 0x407   : > { %v7093_v23 = vpop.f32.mrf.mxu0 }
 0x408   : > { %2722 = vmatmul.f32.gmra.mxu1 %v2513_v18 }
 0x40a   : > { %2612 = vmatmul.f32.gmra.mxu0 %v2514_v26  ;;  %v2531_v26 = vld [vmem:[#allocation7 + $0x1a8] sm:$0xff] }
 0x40d   : > { %v7095_v9 = vpop.f32.mrf.mxu1 }
 0x40f   : > { %v7097_v40 = vpop.f32.mrf.mxu0 }
 0x410   : > { %2725 = vmatmul.f32.gmra.mxu1 %v2515_v41 }
 0x412   : > { %2615 = vmatmul.f32.gmra.mxu0 %v2516_v33  ;;  %v2532_v33 = vld [vmem:[#allocation7 + $0x1b0] sm:$0xff] }
 0x415   : > { %v7099_v14 = vpop.f32.mrf.mxu1 }
 0x417   : > { %v7101_v0 = vpop.f32.mrf.mxu0 }
 0x418   : > { %2728 = vmatmul.f32.gmra.mxu1 %v2517_v12 }
 0x41a   : > { %2618 = vmatmul.f32.gmra.mxu0 %v2518_v31  ;;  %v2533_v31 = vld [vmem:[#allocation7 + $0x1b8] sm:$0xff] }
 0x41d   : > { %v7103_v59 = vpop.f32.mrf.mxu1 }
 0x41f   : > { %v7105_v45 = vpop.f32.mrf.mxu0 }
 0x420   : > { %2731 = vmatmul.f32.gmra.mxu1 %v2519_v4 }
 0x422   : > { %2621 = vmatmul.f32.gmra.mxu0 %v2520_v52  ;;  %v2534_v52 = vld [vmem:[#allocation7 + $0x1c0] sm:$0xff] }
 0x425   : > { %v7107_v44 = vpop.f32.mrf.mxu1 }
 0x427   : > { %v7109_v3 = vpop.f32.mrf.mxu0 }
 0x428   : > { %2734 = vmatmul.f32.gmra.mxu1 %v2521_v63 }
 0x42a   : > { %2624 = vmatmul.f32.gmra.mxu0 %v2522_v37  ;;  %v2535_v37 = vld [vmem:[#allocation7 + $0x1c8] sm:$0xff] }
 0x42d   : > { %v7111_v13 = vpop.f32.mrf.mxu1 }
 0x42f   : > { %v7113_v15 = vpop.f32.mrf.mxu0 }
 0x430   : > { %2737 = vmatmul.f32.gmra.mxu1 %v2523_v56 }
 0x432   : > { %2627 = vmatmul.f32.gmra.mxu0 %v2524_v21  ;;  %v2536_v21 = vld [vmem:[#allocation7 + $0x1d0] sm:$0xff] }
 0x435   : > { %v7115_v1 = vpop.f32.mrf.mxu1 }
 0x437   : > { %v2583_v57 = vpop.f32.mrf.mxu0 }
 0x438   : > { %2740 = vmatmul.f32.gmra.mxu1 %v2525_v46 }
 0x43a   : > { %2630 = vmatmul.f32.gmra.mxu0 %v2526_v8 }
 0x43d   : > { %v2696_v17 = vpop.f32.mrf.mxu1 }
 0x43e   : > { %v7117_v43 = vadd.f32 %v2696_v17, %v2583_v57  ;;  %v2537_v57 = vld [vmem:[#allocation7 + $0x1d8] sm:$0xff]  ;;  %v2538_v17 = vld [vmem:[#allocation7 + $0x1e0] sm:$0xff] }
 0x43f   : > { %v2586_v19 = vpop.f32.mrf.mxu0 }
 0x440   : > { %2743 = vmatmul.f32.gmra.mxu1 %v2527_v55 }
 0x442   : > { %2633 = vmatmul.f32.gmra.mxu0 %v2528_v50  ;;  %v2539_v50 = vld [vmem:[#allocation7 + $0x1e8] sm:$0xff] }
 0x445   : > { %v2699_v54 = vpop.f32.mrf.mxu1 }
 0x447   : > { %v2589_v30 = vpop.f32.mrf.mxu0 }
 0x448   : > { %2746 = vmatmul.f32.gmra.mxu1 %v2529_v28 }
 0x44a   : > { %2636 = vmatmul.f32.gmra.mxu0 %v2530_v11  ;;  %v2540_v11 = vld [vmem:[#allocation7 + $0x1f0] sm:$0xff] }
 0x44d   : > { %v2702_v18 = vpop.f32.mrf.mxu1 }
 0x44e   : > { %v2703_v60 = vadd.f32 %v2702_v18, %v2589_v30 }
 0x44f   : > { %v2592_v41 = vpop.f32.mrf.mxu0 }
 0x450   : > { %2749 = vmatmul.f32.gmra.mxu1 %v2531_v26 }
 0x452   : > { %2639 = vmatmul.f32.gmra.mxu0 %v2532_v33  ;;  %v2541_v33 = vld [vmem:[#allocation7 + $0x1f8] sm:$0xff] }
 0x455   : > { %v2705_v12 = vpop.f32.mrf.mxu1 }
 0x456   : > { %v2706_v34 = vadd.f32 %v2705_v12, %v2592_v41 }
 0x457   : > { %v2595_v4 = vpop.f32.mrf.mxu0 }
 0x458   : > { %2752 = vmatmul.f32.gmra.mxu1 %v2533_v31 }
 0x45a   : > { %2642 = vmatmul.f32.gmra.mxu0 %v2534_v52 }
 0x45d   : > { %v2708_v63 = vpop.f32.mrf.mxu1 }
 0x45f   : > { %v2598_v56 = vpop.f32.mrf.mxu0 }
 0x460   : > { %2755 = vmatmul.f32.gmra.mxu1 %v2535_v37 }
 0x462   : > { %2645 = vmatmul.f32.gmra.mxu0 %v2536_v21  ;;  %v2709_v21 = vadd.f32 %v2708_v63, %v2595_v4  ;;  %v2694_v4 = vadd.f32 %v7115_v1, %v7113_v15  ;;  %v2682_v1 = vadd.f32 %v7099_v14, %v7097_v40 }
 0x464   : > { %v2780_v58 = vmax.f32 %v2709_v21, 0.0 }
 0x465   : > { %v2711_v46 = vpop.f32.mrf.mxu1 }
 0x466   : > { %v2712_v29 = vadd.f32 %v2711_v46, %v2598_v56 }
 0x467   : > { %v2601_v8 = vpop.f32.mrf.mxu0 }
 0x468   : > { %2758 = vmatmul.f32.gmra.mxu1 %v2537_v57  ;;  %v2781_v57 = vmax.f32 %v2712_v29, 0.0  ;;  %v2691_v29 = vadd.f32 %v7111_v13, %v7109_v3 }
 0x46a   : > { %2648 = vmatmul.f32.gmra.mxu0 %v2538_v17  ;;  %v2774_v15 = vmax.f32 %v2691_v29, 0.0 }
 0x46d   : > { %v2714_v55 = vpop.f32.mrf.mxu1 }
 0x46e   : > { %v2715_v31 = vadd.f32 %v2714_v55, %v2601_v8  ;;  %v2779_v8 = vmax.f32 %v2706_v34, 0.0  ;;  %v2778_v55 = vmax.f32 %v2703_v60, 0.0  ;;  %v2775_v34 = vmax.f32 %v2694_v4, 0.0 }
 0x46f   : > { %v2604_v28 = vpop.f32.mrf.mxu0  ;;  %v2685_v60 = vadd.f32 %v7103_v59, %v7101_v0  ;;  %v2771_v0 = vmax.f32 %v2682_v1, 0.0  ;;  %v2673_v59 = vadd.f32 %v7087_v47, %v7085_v62 }
 0x470   : > { %2761 = vmatmul.f32.gmra.mxu1 %v2539_v50  ;;  %v2782_v39 = vmax.f32 %v2715_v31, 0.0 }
 0x471   : > { %v2768_v12 = vmax.f32 %v2673_v59, 0.0  ;;  %v2802_v59 = vld [vmem:[#allocation9 + $0x10] sm:$0xff] }
 0x472   : > { %2651 = vmatmul.f32.gmra.mxu0 %v2540_v11  ;;  %v2700_v11 = vadd.f32 %v2699_v54, %v2586_v19  ;;  %v2772_v19 = vmax.f32 %v2685_v60, 0.0 }
 0x474   : > { %v2777_v63 = vmax.f32 %v2700_v11, 0.0 }
 0x475   : > { %v2717_v26 = vpop.f32.mrf.mxu1 }
 0x476   : > { %v2718_v52 = vadd.f32 %v2717_v26, %v2604_v28 }
 0x477   : > { %v2607_v20 = vpop.f32.mrf.mxu0 }
 0x478   : > { %v2783_v37 = vmax.f32 %v2718_v52, 0.0  ;;  %2764 = vmatmul.f32.gmra.mxu1 %v2541_v33 }
 0x47a   : > { %2896 = vmatpush.msra.mxu2 %v2783_v37 }
 0x47c   : > { %2897 = vmatpush.msra.mxu2 %v2782_v39  ;;  %v2776_v39 = vmax.f32 %v7117_v43, 0.0  ;;  %v2679_v43 = vadd.f32 %v7095_v9, %v7093_v23 }
 0x47d   : > { %v2720_v17 = vpop.f32.mrf.mxu1 }
 0x47e   : > { %v7119_v51 = vadd.f32 %v2720_v17, %v2607_v20  ;;  %2898 = vmatpush.msra.mxu2 %v2781_v57  ;;  %v2770_v40 = vmax.f32 %v2679_v43, 0.0 }
 0x47f   : > { %v2610_v50 = vpop.f32.mrf.mxu0 }
 0x480   : > { %2899 = vmatpush.msra.mxu2 %v2780_v58  ;;  %v2688_v58 = vadd.f32 %v7107_v44, %v7105_v45  ;;  %v2676_v44 = vadd.f32 %v7091_v5, %v7089_v25 }
 0x482   : > { %2900 = vmatpush.msra.mxu2 %v2779_v8  ;;  %v2773_v3 = vmax.f32 %v2688_v58, 0.0  ;;  %v2769_v14 = vmax.f32 %v2676_v44, 0.0 }
 0x484   : > { %2901 = vmatpush.msra.mxu2 %v2778_v55 }
 0x485   : > { %v2723_v41 = vpop.f32.mrf.mxu1 }
 0x486   : > { %v7126_v20 = vadd.f32 %v2723_v41, %v2610_v50  ;;  %2902 = vmatpush.msra.mxu2 %v2777_v63 }
 0x487   : > { %v2613_v30 = vpop.f32.mrf.mxu0 }
 0x488   : > { %2903 = vmatpush.msra.mxu2 %v2776_v39 }
 0x48a   : > { %2904 = vmatpush.msra.mxu2 %v2775_v34 }
 0x48c   : > { %2905 = vmatpush.msra.mxu2 %v2774_v15 }
 0x48d   : > { %v2726_v13 = vpop.f32.mrf.mxu1 }
 0x48e   : > { %v7136_v54 = vadd.f32 %v2726_v13, %v2613_v30  ;;  %2906 = vmatpush.msra.mxu2 %v2773_v3  ;;  %v2800_v3 = vld [vmem:[#allocation9] sm:$0xff] }
 0x48f   : > { %v2616_v45 = vpop.f32.mrf.mxu0 }
 0x490   : > { %2907 = vmatpush.msra.mxu2 %v2772_v19 }
 0x492   : > { %2908 = vmatpush.msra.mxu2 %v2771_v0 }
 0x494   : > { %2909 = vmatpush.msra.mxu2 %v2770_v40 }
 0x495   : > { %v2729_v18 = vpop.f32.mrf.mxu1 }
 0x496   : > { %v7142_v23 = vadd.f32 %v2729_v18, %v2616_v45  ;;  %2910 = vmatpush.msra.mxu2 %v2769_v14 }
 0x497   : > { %v2619_v9 = vpop.f32.mrf.mxu0 }
 0x498   : > { %2911 = vmatpush.msra.mxu2 %v2768_v12 }
 0x499   : > { %2912 = vmatmul.f32.vlgmr.msra.gmra.mxu2 %v2800_v3  ;;  %v2830_v3 = vld [vmem:[#allocation9 + $0xf0] sm:$0xff] }
 0x49d   : > { %v2732_v56 = vpop.f32.mrf.mxu1 }
 0x49e   : > { %v7144_v46 = vadd.f32 %v2732_v56, %v2619_v9 }
 0x49f   : > { %v2622_v25 = vpop.f32.mrf.mxu0 }
 0x4a1   : > { %2915 = vmatmul.f32.gmra.mxu2 %v2802_v59 }
 0x4a5   : > { %v2735_v5 = vpop.f32.mrf.mxu1 }
 0x4a6   : > { %v2736_v28 = vadd.f32 %v2735_v5, %v2622_v25  ;;  %v2804_v25 = vld [vmem:[#allocation9 + $0x20] sm:$0xff] }
 0x4a7   : > { %v2625_v26 = vpop.f32.mrf.mxu0 }
 0x4a9   : > { %2918 = vmatmul.f32.gmra.mxu2 %v2804_v25  ;;  %v2833_v25 = vld [vmem:[#allocation9 + $0x108] sm:$0xff] }
 0x4ad   : > { %v2738_v33 = vpop.f32.mrf.mxu1 }
 0x4ae   : > { %v2739_v62 = vadd.f32 %v2738_v33, %v2625_v26 }
 0x4af   : > { %v2628_v47 = vpop.f32.mrf.mxu0 }
 0x4b0   : > { %v2790_v33 = vmax.f32 %v2739_v62, 0.0  ;;  %v2784_v62 = vmax.f32 %v7119_v51, 0.0  ;;  %v2818_v51 = vld [vmem:[#allocation9 + $0x90] sm:$0xff] }
 0x4b5   : > { %v2741_v31 = vpop.f32.mrf.mxu1 }
 0x4b6   : > { %v2742_v52 = vadd.f32 %v2741_v31, %v2628_v47  ;;  %v2789_v47 = vmax.f32 %v2736_v28, 0.0  ;;  %v2806_v31 = vld [vmem:[#allocation9 + $0x30] sm:$0xff]  ;;  %v2801_v28 = vld [vmem:[#allocation9 + $0x8] sm:$0xff] }
 0x4b7   : > { %v2631_v37 = vpop.f32.mrf.mxu0  ;;  %2921 = vmatmul.f32.gmra.mxu2 %v2806_v31 }
 0x4b8   : > { %v2791_v26 = vmax.f32 %v2742_v52, 0.0  ;;  %v2808_v52 = vld [vmem:[#allocation9 + $0x40] sm:$0xff] }
 0x4bd   : > { %v2744_v21 = vpop.f32.mrf.mxu1 }
 0x4be   : > { %v2745_v57 = vadd.f32 %v2744_v21, %v2631_v37  ;;  %v2788_v37 = vmax.f32 %v7144_v46, 0.0  ;;  %v2787_v21 = vmax.f32 %v7142_v23, 0.0  ;;  %v2810_v46 = vld [vmem:[#allocation9 + $0x50] sm:$0xff]  ;;  %v2812_v23 = vld [vmem:[#allocation9 + $0x60] sm:$0xff] }
 0x4bf   : > { %v2634_v17 = vpop.f32.mrf.mxu0  ;;  %2924 = vmatmul.f32.gmra.mxu2 %v2808_v52 }
 0x4c0   : > { %v2792_v5 = vmax.f32 %v2745_v57, 0.0  ;;  %v2785_v57 = vmax.f32 %v7126_v20, 0.0  ;;  %v2816_v20 = vld [vmem:[#allocation9 + $0x80] sm:$0xff] }
 0x4c5   : > { %v2747_v50 = vpop.f32.mrf.mxu1 }
 0x4c6   : > { %v2748_v18 = vadd.f32 %v2747_v50, %v2634_v17  ;;  %v2786_v17 = vmax.f32 %v7136_v54, 0.0  ;;  %v2803_v50 = vld [vmem:[#allocation9 + $0x18] sm:$0xff]  ;;  %v2814_v54 = vld [vmem:[#allocation9 + $0x70] sm:$0xff] }
 0x4c7   : > { %v2637_v11 = vpop.f32.mrf.mxu0  ;;  %2927 = vmatmul.f32.gmra.mxu2 %v2810_v46 }
 0x4c8   : > { %v2793_v56 = vmax.f32 %v2748_v18, 0.0 }
 0x4cd   : > { %v2750_v8 = vpop.f32.mrf.mxu1 }
 0x4ce   : > { %v2751_v40 = vadd.f32 %v2750_v8, %v2637_v11  ;;  %v2805_v11 = vld [vmem:[#allocation9 + $0x28] sm:$0xff]  ;;  %v2807_v8 = vld [vmem:[#allocation9 + $0x38] sm:$0xff] }
 0x4cf   : > { %v2640_v55 = vpop.f32.mrf.mxu0  ;;  %2930 = vmatmul.f32.gmra.mxu2 %v2812_v23  ;;  %v2866_v23 = vld [vmem:[%s8085_s5 + $0x10] sm:$0xff] }
 0x4d0   : > { %v2794_v9 = vmax.f32 %v2751_v40, 0.0  ;;  %v2829_v40 = vld [vmem:[#allocation9 + $0xe8] sm:$0xff] }
 0x4d5   : > { %v2753_v4 = vpop.f32.mrf.mxu1 }
 0x4d6   : > { %v2754_v44 = vadd.f32 %v2753_v4, %v2640_v55  ;;  %v2809_v55 = vld [vmem:[#allocation9 + $0x48] sm:$0xff]  ;;  %v2811_v4 = vld [vmem:[#allocation9 + $0x58] sm:$0xff] }
 0x4d7   : > { %v2643_v63 = vpop.f32.mrf.mxu0  ;;  %2933 = vmatmul.f32.gmra.mxu2 %v2814_v54 }
 0x4d8   : > { %v2795_v12 = vmax.f32 %v2754_v44, 0.0  ;;  %v2827_v44 = vld [vmem:[#allocation9 + $0xd8] sm:$0xff] }
 0x4dd   : > { %v2756_v41 = vpop.f32.mrf.mxu1 }
 0x4de   : > { %v2757_v19 = vadd.f32 %v2756_v41, %v2643_v63  ;;  %v2820_v63 = vld [vmem:[#allocation9 + $0xa0] sm:$0xff]  ;;  %v2813_v41 = vld [vmem:[#allocation9 + $0x68] sm:$0xff] }
 0x4df   : > { %v2646_v29 = vpop.f32.mrf.mxu0  ;;  %2936 = vmatmul.f32.gmra.mxu2 %v2816_v20 }
 0x4e0   : > { %v2796_v14 = vmax.f32 %v2757_v19, 0.0  ;;  %v2825_v19 = vld [vmem:[#allocation9 + $0xc8] sm:$0xff] }
 0x4e5   : > { %v2759_v39 = vpop.f32.mrf.mxu1 }
 0x4e6   : > { %v2760_v13 = vadd.f32 %v2759_v39, %v2646_v29  ;;  %v2822_v29 = vld [vmem:[#allocation9 + $0xb0] sm:$0xff]  ;;  %v2815_v39 = vld [vmem:[#allocation9 + $0x78] sm:$0xff] }
 0x4e7   : > { %v2649_v30 = vpop.f32.mrf.mxu0  ;;  %2939 = vmatmul.f32.gmra.mxu2 %v2818_v51  ;;  %v2839_v51 = vld [vmem:[#allocation9 + $0x138] sm:$0xff] }
 0x4e8   : > { %v2797_v0 = vmax.f32 %v2760_v13, 0.0  ;;  %v2823_v13 = vld [vmem:[#allocation9 + $0xb8] sm:$0xff] }
 0x4ed   : > { %v2762_v58 = vpop.f32.mrf.mxu1 }
 0x4ee   : > { %v2763_v15 = vadd.f32 %v2762_v58, %v2649_v30  ;;  %v2824_v30 = vld [vmem:[#allocation9 + $0xc0] sm:$0xff]  ;;  %v2817_v58 = vld [vmem:[#allocation9 + $0x88] sm:$0xff] }
 0x4ef   : > { %v2652_v34 = vpop.f32.mrf.mxu0  ;;  %2942 = vmatmul.f32.gmra.mxu2 %v2820_v63  ;;  %v2846_v63 = vld [vmem:[#allocation9 + $0x170] sm:$0xff] }
 0x4f0   : > { %v2798_v45 = vmax.f32 %v2763_v15, 0.0  ;;  %v2828_v15 = vld [vmem:[#allocation9 + $0xe0] sm:$0xff] }
 0x4f5   : > { %v2765_v60 = vpop.f32.mrf.mxu1 }
 0x4f6   : > { %v2766_v1 = vadd.f32 %v2765_v60, %v2652_v34  ;;  %v2826_v34 = vld [vmem:[#allocation9 + $0xd0] sm:$0xff]  ;;  %v2819_v60 = vld [vmem:[#allocation9 + $0x98] sm:$0xff] }
 0x4f7   : > { %2945 = vmatmul.f32.gmra.mxu2 %v2822_v29 }
 0x4f8   : > { %v2799_v43 = vmax.f32 %v2766_v1, 0.0  ;;  %v2821_v1 = vld [vmem:[#allocation9 + $0xa8] sm:$0xff] }
 0x4fa   : > { %3009 = vmatpush.msra.mxu3 %v2799_v43  ;;  %v2832_v43 = vld [vmem:[#allocation9 + $0x100] sm:$0xff] }
 0x4fc   : > { %3010 = vmatpush.msra.mxu3 %v2798_v45 }
 0x4fe   : > { %3011 = vmatpush.msra.mxu3 %v2797_v0  ;;  %v2834_v0 = vld [vmem:[#allocation9 + $0x110] sm:$0xff] }
 0x4ff   : > { %2948 = vmatmul.f32.gmra.mxu2 %v2824_v30 }
 0x500   : > { %3012 = vmatpush.msra.mxu3 %v2796_v14  ;;  %v2836_v14 = vld [vmem:[#allocation9 + $0x120] sm:$0xff] }
 0x502   : > { %3013 = vmatpush.msra.mxu3 %v2795_v12  ;;  %v2831_v12 = vld [vmem:[#allocation9 + $0xf8] sm:$0xff] }
 0x504   : > { %3014 = vmatpush.msra.mxu3 %v2794_v9  ;;  %v2838_v9 = vld [vmem:[#allocation9 + $0x130] sm:$0xff] }
 0x506   : > { %3015 = vmatpush.msra.mxu3 %v2793_v56 }
 0x507   : > { %2951 = vmatmul.f32.gmra.mxu2 %v2826_v34  ;;  %v2868_v34 = vld [vmem:[%s8085_s5 + $0x20] sm:$0xff] }
 0x508   : > { %3016 = vmatpush.msra.mxu3 %v2792_v5  ;;  %v2864_v5 = vld [vmem:[%s8085_s5] sm:$0xff] }
 0x50a   : > { %3017 = vmatpush.msra.mxu3 %v2791_v26  ;;  %v2840_v26 = vld [vmem:[#allocation9 + $0x140] sm:$0xff] }
 0x50c   : > { %3018 = vmatpush.msra.mxu3 %v2790_v33 }
 0x50e   : > { %3019 = vmatpush.msra.mxu3 %v2789_v47 }
 0x50f   : > { %2954 = vmatmul.f32.gmra.mxu2 %v2828_v15 }
 0x510   : > { %3020 = vmatpush.msra.mxu3 %v2788_v37 }
 0x512   : > { %3021 = vmatpush.msra.mxu3 %v2787_v21  ;;  %v2835_v21 = vld [vmem:[#allocation9 + $0x118] sm:$0xff] }
 0x514   : > { %3022 = vmatpush.msra.mxu3 %v2786_v17  ;;  %v2865_v17 = vld [vmem:[%s8085_s5 + $0x8] sm:$0xff] }
 0x516   : > { %3023 = vmatpush.msra.mxu3 %v2785_v57  ;;  %v2842_v57 = vld [vmem:[#allocation9 + $0x150] sm:$0xff] }
 0x517   : > { %2957 = vmatmul.f32.gmra.mxu2 %v2830_v3 }
 0x518   : > { %3024 = vmatpush.msra.mxu3 %v2784_v62 }
 0x519   : > { %3025 = vmatmul.f32.vlgmr.msra.gmra.mxu3 %v2801_v28 }
 0x51c   : > { %v2913_v45 = vpop.f32.mrf.mxu2 }
 0x51d   : > { %v2914_v33 = vadd.f32 %v2913_v45, %v2864_v5  ;;  %v2850_v45 = vld [vmem:[#allocation9 + $0x190] sm:$0xff] }
 0x51f   : > { %2960 = vmatmul.f32.gmra.mxu2 %v2832_v43  ;;  %v2843_v43 = vld [vmem:[#allocation9 + $0x158] sm:$0xff] }
 0x521   : > { %3028 = vmatmul.f32.gmra.mxu3 %v2803_v50  ;;  %v2837_v50 = vld [vmem:[#allocation9 + $0x128] sm:$0xff] }
 0x524   : > { %v2916_v59 = vpop.f32.mrf.mxu2 }
 0x525   : > { %v2917_v52 = vadd.f32 %v2916_v59, %v2865_v17 }
 0x527   : > { %2963 = vmatmul.f32.gmra.mxu2 %v2834_v0 }
 0x529   : > { %3031 = vmatmul.f32.gmra.mxu3 %v2805_v11  ;;  %v2844_v11 = vld [vmem:[#allocation9 + $0x160] sm:$0xff] }
 0x52c   : > { %v2919_v18 = vpop.f32.mrf.mxu2 }
 0x52d   : > { %v2920_v54 = vadd.f32 %v2919_v18, %v2866_v23  ;;  %v2870_v18 = vld [vmem:[%s8085_s5 + $0x30] sm:$0xff] }
 0x52f   : > { %2966 = vmatmul.f32.gmra.mxu2 %v2836_v14  ;;  %v2845_v14 = vld [vmem:[#allocation9 + $0x168] sm:$0xff] }
 0x531   : > { %3034 = vmatmul.f32.gmra.mxu3 %v2807_v8 }
 0x537   : > { %2969 = vmatmul.f32.gmra.mxu2 %v2838_v9 }
 0x539   : > { %3037 = vmatmul.f32.gmra.mxu3 %v2809_v55 }
 0x53a   : > { %v2922_v56 = vpop.f32.mrf.mxu2 }
 0x53f   : > { %2972 = vmatmul.f32.gmra.mxu2 %v2840_v26  ;;  %v2847_v26 = vld [vmem:[#allocation9 + $0x178] sm:$0xff] }
 0x541   : > { %3040 = vmatmul.f32.gmra.mxu3 %v2811_v4  ;;  %v2867_v4 = vld [vmem:[%s8085_s5 + $0x18] sm:$0xff] }
 0x542   : > { %v2925_v31 = vpop.f32.mrf.mxu2 }
 0x543   : > { %v2926_v15 = vadd.f32 %v2925_v31, %v2868_v34  ;;  %v2854_v31 = vld [vmem:[#allocation9 + $0x1b0] sm:$0xff] }
 0x547   : > { %2975 = vmatmul.f32.gmra.mxu2 %v2842_v57 }
 0x549   : > { %3043 = vmatmul.f32.gmra.mxu3 %v2813_v41  ;;  %v2923_v41 = vadd.f32 %v2922_v56, %v2867_v4 }
 0x54a   : > { %v2928_v28 = vpop.f32.mrf.mxu2 }
 0x54f   : > { %2978 = vmatmul.f32.gmra.mxu2 %v2844_v11 }
 0x551   : > { %3046 = vmatmul.f32.gmra.mxu3 %v2815_v39 }
 0x552   : > { %v2931_v20 = vpop.f32.mrf.mxu2 }
 0x553   : > { %v2932_v9 = vadd.f32 %v2931_v20, %v2870_v18 }
 0x557   : > { %2981 = vmatmul.f32.gmra.mxu2 %v2846_v63  ;;  %v2851_v63 = vld [vmem:[#allocation9 + $0x198] sm:$0xff] }
 0x559   : > { %3049 = vmatmul.f32.gmra.mxu3 %v2817_v58  ;;  %v2841_v58 = vld [vmem:[#allocation9 + $0x148] sm:$0xff] }
 0x55a   : > { %v2934_v39 = vpop.f32.mrf.mxu2 }
 0x561   : > { %3052 = vmatmul.f32.gmra.mxu3 %v2819_v60  ;;  %v2848_v60 = vld [vmem:[#allocation9 + $0x180] sm:$0xff] }
 0x562   : > { %2984 = vmatmul.f32.gmra.mxu2 %v2848_v60  ;;  %v2937_v3 = vpop.f32.mrf.mxu2  ;;  %v2858_v60 = vld [vmem:[#allocation9 + $0x1d0] sm:$0xff] }
 0x569   : > { %3055 = vmatmul.f32.gmra.mxu3 %v2821_v1 }
 0x56a   : > { %2987 = vmatmul.f32.gmra.mxu2 %v2850_v45  ;;  %v2940_v59 = vpop.f32.mrf.mxu2 }
 0x571   : > { %3058 = vmatmul.f32.gmra.mxu3 %v2823_v13 }
 0x579   : > { %3061 = vmatmul.f32.gmra.mxu3 %v2825_v19  ;;  %v2869_v19 = vld [vmem:[%s8085_s5 + $0x28] sm:$0xff] }
 0x581   : > { %3064 = vmatmul.f32.gmra.mxu3 %v2827_v44  ;;  %v2929_v44 = vadd.f32 %v2928_v28, %v2869_v19  ;;  %v2872_v28 = vld [vmem:[%s8085_s5 + $0x40] sm:$0xff] }
 0x589   : > { %3067 = vmatmul.f32.gmra.mxu3 %v2829_v40 }
 0x591   : > { %3070 = vmatmul.f32.gmra.mxu3 %v2831_v12  ;;  %v2852_v12 = vld [vmem:[#allocation9 + $0x1a0] sm:$0xff] }
 0x592   : > { %2990 = vmatmul.f32.gmra.mxu2 %v2852_v12  ;;  %v2853_v12 = vld [vmem:[#allocation9 + $0x1a8] sm:$0xff] }
 0x599   : > { %3073 = vmatmul.f32.gmra.mxu3 %v2833_v25  ;;  %v2943_v25 = vpop.f32.mrf.mxu2 }
 0x59a   : > { %2993 = vmatmul.f32.gmra.mxu2 %v2854_v31  ;;  %v2860_v31 = vld [vmem:[#allocation9 + $0x1e0] sm:$0xff] }
 0x59c   : > { %v3026_v47 = vpop.f32.mrf.mxu3 }
 0x59d   : > { %v7154_v37 = vadd.f32 %v3026_v47, %v2914_v33  ;;  %v2871_v33 = vld [vmem:[%s8085_s5 + $0x38] sm:$0xff] }
 0x5a1   : > { %3076 = vmatmul.f32.gmra.mxu3 %v2835_v21  ;;  %v2935_v21 = vadd.f32 %v2934_v39, %v2871_v33  ;;  %v7187_v57 = vpop.f32.mrf.mxu2 }
 0x5a4   : > { %v3029_v62 = vpop.f32.mrf.mxu3 }
 0x5a5   : > { %v7159_v46 = vadd.f32 %v3029_v62, %v2917_v52  ;;  %v2849_v62 = vld [vmem:[#allocation9 + $0x188] sm:$0xff] }
 0x5a9   : > { %3079 = vmatmul.f32.gmra.mxu3 %v2837_v50 }
 0x5ac   : > { %v3032_v8 = vpop.f32.mrf.mxu3 }
 0x5ad   : > { %v7164_v55 = vadd.f32 %v3032_v8, %v2920_v54  ;;  %v2856_v54 = vld [vmem:[#allocation9 + $0x1c0] sm:$0xff]  ;;  %v2938_v8 = vadd.f32 %v2937_v3, %v2872_v28 }
 0x5ae   : > { %2996 = vmatmul.f32.gmra.mxu2 %v2856_v54 }
 0x5b1   : > { %3082 = vmatmul.f32.gmra.mxu3 %v2839_v51  ;;  %v7192_v51 = vpop.f32.mrf.mxu2 }
 0x5b4   : > { %v3035_v29 = vpop.f32.mrf.mxu3 }
 0x5b5   : > { %v7169_v30 = vadd.f32 %v3035_v29, %v2923_v41  ;;  %v2873_v41 = vld [vmem:[%s8085_s5 + $0x48] sm:$0xff] }
 0x5b6   : > { %2999 = vmatmul.f32.gmra.mxu2 %v2858_v60 }
 0x5b9   : > { %3085 = vmatmul.f32.gmra.mxu3 %v2841_v58  ;;  %v7200_v45 = vpop.f32.mrf.mxu2 }
 0x5bc   : > { %v3038_v1 = vpop.f32.mrf.mxu3 }
 0x5bd   : > { %v7174_v13 = vadd.f32 %v3038_v1, %v2926_v15  ;;  %v2941_v15 = vadd.f32 %v2940_v59, %v2873_v41 }
 0x5be   : > { %3002 = vmatmul.f32.gmra.mxu2 %v2860_v31 }
 0x5c1   : > { %3088 = vmatmul.f32.gmra.mxu3 %v2843_v43 }
 0x5c4   : > { %v3041_v0 = vpop.f32.mrf.mxu3 }
 0x5c5   : > { %v7179_v40 = vadd.f32 %v3041_v0, %v2929_v44  ;;  %v2874_v0 = vld [vmem:[%s8085_s5 + $0x50] sm:$0xff] }
 0x5c6   : > { %v2944_v33 = vadd.f32 %v2943_v25, %v2874_v0 }
 0x5c9   : > { %3091 = vmatmul.f32.gmra.mxu3 %v2845_v14 }
 0x5cc   : > { %v3044_v56 = vpop.f32.mrf.mxu3 }
 0x5cd   : > { %v3045_v5 = vadd.f32 %v3044_v56, %v2932_v9 }
 0x5cf   : > { %v5025_v47 = vmul.f32 -1.442695, %v3045_v5 }
 0x5d1   : > { %5279 = vpow2.f32 %v5025_v47  ;;  %3094 = vmatmul.f32.gmra.mxu3 %v2847_v26 }
 0x5d4   : > { %v3047_v17 = vpop.f32.mrf.mxu3 }
 0x5d5   : > { %v3048_v52 = vadd.f32 %v3047_v17, %v2935_v21 }
 0x5d7   : > { %v5280_v50 = vpop.eup %5279  ;;  %v5026_v23 = vmul.f32 -1.442695, %v3048_v52 }
 0x5d8   : > { %v3224_v11 = vadd.f32 1.0, %v5280_v50 }
 0x5d9   : > { %5281 = vpow2.f32 %v5026_v23  ;;  %3097 = vmatmul.f32.gmra.mxu3 %v2849_v62 }
 0x5da   : > { %5283 = vrcp.f32 %v3224_v11  ;;  %v3351_v19 = vand.u32 2147483648, %v3224_v11  ;;  %v3349_v18 = vand.u32 2147483647, %v3224_v11  ;;  %vm3345_vm2 = vweird.f32 %v3224_v11 }
 0x5dc   : > { %v3050_v20 = vpop.f32.mrf.mxu3  ;;  %v3352_v47 = vor.u32 1.1754944e-38, %v3351_v19  ;;  %vm3350_vm4 = vcmp.eq.f32.partialorder %v3349_v18, 8.507059e+37 }
 0x5dd   : > { %v3051_v4 = vadd.f32 %v3050_v20, %v2938_v8  ;;  %v2875_v20 = vld [vmem:[%s8085_s5 + $0x58] sm:$0xff] }
 0x5df   : > { %v5282_v29 = vpop.eup %5281  ;;  %v5027_v39 = vmul.f32 -1.442695, %v3051_v4 }
 0x5e0   : > { %v5284_v58 = vpop.eup %5283  ;;  %v7197_v34 = vadd.f32 1.0, %v5282_v29 }
 0x5e1   : > { %5285 = vpow2.f32 %v5027_v39  ;;  %3100 = vmatmul.f32.gmra.mxu3 %v2851_v63  ;;  %v3341_v1 = vmul.f32 %v5284_v58, %v3224_v11  ;;  %vm3346_vm1 = vweird.f32 %v5284_v58  ;;  %v7211_v11 = vpop.f32.mrf.mxu2  ;;  %v2855_v63 = vld [vmem:[#allocation9 + $0x1b8] sm:$0xff] }
 0x5e2   : > { %5287 = vrcp.f32 %v7197_v34  ;;  %vm3347_vm3 = vmor %vm3345_vm2, %vm3346_vm1  ;;  %v3364_v23 = vand.u32 2147483647, %v7197_v34  ;;  %v3366_v25 = vand.u32 2147483648, %v7197_v34  ;;  %vm3360_vm6 = vweird.f32 %v7197_v34 }
 0x5e3   : > { %v3342_v3 = vsub.f32 1.0, %v3341_v1 }
 0x5e4   : > { %v3053_v43 = vpop.f32.mrf.mxu3  ;;  %v3367_v1 = vor.u32 1.1754944e-38, %v3366_v25  ;;  %vm3365_vm8 = vcmp.eq.f32.partialorder %v3364_v23, 8.507059e+37 }
 0x5e5   : > { %v3054_v44 = vadd.f32 %v3053_v43, %v2941_v15  ;;  %v3343_v14 = vmul.f32 %v5284_v58, %v3342_v3  ;;  %v2947_v15 = vadd.f32 %v7187_v57, %v2875_v20  ;;  %v2862_v3 = vld [vmem:[#allocation9 + $0x1f0] sm:$0xff] }
 0x5e6   : > { %3005 = vmatmul.f32.gmra.mxu2 %v2862_v3 }
 0x5e7   : > { %v5286_v9 = vpop.eup %5285  ;;  %v5028_v59 = vmul.f32 -1.442695, %v3054_v44  ;;  %v3344_v56 = vadd.f32 %v5284_v58, %v3343_v14 }
 0x5e8   : > { %v5288_v5 = vpop.eup %5287  ;;  %v7205_v26 = vadd.f32 1.0, %v5286_v9 }
 0x5e9   : > { %5289 = vpow2.f32 %v5028_v59  ;;  %3103 = vmatmul.f32.gmra.mxu3 %v2853_v12  ;;  %v3348_v21 = vsel %vm3347_vm3, %v5284_v58, %v3344_v56  ;;  %v3356_v17 = vmul.f32 %v5288_v5, %v7197_v34  ;;  %vm3361_vm5 = vweird.f32 %v5288_v5  ;;  %v7224_v12 = vpop.f32.mrf.mxu2  ;;  %v2876_v56 = vld [vmem:[%s8085_s5 + $0x60] sm:$0xff] }
 0x5ea   : > { %5291 = vrcp.f32 %v7205_v26  ;;  %v3353_v52 = vsel %vm3350_vm4, %v3352_v47, %v3348_v21  ;;  %vm3362_vm7 = vmor %vm3360_vm6, %vm3361_vm5  ;;  %v3379_v18 = vand.u32 2147483647, %v7205_v26  ;;  %v3381_v57 = vand.u32 2147483648, %v7205_v26 }
 0x5eb   : > { %v3736_v62 = vadd.f32 1.0, %v3353_v52  ;;  %v3357_v28 = vsub.f32 1.0, %v3356_v17  ;;  %vm3375_vm10 = vweird.f32 %v7205_v26 }
 0x5ec   : > { %v3056_v50 = vpop.f32.mrf.mxu3  ;;  %vm3380_vm12 = vcmp.eq.f32.partialorder %v3379_v18, 8.507059e+37 }
 0x5ed   : > { %v3057_v54 = vadd.f32 %v3056_v50, %v2944_v33  ;;  %v3800_v8 = vpack.c.bf16 %v3736_v62, %v3736_v62  ;;  %v3358_v4 = vmul.f32 %v5288_v5, %v3357_v28  ;;  %v2857_v33 = vld [vmem:[#allocation9 + $0x1c8] sm:$0xff]  ;;  %v2950_v62 = vadd.f32 %v7192_v51, %v2876_v56 }
 0x5ee   : > { %v3382_v28 = vor.u32 1.1754944e-38, %v3381_v57 }
 0x5ef   : > { %v5290_v41 = vpop.eup %5289  ;;  %v5029_v29 = vmul.f32 -1.442695, %v3057_v54  ;;  %3882 = vperm.xlu1 %5277, %v3800_v8   ;;  %v3359_v39 = vadd.f32 %v5288_v5, %v3358_v4 }
 0x5f0   : > { %v5292_v58 = vpop.eup %5291  ;;  %v7217_v60 = vadd.f32 1.0, %v5290_v41 }
 0x5f1   : > { %v3371_v43 = vmul.f32 %v5292_v58, %v7205_v26  ;;  %5293 = vpow2.f32 %v5029_v29  ;;  %3106 = vmatmul.f32.gmra.mxu3 %v2855_v63  ;;  %v3363_v19 = vsel %vm3362_vm7, %v5288_v5, %v3359_v39  ;;  %vm3376_vm9 = vweird.f32 %v5292_v58  ;;  %v7237_v63 = vpop.f32.mrf.mxu2  ;;  %v2877_v29 = vld [vmem:[%s8085_s5 + $0x68] sm:$0xff] }
 0x5f2   : > { %5295 = vrcp.f32 %v7217_v60  ;;  %v3368_v44 = vsel %vm3365_vm8, %v3367_v1, %v3363_v19  ;;  %vm3377_vm11 = vmor %vm3375_vm10, %vm3376_vm9  ;;  %v3394_v26 = vand.u32 2147483647, %v7217_v60  ;;  %v3396_v4 = vand.u32 2147483648, %v7217_v60 }
 0x5f3   : > { %v3737_v0 = vadd.f32 1.0, %v3368_v44  ;;  %v3372_v34 = vsub.f32 1.0, %v3371_v43  ;;  %vm3390_vm14 = vweird.f32 %v7217_v60  ;;  %v2953_v44 = vadd.f32 %v7200_v45, %v2877_v29 }
 0x5f4   : > { %v3059_v14 = vpop.f32.mrf.mxu3  ;;  %vm3395_vm0 = vcmp.eq.f32.partialorder %v3394_v26, 8.507059e+37 }
 0x5f5   : > { %v3060_v9 = vadd.f32 %v3059_v14, %v2947_v15  ;;  %v3801_v59 = vpack.c.bf16 %v3737_v0, %v3737_v0  ;;  %v3373_v5 = vmul.f32 %v5292_v58, %v3372_v34  ;;  %v3397_v0 = vor.u32 1.1754944e-38, %v3396_v4 }
 0x5f7   : > { %v5294_v47 = vpop.eup %5293  ;;  %v5030_v31 = vmul.f32 -1.442695, %v3060_v9  ;;  %3891 = vperm.xlu0 %5276, %v3801_v59   ;;  %v3374_v21 = vadd.f32 %v5292_v58, %v3373_v5 }
 0x5f8   : > { %v5296_v17 = vpop.eup %5295  ;;  %v7230_v52 = vadd.f32 1.0, %v5294_v47  ;;  %v2878_v47 = vld [vmem:[%s8085_s5 + $0x70] sm:$0xff] }
 0x5f9   : > { %5297 = vpow2.f32 %v5030_v31  ;;  %3109 = vmatmul.f32.gmra.mxu3 %v2857_v33  ;;  %v3378_v50 = vsel %vm3377_vm11, %v5292_v58, %v3374_v21  ;;  %v3386_v23 = vmul.f32 %v5296_v17, %v7217_v60  ;;  %vm3391_vm13 = vweird.f32 %v5296_v17  ;;  %v2859_v58 = vld [vmem:[#allocation9 + $0x1d8] sm:$0xff]  ;;  %v7250_v5 = vpop.f32.mrf.mxu2  ;;  %v2861_v21 = vld [vmem:[#allocation9 + $0x1e8] sm:$0xff] }
 0x5fa   : > { %5299 = vrcp.f32 %v7230_v52  ;;  %v3383_v25 = vsel %vm3380_vm12, %v3382_v28, %v3378_v50  ;;  %vm3392_vm15 = vmor %vm3390_vm14, %vm3391_vm13  ;;  %v3409_v60 = vand.u32 2147483647, %v7230_v52  ;;  %v3411_v56 = vand.u32 2147483648, %v7230_v52 }
 0x5fb   : > { %v3738_v54 = vadd.f32 1.0, %v3383_v25  ;;  %v3387_v8 = vsub.f32 1.0, %v3386_v23  ;;  %vm3405_vm2 = vweird.f32 %v7230_v52  ;;  %v2956_v25 = vadd.f32 %v7211_v11, %v2878_v47 }
 0x5fc   : > { %v3062_v20 = vpop.f32.mrf.mxu3  ;;  %vm3410_vm4 = vcmp.eq.f32.partialorder %v3409_v60, 8.507059e+37 }
 0x5fd   : > { %v3063_v51 = vadd.f32 %v3062_v20, %v2950_v62  ;;  %v3802_v41 = vpack.c.bf16 %v3738_v54, %v3738_v54  ;;  %v3388_v39 = vmul.f32 %v5296_v17, %v3387_v8  ;;  %v3412_v54 = vor.u32 1.1754944e-38, %v3411_v56 }
 0x5ff   : > { %v5298_v15 = vpop.eup %5297  ;;  %v5031_v1 = vmul.f32 -1.442695, %v3063_v51  ;;  %3900 = vperm.xlu2 %5278, %v3802_v41   ;;  %v3389_v3 = vadd.f32 %v5296_v17, %v3388_v39 }
 0x600   : > { %v5300_v43 = vpop.eup %5299  ;;  %v7243_v19 = vadd.f32 1.0, %v5298_v15  ;;  %v2879_v15 = vld [vmem:[%s8085_s5 + $0x78] sm:$0xff] }
 0x601   : > { %v3401_v34 = vmul.f32 %v5300_v43, %v7230_v52  ;;  %5301 = vpow2.f32 %v5031_v1  ;;  %3112 = vmatmul.f32.gmra.mxu3 %v2859_v58  ;;  %v3393_v14 = vsel %vm3392_vm15, %v5296_v17, %v3389_v3  ;;  %vm3406_vm1 = vweird.f32 %v5300_v43  ;;  %v7263_v39 = vpop.f32.mrf.mxu2  ;;  %v2863_v3 = vld [vmem:[#allocation9 + $0x1f8] sm:$0xff] }
 0x602   : > { %5303 = vrcp.f32 %v7243_v19  ;;  %v3398_v18 = vsel %vm3395_vm0, %v3397_v0, %v3393_v14  ;;  %vm3407_vm3 = vmor %vm3405_vm2, %vm3406_vm1  ;;  %v3424_v52 = vand.u32 2147483647, %v7243_v19  ;;  %v3426_v29 = vand.u32 2147483648, %v7243_v19 }
 0x603   : > { %v3739_v57 = vadd.f32 1.0, %v3398_v18  ;;  %v3402_v9 = vsub.f32 1.0, %v3401_v34  ;;  %vm3420_vm6 = vweird.f32 %v7243_v19  ;;  %v2959_v18 = vadd.f32 %v7224_v12, %v2879_v15  ;;  %v2880_v12 = vld [vmem:[%s8085_s5 + $0x80] sm:$0xff] }
 0x604   : > { %v3065_v59 = vpop.f32.mrf.mxu3  ;;  %vm3425_vm8 = vcmp.eq.f32.partialorder %v3424_v52, 8.507059e+37 }
 0x605   : > { %v3066_v45 = vadd.f32 %v3065_v59, %v2953_v44  ;;  %v3803_v33 = vpack.c.bf16 %v3739_v57, %v3739_v57  ;;  %v3403_v31 = vmul.f32 %v5300_v43, %v3402_v9  ;;  %v3427_v57 = vor.u32 1.1754944e-38, %v3426_v29 }
 0x607   : > { %v5302_v17 = vpop.eup %5301  ;;  %v5032_v62 = vmul.f32 -1.442695, %v3066_v45  ;;  %3909 = vperm.xlu1 %5277, %v3803_v33   ;;  %v3404_v28 = vadd.f32 %v5300_v43, %v3403_v31 }
 0x608   : > { %v5304_v50 = vpop.eup %5303  ;;  %v7256_v23 = vadd.f32 1.0, %v5302_v17 }
 0x609   : > { %v3416_v8 = vmul.f32 %v5304_v50, %v7243_v19  ;;  %5305 = vpow2.f32 %v5032_v62  ;;  %3115 = vmatmul.f32.gmra.mxu3 %v2861_v21  ;;  %v3408_v20 = vsel %vm3407_vm3, %v5300_v43, %v3404_v28  ;;  %vm3421_vm5 = vweird.f32 %v5304_v50  ;;  %v7276_v62 = vpop.f32.mrf.mxu2 }
 0x60a   : > { %5307 = vrcp.f32 %v7256_v23  ;;  %v3413_v26 = vsel %vm3410_vm4, %v3412_v54, %v3408_v20  ;;  %vm3422_vm7 = vmor %vm3420_vm6, %vm3421_vm5  ;;  %v3439_v47 = vand.u32 2147483647, %v7256_v23  ;;  %v3441_v19 = vand.u32 2147483648, %v7256_v23 }
 0x60b   : > { %v3740_v4 = vadd.f32 1.0, %v3413_v26  ;;  %v3417_v51 = vsub.f32 1.0, %v3416_v8  ;;  %vm3435_vm10 = vweird.f32 %v7256_v23  ;;  %v2962_v20 = vadd.f32 %v7237_v63, %v2880_v12  ;;  %v2881_v63 = vld [vmem:[%s8085_s5 + $0x88] sm:$0xff] }
 0x60c   : > { %v3068_v41 = vpop.f32.mrf.mxu3  ;;  %v3442_v26 = vor.u32 1.1754944e-38, %v3441_v19  ;;  %vm3440_vm12 = vcmp.eq.f32.partialorder %v3439_v47, 8.507059e+37 }
 0x60d   : > { %v3069_v11 = vadd.f32 %v3068_v41, %v2956_v25  ;;  %v3804_v58 = vpack.c.bf16 %v3740_v4, %v3740_v4  ;;  %v3418_v1 = vmul.f32 %v5304_v50, %v3417_v51 }
 0x60f   : > { %v5306_v43 = vpop.eup %5305  ;;  %v5033_v44 = vmul.f32 -1.442695, %v3069_v11  ;;  %3918 = vperm.xlu0 %5276, %v3804_v58   ;;  %v3419_v0 = vadd.f32 %v5304_v50, %v3418_v1 }
 0x610   : > { %v5308_v34 = vpop.eup %5307  ;;  %v3231_v14 = vadd.f32 1.0, %v5306_v43 }
 0x611   : > { %v3431_v9 = vmul.f32 %v5308_v34, %v7256_v23  ;;  %5309 = vpow2.f32 %v5033_v44  ;;  %3118 = vmatmul.f32.gmra.mxu3 %v2863_v3  ;;  %v3423_v59 = vsel %vm3422_vm7, %v5304_v50, %v3419_v0  ;;  %vm3436_vm9 = vweird.f32 %v5308_v34  ;;  %v2973_v0 = vpop.f32.mrf.mxu2 }
 0x612   : > { %5311 = vrcp.f32 %v3231_v14  ;;  %v3428_v60 = vsel %vm3425_vm8, %v3427_v57, %v3423_v59  ;;  %vm3437_vm11 = vmor %vm3435_vm10, %vm3436_vm9  ;;  %v3454_v58 = vand.u32 2147483647, %v3231_v14  ;;  %v3456_v15 = vand.u32 2147483648, %v3231_v14 }
 0x613   : > { %v3741_v56 = vadd.f32 1.0, %v3428_v60  ;;  %v3432_v45 = vsub.f32 1.0, %v3431_v9  ;;  %vm3450_vm14 = vweird.f32 %v3231_v14  ;;  %v2965_v59 = vadd.f32 %v7250_v5, %v2881_v63 }
 0x614   : > { %v3071_v33 = vpop.f32.mrf.mxu3  ;;  %v3457_v57 = vor.u32 1.1754944e-38, %v3456_v15  ;;  %vm3455_vm0 = vcmp.eq.f32.partialorder %v3454_v58, 8.507059e+37 }
 0x615   : > { %v3072_v31 = vadd.f32 %v3071_v33, %v2959_v18  ;;  %v3805_v21 = vpack.c.bf16 %v3741_v56, %v3741_v56  ;;  %v3433_v17 = vmul.f32 %v5308_v34, %v3432_v45 }
 0x617   : > { %v5310_v28 = vpop.eup %5309  ;;  %v5034_v50 = vmul.f32 -1.442695, %v3072_v31  ;;  %3927 = vperm.xlu2 %5278, %v3805_v21   ;;  %v3434_v25 = vadd.f32 %v5308_v34, %v3433_v17  ;;  %v2882_v17 = vld [vmem:[%s8085_s5 + $0x90] sm:$0xff] }
 0x618   : > { %v5312_v54 = vpop.eup %5311  ;;  %v3232_v8 = vadd.f32 1.0, %v5310_v28 }
 0x619   : > { %v3446_v4 = vmul.f32 %v5312_v54, %v3231_v14  ;;  %5313 = vpow2.f32 %v5034_v50  ;;  %v3438_v51 = vsel %vm3437_vm11, %v5308_v34, %v3434_v25  ;;  %vm3451_vm13 = vweird.f32 %v5312_v54 }
 0x61a   : > { %5315 = vrcp.f32 %v3232_v8  ;;  %v3443_v41 = vsel %vm3440_vm12, %v3442_v26, %v3438_v51  ;;  %vm3452_vm15 = vmor %vm3450_vm14, %vm3451_vm13  ;;  %v3469_v19 = vand.u32 2147483647, %v3232_v8  ;;  %v3471_v31 = vand.u32 2147483648, %v3232_v8  ;;  %v2976_v26 = vpop.f32.mrf.mxu2 }
 0x61b   : > { %v3742_v52 = vadd.f32 1.0, %v3443_v41  ;;  %v3447_v29 = vsub.f32 1.0, %v3446_v4  ;;  %vm3465_vm2 = vweird.f32 %v3232_v8 }
 0x61c   : > { %v3074_v11 = vpop.f32.mrf.mxu3  ;;  %v3472_v50 = vor.u32 1.1754944e-38, %v3471_v31  ;;  %vm3470_vm4 = vcmp.eq.f32.partialorder %v3469_v19, 8.507059e+37  ;;  %v2885_v19 = vld [vmem:[%s8085_s5 + $0xa8] sm:$0xff]  ;;  %v5021_v31 = vmul.f32 -1.442695, %v7164_v55 }
 0x61d   : > { %v7280_v1 = vadd.f32 %v3074_v11, %v2962_v20  ;;  %v3806_v23 = vpack.c.bf16 %v3742_v52, %v3742_v52  ;;  %v3448_v3 = vmul.f32 %v5312_v54, %v3447_v29 }
 0x61f   : > { %v5314_v43 = vpop.eup %5313  ;;  %3936 = vperm.xlu1 %5277, %v3806_v23   ;;  %v3449_v44 = vadd.f32 %v5312_v54, %v3448_v3 }
 0x620   : > { %v5316_v34 = vpop.eup %5315  ;;  %v3233_v18 = vadd.f32 1.0, %v5314_v43 }
 0x621   : > { %v3461_v9 = vmul.f32 %v5316_v34, %v3232_v8  ;;  %v3453_v60 = vsel %vm3452_vm15, %v5312_v54, %v3449_v44  ;;  %vm3466_vm1 = vweird.f32 %v5316_v34  ;;  %v2968_v54 = vadd.f32 %v7263_v39, %v2882_v17  ;;  %v2883_v8 = vld [vmem:[%s8085_s5 + $0x98] sm:$0xff] }
 0x622   : > { %5317 = vrcp.f32 %v3233_v18  ;;  %v3458_v56 = vsel %vm3455_vm0, %v3457_v57, %v3453_v60  ;;  %vm3467_vm3 = vmor %vm3465_vm2, %vm3466_vm1  ;;  %v3484_v29 = vand.u32 2147483647, %v3233_v18  ;;  %v3486_v11 = vand.u32 2147483648, %v3233_v18  ;;  %v2979_v57 = vpop.f32.mrf.mxu2 }
 0x623   : > { %v3743_v45 = vadd.f32 1.0, %v3458_v56  ;;  %v3462_v33 = vsub.f32 1.0, %v3461_v9  ;;  %vm3480_vm6 = vweird.f32 %v3233_v18  ;;  %v2971_v63 = vadd.f32 %v7276_v62, %v2883_v8  ;;  %v2884_v56 = vld [vmem:[%s8085_s5 + $0xa0] sm:$0xff] }
 0x624   : > { %v3077_v47 = vpop.f32.mrf.mxu3  ;;  %v3487_v3 = vor.u32 1.1754944e-38, %v3486_v11  ;;  %vm3485_vm8 = vcmp.eq.f32.partialorder %v3484_v29, 8.507059e+37 }
 0x625   : > { %v7286_v21 = vadd.f32 %v3077_v47, %v2965_v59  ;;  %v3807_v14 = vpack.c.bf16 %v3743_v45, %v3743_v45  ;;  %v3463_v12 = vmul.f32 %v5316_v34, %v3462_v33  ;;  %v5019_v45 = vmul.f32 -1.442695, %v7154_v37 }
 0x627   : > { %3945 = vperm.xlu0 %5276, %v3807_v14   ;;  %v3464_v5 = vadd.f32 %v5316_v34, %v3463_v12  ;;  %5319 = vpow2.f32 %v5019_v45  ;;  %v2977_v12 = vadd.f32 %v2976_v26, %v2885_v19  ;;  %v8359_v45 = vld [vmem:[#allocation39_spill] sm:$0xff] }
 0x628   : > { %v5318_v28 = vpop.eup %5317  ;;  %5321 = vpow2.f32 %v5021_v31 }
 0x629   : > { %v3476_v25 = vmul.f32 %v5318_v28, %v3233_v18  ;;  %v3468_v20 = vsel %vm3467_vm3, %v5316_v34, %v3464_v5  ;;  %vm3481_vm5 = vweird.f32 %v5318_v28  ;;  %v2974_v18 = vadd.f32 %v2973_v0, %v2884_v56  ;;  %v2886_v0 = vld [vmem:[%s8085_s5 + $0xb0] sm:$0xff] }
 0x62a   : > { %v3473_v4 = vsel %vm3470_vm4, %v3472_v50, %v3468_v20  ;;  %vm3482_vm7 = vmor %vm3480_vm6, %vm3481_vm5  ;;  %v2982_v47 = vpop.f32.mrf.mxu2 }
 0x62b   : > { %v3744_v51 = vadd.f32 1.0, %v3473_v4  ;;  %v3477_v41 = vsub.f32 1.0, %v3476_v25  ;;  %v2980_v25 = vadd.f32 %v2979_v57, %v2886_v0  ;;  %v2887_v4 = vld [vmem:[%s8085_s5 + $0xb8] sm:$0xff] }
 0x62c   : > { %v3080_v52 = vpop.f32.mrf.mxu3 }
 0x62d   : > { %v7292_v58 = vadd.f32 %v3080_v52, %v2968_v54  ;;  %v3808_v15 = vpack.c.bf16 %v3744_v51, %v3744_v51  ;;  %v3478_v23 = vmul.f32 %v5318_v28, %v3477_v41  ;;  %v5320_v14 = vpop.eup %5319  ;;  %v5022_v51 = vmul.f32 -1.442695, %v7169_v30  ;;  %v2888_v30 = vld [vmem:[%s8085_s5 + $0xc0] sm:$0xff] }
 0x62e   : > { %v7310_v17 = vadd.f32 1.0, %v5320_v14  ;;  %v5322_v50 = vpop.eup %5321  ;;  %v2983_v52 = vadd.f32 %v2982_v47, %v2887_v4 }
 0x62f   : > { %3954 = vperm.xlu0 %5276, %v3808_v15   ;;  %v3479_v39 = vadd.f32 %v5318_v28, %v3478_v23  ;;  %v7318_v54 = vadd.f32 1.0, %v5322_v50  ;;  %v5020_v15 = vmul.f32 -1.442695, %v7159_v46 }
 0x630   : > { %5323 = vrcp.f32 %v7310_v17  ;;  %vm3255_vm10 = vweird.f32 %v7310_v17 }
 0x631   : > { %v3483_v43 = vsel %vm3482_vm7, %v5318_v28, %v3479_v39  ;;  %5325 = vrcp.f32 %v7318_v54  ;;  %v4126_v39 = vunpack.c.l.bf16 %v6816_v2  ;;  %vm3285_vm2 = vweird.f32 %v7318_v54 }
 0x632   : > { %v3488_v44 = vsel %vm3485_vm8, %v3487_v3, %v3483_v43  ;;  %v2985_v28 = vpop.f32.mrf.mxu2  ;;  %v4127_v43 = vunpack.c.h.bf16 %v6816_v2 }
 0x633   : > { %v3745_v34 = vadd.f32 1.0, %v3488_v44  ;;  %v8358_v44 = vld [vmem:[#allocation33_spill] sm:$0xff] }
 0x634   : > { %v3083_v9 = vpop.f32.mrf.mxu3  ;;  %v4129_v57 = vunpack.c.h.bf16 %v8358_v44 }
 0x635   : > { %v7298_v59 = vadd.f32 %v3083_v9, %v2971_v63  ;;  %v3809_v60 = vpack.c.bf16 %v3745_v34, %v3745_v34  ;;  %v4128_v34 = vunpack.c.l.bf16 %v8358_v44 }
 0x636   : > { %v7320_v26 = vpop.eup %5323 }
 0x637   : > { %3963 = vperm.xlu1 %5277, %v3809_v60   ;;  %v3251_v11 = vmul.f32 %v7320_v26, %v7310_v17  ;;  %v7333_v63 = vpop.eup %5325  ;;  %vm3256_vm9 = vweird.f32 %v7320_v26 }
 0x638   : > { %vm7384_vm11 = vmor %vm3255_vm10, %vm3256_vm9  ;;  %vm3286_vm15 = vweird.f32 %v7333_v63 }
 0x639   : > { %v3252_v3 = vsub.f32 1.0, %v3251_v11  ;;  %vm7477_vm8 = vmor %vm3285_vm2, %vm3286_vm15 }
 0x63a   : > { %v7327_v29 = vpop.f32.mrf.mxu2 }
 0x63b   : > { %v3253_v0 = vmul.f32 %v7320_v26, %v3252_v3  ;;  %v5593_v3 = vmov 839922192  }
 0x63c   : > { %v3086_v33 = vpop.f32.mrf.mxu3 }
 0x63d   : > { %v7304_v62 = vadd.f32 %v3086_v33, %v2974_v18 }
 0x63f   : > { %v5039_v47 = vmul.f32 -1.442695, %v7304_v62 }
 0x642   : > { %v7357_v4 = vpop.f32.mrf.mxu2 }
 0x644   : > { %v3089_v5 = vpop.f32.mrf.mxu3 }
 0x645   : > { %v7312_v37 = vadd.f32 %v3089_v5, %v2977_v12  ;;  %v2986_v12 = vadd.f32 %v2985_v28, %v2888_v30 }
 0x64c   : > { %v3092_v55 = vpop.f32.mrf.mxu3 }
 0x64d   : > { %v3093_v20 = vadd.f32 %v3092_v55, %v2980_v25  ;;  %v3281_v55 = vmul.f32 %v7333_v63, %v7318_v54 }
 0x64f   : > { %v5041_v41 = vmul.f32 -1.442695, %v3093_v20  ;;  %v5023_v20 = vmul.f32 -1.442695, %v7174_v13  ;;  %v3254_v13 = vadd.f32 %v7320_v26, %v3253_v0 }
 0x651   : > { %5327 = vpow2.f32 %v5041_v41  ;;  %v3259_v41 = vand.u32 2147483647, %v7310_v17 }
 0x652   : > { %5329 = vpow2.f32 %v5022_v51  ;;  %v3832_v51 = vunpack.c.l.s4 %v5593_v3 }
 0x653   : > { %5331 = vpow2.f32 %v5020_v15  ;;  %vm3260_vm12 = vcmp.eq.f32.partialorder %v3259_v41, 8.507059e+37 }
 0x654   : > { %v3095_v23 = vpop.f32.mrf.mxu3  ;;  %v7398_v19 = vunpack.c.0.s8 %v3832_v51 }
 0x655   : > { %v3096_v8 = vadd.f32 %v3095_v23, %v2983_v52  ;;  %v3261_v23 = vand.u32 2147483648, %v7310_v17 }
 0x657   : > { %v5328_v46 = vpop.eup %5327  ;;  %v5042_v9 = vmul.f32 -1.442695, %v3096_v8  ;;  %v3262_v3 = vor.u32 1.1754944e-38, %v3261_v23  ;;  %v2890_v23 = vld [vmem:[%s8085_s5 + $0xd0] sm:$0xff] }
 0x658   : > { %v7344_v33 = vadd.f32 1.0, %v5328_v46  ;;  %v5330_v14 = vpop.eup %5329  ;;  %v2889_v46 = vld [vmem:[%s8085_s5 + $0xc8] sm:$0xff] }
 0x659   : > { %5333 = vpow2.f32 %v5042_v9  ;;  %v5332_v52 = vpop.eup %5331  ;;  %v7362_v11 = vadd.f32 1.0, %v5330_v14  ;;  %v3282_v14 = vsub.f32 1.0, %v3281_v55  ;;  %v3291_v55 = vand.u32 2147483648, %v7318_v54 }
 0x65a   : > { %5335 = vrcp.f32 %v7344_v33  ;;  %v7375_v8 = vadd.f32 1.0, %v5332_v52  ;;  %v2989_v17 = vadd.f32 %v7327_v29, %v2889_v46  ;;  %v3591_v46 = vand.u32 2147483648, %v7344_v33 }
 0x65b   : > { %5337 = vpow2.f32 %v5023_v20  ;;  %v3283_v52 = vmul.f32 %v7333_v63, %v3282_v14  ;;  %v3589_v14 = vand.u32 2147483647, %v7344_v33  ;;  %vm3585_vm14 = vweird.f32 %v7344_v33 }
 0x65c   : > { %v3098_v15 = vpop.f32.mrf.mxu3  ;;  %5339 = vrcp.f32 %v7362_v11  ;;  %vm3300_vm2 = vweird.f32 %v7362_v11 }
 0x65d   : > { %v3099_v30 = vadd.f32 %v3098_v15, %v2986_v12  ;;  %vm3590_vm1 = vcmp.eq.f32.partialorder %v3589_v14, 8.507059e+37 }
 0x65f   : > { %v5334_v28 = vpop.eup %5333  ;;  %v5043_v12 = vmul.f32 -1.442695, %v3099_v30  ;;  %v5024_v30 = vmul.f32 -1.442695, %v7179_v40 }
 0x660   : > { %v5336_v0 = vpop.eup %5335  ;;  %v7379_v15 = vadd.f32 1.0, %v5334_v28  ;;  %v3258_v28 = vsel %vm7384_vm11, %v7320_v26, %v3254_v13  ;;  %v7401_v26 = vor.u32 1.1754944e-38, %v3291_v55  ;;  %v3592_v55 = vor.u32 1.1754944e-38, %v3591_v46 }
 0x661   : > { %v3581_v20 = vmul.f32 %v5336_v0, %v7344_v33  ;;  %5341 = vpow2.f32 %v5043_v12  ;;  %v3883_v25 = vpop.permute.xlu1 %3882  ;;  %v3289_v12 = vand.u32 2147483647, %v7318_v54  ;;  %v7403_v13 = vsel %vm3260_vm12, %v3262_v3, %v3258_v28  ;;  %v5338_v9 = vpop.eup %5337 }
 0x662   : > { %5343 = vrcp.f32 %v7379_v15  ;;  %vm3586_vm13 = vweird.f32 %v5336_v0  ;;  %v7409_v51 = vpop.eup %5339  ;;  %v3888_v50 = vperm.slane %v3883_v25, %v7398_v19  ;;  %v3306_v28 = vand.u32 2147483648, %v7362_v11 }
 0x663   : > { %5345 = vrcp.f32 %v7375_v8  ;;  %v3582_v31 = vsub.f32 1.0, %v3581_v20  ;;  %v2994_v20 = vpop.f32.mrf.mxu2  ;;  %v7415_v3 = vadd.f32 %v7333_v63, %v3283_v52  ;;  %v2992_v25 = vadd.f32 %v7357_v4, %v2890_v23  ;;  %vm3587_vm0 = vmor %vm3585_vm14, %vm3586_vm13 }
 0x664   : > { %v3101_v29 = vpop.f32.mrf.mxu3  ;;  %5347 = vpow2.f32 %v5024_v30  ;;  %v4184_v62 = vunpack.c.l.bf16 %v3888_v50  ;;  %v7430_v4 = vadd.f32 1.0, %v5338_v9  ;;  %v3296_v56 = vmul.f32 %v7409_v51, %v7362_v11 }
 0x665   : > { %v3102_v41 = vadd.f32 %v3101_v29, %v2989_v17  ;;  %v3583_v40 = vmul.f32 %v5336_v0, %v3582_v31  ;;  %v3606_v50 = vand.u32 2147483648, %v7379_v15  ;;  %vm7439_vm4 = vcmp.eq.f32.partialorder %v3289_v12, 8.507059e+37 }
 0x666   : > { %vm3600_vm5 = vweird.f32 %v7379_v15  ;;  %vm3301_vm15 = vweird.f32 %v7409_v51 }
 0x667   : > { %v5342_v17 = vpop.eup %5341  ;;  %v5044_v29 = vmul.f32 -1.442695, %v3102_v41  ;;  %v3584_v5 = vadd.f32 %v5336_v0, %v3583_v40 }
 0x668   : > { %v5344_v31 = vpop.eup %5343  ;;  %v7420_v18 = vadd.f32 1.0, %v5342_v17 }
 0x669   : > { %v7424_v52 = vpop.eup %5345  ;;  %v3596_v30 = vmul.f32 %v5344_v31, %v7379_v15  ;;  %5349 = vpow2.f32 %v5044_v29  ;;  %v3892_v41 = vpop.permute.xlu0 %3891  ;;  %v3588_v40 = vsel %vm3587_vm0, %v5336_v0, %v3584_v5  ;;  %v2891_v5 = vld [vmem:[%s8085_s5 + $0xd8] sm:$0xff]  ;;  %v3604_v0 = vand.u32 2147483647, %v7379_v15 }
 0x66a   : > { %5351 = vrcp.f32 %v7420_v18  ;;  %v3897_v33 = vperm.slane %v3892_v41, %v7398_v19  ;;  %v3593_v17 = vsel %vm3590_vm1, %v3592_v55, %v3588_v40  ;;  %v5348_v14 = vpop.eup %5347  ;;  %vm3601_vm3 = vweird.f32 %v5344_v31 }
 0x66b   : > { %v3752_v23 = vadd.f32 1.0, %v3593_v17  ;;  %v3597_v46 = vsub.f32 1.0, %v3596_v30  ;;  %5353 = vpow2.f32 %v5039_v47  ;;  %v7445_v47 = vmul.f32 %v4184_v62, %v4126_v39  ;;  %v2997_v39 = vpop.f32.mrf.mxu2  ;;  %vm3602_vm6 = vmor %vm3600_vm5, %vm3601_vm3 }
 0x66c   : > { %v4185_v29 = vunpack.c.l.bf16 %v3897_v33  ;;  %v3104_v60 = vpop.f32.mrf.mxu3  ;;  %v7449_v40 = vmul.f32 %v4184_v62, %v4127_v43  ;;  %v2995_v17 = vadd.f32 %v2994_v20, %v2891_v5  ;;  %v3607_v43 = vor.u32 1.1754944e-38, %v3606_v50 }
 0x66d   : > { %v3105_v55 = vadd.f32 %v3104_v60, %v2992_v25  ;;  %v3816_v9 = vpack.c.bf16 %v3752_v23, %v3752_v23  ;;  %v3598_v41 = vmul.f32 %v5344_v31, %v3597_v46  ;;  %vm3605_vm7 = vcmp.eq.f32.partialorder %v3604_v0, 8.507059e+37 }
 0x66e   : > { %v7453_v33 = vmul.f32 %v4185_v29, %v4128_v34  ;;  %v7457_v60 = vmul.f32 %v4185_v29, %v4129_v57  ;;  %v3901_v57 = vpop.permute.xlu2 %3900  ;;  %v3297_v5 = vsub.f32 1.0, %v3296_v56  ;;  %v7471_v50 = vor.u32 1.1754944e-38, %v3306_v28 }
 0x66f   : > { %v5350_v12 = vpop.eup %5349  ;;  %v5045_v25 = vmul.f32 -1.442695, %v3105_v55  ;;  %4026 = vperm.xlu2 %5278, %v3816_v9   ;;  %v3599_v23 = vadd.f32 %v5344_v31, %v3598_v41  ;;  %v7481_v9 = vadd.f32 1.0, %v5348_v14  ;;  %v3288_v56 = vsel %vm7477_vm8, %v7333_v63, %v7415_v3  ;;  %v2892_v14 = vld [vmem:[%s8085_s5 + $0xe0] sm:$0xff] }
 0x670   : > { %v5352_v46 = vpop.eup %5351  ;;  %v7460_v2 = vadd.f32 1.0, %v5350_v12  ;;  %v3906_v28 = vperm.slane %v3901_v57, %v7398_v19  ;;  %v3619_v54 = vand.u32 2147483647, %v7420_v18  ;;  %v3621_v12 = vand.u32 2147483648, %v7420_v18 }
 0x671   : > { %v3611_v62 = vmul.f32 %v5352_v46, %v7420_v18  ;;  %5355 = vpow2.f32 %v5045_v25  ;;  %v3603_v20 = vsel %vm3602_vm6, %v5344_v31, %v3599_v23  ;;  %v5354_v15 = vpop.eup %5353  ;;  %vm3616_vm9 = vweird.f32 %v5352_v46 }
 0x672   : > { %5357 = vrcp.f32 %v7460_v2  ;;  %v3608_v29 = vsel %vm3605_vm7, %v3607_v43, %v3603_v20  ;;  %v7500_v57 = vsel %vm7439_vm4, %v7401_v26, %v3288_v56  ;;  %vm3615_vm10 = vweird.f32 %v7420_v18  ;;  %vm7594_vm7 = vmor %vm3300_vm2, %vm3301_vm15 }
 0x673   : > { %v3753_v31 = vadd.f32 1.0, %v3608_v29  ;;  %v3612_v0 = vsub.f32 1.0, %v3611_v62  ;;  %5359 = vrcp.f32 %v7430_v4  ;;  %v3298_v62 = vmul.f32 %v7409_v51, %v3297_v5  ;;  %vm3617_vm11 = vmor %vm3615_vm10, %vm3616_vm9  ;;  %v3000_v44 = vpop.f32.mrf.mxu2 }
 0x674   : > { %v3107_v41 = vpop.f32.mrf.mxu3  ;;  %5361 = vrcp.f32 %v7481_v9  ;;  %vm3620_vm12 = vcmp.eq.f32.partialorder %v3619_v54, 8.507059e+37  ;;  %v8368_v34 = vunpack.c.l.bf16 %v8359_v45  ;;  %v8369_v3 = vunpack.c.h.bf16 %v8359_v45 }
 0x675   : > { %v3108_v25 = vadd.f32 %v3107_v41, %v2995_v17  ;;  %v3817_v23 = vpack.c.bf16 %v3753_v31, %v3753_v31  ;;  %v3613_v43 = vmul.f32 %v5352_v46, %v3612_v0  ;;  %v4186_v31 = vunpack.c.l.bf16 %v3906_v28 }
 0x676   : > { %v2998_v0 = vadd.f32 %v2997_v39, %v2892_v14  ;;  %v3622_v41 = vor.u32 1.1754944e-38, %v3621_v12  ;;  %v5038_v39 = vmul.f32 -1.442695, %v7298_v59  ;;  %v7516_v12 = vadd.f32 1.0, %v5354_v15  ;;  %v3928_v14 = vpop.permute.xlu2 %3927 }
 0x677   : > { %v5356_v20 = vpop.eup %5355  ;;  %v5046_v17 = vmul.f32 -1.442695, %v3108_v25  ;;  %4035 = vperm.xlu1 %5277, %v3817_v23   ;;  %v3614_v29 = vadd.f32 %v5352_v46, %v3613_v43  ;;  %v7513_v23 = vadd.f32 %v7409_v51, %v3298_v62  ;;  %v3634_v62 = vand.u32 2147483647, %v7460_v2 }
 0x678   : > { %v5358_v55 = vpop.eup %5357  ;;  %v7504_v5 = vadd.f32 1.0, %v5356_v20  ;;  %vm3630_vm14 = vweird.f32 %v7460_v2  ;;  %vm3555_vm15 = vweird.f32 %v7516_v12  ;;  %vm3330_vm2 = vweird.f32 %v7481_v9 }
 0x679   : > { %v3626_v30 = vmul.f32 %v5358_v55, %v7460_v2  ;;  %5363 = vpow2.f32 %v5046_v17  ;;  %v3910_v26 = vpop.permute.xlu1 %3909  ;;  %v3618_v56 = vsel %vm3617_vm11, %v5352_v46, %v3614_v29  ;;  %v7508_v25 = vpop.eup %5359  ;;  %v8366_v46 = vunpack.c.l.bf16 %v6828_v6 }
 0x67a   : > { %5365 = vrcp.f32 %v7504_v5  ;;  %v3915_v18 = vperm.slane %v3910_v26, %v7398_v19  ;;  %v3623_v28 = vsel %vm3620_vm12, %v3622_v41, %v3618_v56  ;;  %v2893_v41 = vld [vmem:[%s8085_s5 + $0xe8] sm:$0xff]  ;;  %v3636_v26 = vand.u32 2147483648, %v7460_v2  ;;  %v7527_v59 = vpop.eup %5361 }
 0x67b   : > { %v3754_v43 = vadd.f32 1.0, %v3623_v28  ;;  %v3627_v20 = vsub.f32 1.0, %v3626_v30  ;;  %v7520_v54 = vmul.f32 %v4186_v31, %v8366_v46  ;;  %vm3631_vm13 = vweird.f32 %v5358_v55 }
 0x67c   : > { %v4187_v17 = vunpack.c.l.bf16 %v3915_v18  ;;  %v3110_v29 = vpop.f32.mrf.mxu3  ;;  %v8367_v30 = vunpack.c.h.bf16 %v6828_v6  ;;  %v3933_v18 = vperm.slane %v3928_v14, %v7398_v19  ;;  %vm3632_vm0 = vmor %vm3630_vm14, %vm3631_vm13  ;;  %v3637_v14 = vor.u32 1.1754944e-38, %v3636_v26  ;;  %v3003_v26 = vpop.f32.mrf.mxu2 }
 0x67d   : > { %v3111_v15 = vadd.f32 %v3110_v29, %v2998_v0  ;;  %v3818_v56 = vpack.c.bf16 %v3754_v43, %v3754_v43  ;;  %v3628_v28 = vmul.f32 %v5358_v55, %v3627_v20  ;;  %v3001_v0 = vadd.f32 %v3000_v44, %v2893_v41 }
 0x67e   : > { %v7531_v46 = vmul.f32 %v4186_v31, %v8367_v30  ;;  %v7536_v63 = vmul.f32 %v4187_v17, %v8368_v34  ;;  %v7540_v61 = vmul.f32 %v4187_v17, %v8369_v3  ;;  %vm3635_vm1 = vcmp.eq.f32.partialorder %v3634_v62, 8.507059e+37 }
 0x67f   : > { %v5364_v36 = vpop.eup %5363  ;;  %v5047_v48 = vmul.f32 -1.442695, %v3111_v15  ;;  %4044 = vperm.xlu0 %5276, %v3818_v56   ;;  %v3629_v43 = vadd.f32 %v5358_v55, %v3628_v28  ;;  %v4189_v2 = vunpack.c.l.bf16 %v3933_v18  ;;  %v5036_v29 = vmul.f32 -1.442695, %v7286_v21 }
 0x680   : > { %v5366_v6 = vpop.eup %5365  ;;  %v7544_v31 = vadd.f32 1.0, %v5364_v36  ;;  %v3649_v62 = vand.u32 2147483647, %v7504_v5  ;;  %v3651_v28 = vand.u32 2147483648, %v7504_v5  ;;  %v8370_v21 = vunpack.c.l.bf16 %v6848_v32 }
 0x681   : > { %v3641_v3 = vmul.f32 %v5366_v6, %v7504_v5  ;;  %5367 = vpow2.f32 %v5047_v48  ;;  %v3919_v44 = vpop.permute.xlu0 %3918  ;;  %v3633_v20 = vsel %vm3632_vm0, %v5358_v55, %v3629_v43  ;;  %v2894_v55 = vld [vmem:[%s8085_s5 + $0xf0] sm:$0xff]  ;;  %vm3646_vm3 = vweird.f32 %v5366_v6 }
 0x682   : > { %5369 = vrcp.f32 %v7544_v31  ;;  %v3924_v36 = vperm.slane %v3919_v44, %v7398_v19  ;;  %v3638_v17 = vsel %vm3635_vm1, %v3637_v14, %v3633_v20  ;;  %v8371_v14 = vunpack.c.h.bf16 %v6848_v32 }
 0x683   : > { %5371 = vpow2.f32 %v5038_v39  ;;  %v3755_v41 = vadd.f32 1.0, %v3638_v17  ;;  %v3642_v15 = vsub.f32 1.0, %v3641_v3  ;;  %v7563_v39 = vmul.f32 %v4189_v2, %v8370_v21 }
 0x684   : > { %5373 = vrcp.f32 %v7516_v12  ;;  %v4188_v48 = vunpack.c.l.bf16 %v3924_v36  ;;  %v3113_v56 = vpop.f32.mrf.mxu3  ;;  %v7567_v3 = vmul.f32 %v4189_v2, %v8371_v14  ;;  %v8372_v44 = vunpack.c.l.bf16 %v6840_v10 }
 0x685   : > { %v3114_v30 = vadd.f32 %v3113_v56, %v3001_v0  ;;  %v3819_v18 = vpack.c.bf16 %v3755_v41, %v3755_v41  ;;  %v3643_v43 = vmul.f32 %v5366_v6, %v3642_v15  ;;  %v8373_v36 = vunpack.c.h.bf16 %v6840_v10 }
 0x686   : > { %v7571_v20 = vmul.f32 %v4188_v48, %v8372_v44  ;;  %v3004_v15 = vadd.f32 %v3003_v26, %v2894_v55  ;;  %vm3645_vm4 = vweird.f32 %v7504_v5  ;;  %v3652_v32 = vor.u32 1.1754944e-38, %v3651_v28 }
 0x687   : > { %v7575_v17 = vmul.f32 %v4188_v48, %v8373_v36  ;;  %v5368_v0 = vpop.eup %5367  ;;  %v5048_v41 = vmul.f32 -1.442695, %v3114_v30  ;;  %4053 = vperm.xlu2 %5278, %v3819_v18   ;;  %v3644_v56 = vadd.f32 %v5366_v6, %v3643_v43  ;;  %vm3647_vm5 = vmor %vm3645_vm4, %vm3646_vm3  ;;  %vm3650_vm6 = vcmp.eq.f32.partialorder %v3649_v62, 8.507059e+37 }
 0x688   : > { %v5370_v21 = vpop.eup %5369  ;;  %v7578_v45 = vadd.f32 1.0, %v5368_v0  ;;  %v3326_v55 = vmul.f32 %v7527_v59, %v7481_v9  ;;  %v5040_v62 = vmul.f32 -1.442695, %v7312_v37  ;;  %v3664_v0 = vand.u32 2147483647, %v7544_v31  ;;  %v2895_v37 = vld [vmem:[%s8085_s5 + $0xf8] sm:$0xff] }
 0x689   : > { %v5372_v48 = vpop.eup %5371  ;;  %v3656_v14 = vmul.f32 %v5370_v21, %v7544_v31  ;;  %5375 = vpow2.f32 %v5048_v41  ;;  %v3648_v30 = vsel %vm3647_vm5, %v5366_v6, %v3644_v56  ;;  %v3311_v6 = vmul.f32 %v7508_v25, %v7430_v4 }
 0x68a   : > { %v7585_v26 = vpop.eup %5373  ;;  %5377 = vrcp.f32 %v7578_v45  ;;  %v3653_v5 = vsel %vm3650_vm6, %v3652_v32, %v3648_v30  ;;  %v3666_v41 = vand.u32 2147483648, %v7544_v31  ;;  %vm3661_vm8 = vweird.f32 %v5370_v21 }
 0x68b   : > { %v3756_v18 = vadd.f32 1.0, %v3653_v5  ;;  %v3657_v43 = vsub.f32 1.0, %v3656_v14  ;;  %5379 = vpow2.f32 %v5036_v29  ;;  %v3006_v14 = vpop.f32.mrf.mxu2  ;;  %v5035_v34 = vmul.f32 -1.442695, %v7280_v1 }
 0x68c   : > { %v3116_v36 = vpop.f32.mrf.mxu3  ;;  %v3327_v10 = vsub.f32 1.0, %v3326_v55  ;;  %v3312_v2 = vsub.f32 1.0, %v3311_v6  ;;  %5381 = vpow2.f32 %v5040_v62  ;;  %vm3660_vm9 = vweird.f32 %v7544_v31 }
 0x68d   : > { %v3117_v32 = vadd.f32 %v3116_v36, %v3004_v15  ;;  %v3820_v30 = vpack.c.bf16 %v3756_v18, %v3756_v18  ;;  %v3658_v5 = vmul.f32 %v5370_v21, %v3657_v43  ;;  %v3551_v18 = vmul.f32 %v7585_v26, %v7516_v12  ;;  %vm3662_vm10 = vmor %vm3660_vm9, %vm3661_vm8 }
 0x68e   : > { %v3007_v43 = vadd.f32 %v3006_v14, %v2895_v37  ;;  %v3667_v1 = vor.u32 1.1754944e-38, %v3666_v41  ;;  %vm3665_vm11 = vcmp.eq.f32.partialorder %v3664_v0, 8.507059e+37  ;;  %v7626_v41 = vmul.f32 %v7508_v25, %v3312_v2 }
 0x68f   : > { %v5376_v44 = vpop.eup %5375  ;;  %v5049_v42 = vmul.f32 -1.442695, %v3117_v32  ;;  %4062 = vperm.xlu1 %5277, %v3820_v30   ;;  %v3659_v56 = vadd.f32 %v5370_v21, %v3658_v5  ;;  %v5037_v32 = vmul.f32 -1.442695, %v7292_v58  ;;  %v3328_v30 = vmul.f32 %v7527_v59, %v3327_v10 }
 0x690   : > { %v5378_v15 = vpop.eup %5377  ;;  %v7616_v36 = vadd.f32 1.0, %v5376_v44  ;;  %v7623_v5 = vadd.f32 1.0, %v5372_v48  ;;  %v3681_v0 = vand.u32 2147483648, %v7578_v45  ;;  %v3552_v58 = vsub.f32 1.0, %v3551_v18 }
 0x691   : > { %v3671_v55 = vmul.f32 %v5378_v15, %v7578_v45  ;;  %5383 = vpow2.f32 %v5049_v42  ;;  %v3663_v6 = vsel %vm3662_vm10, %v5370_v21, %v3659_v56  ;;  %v5380_v62 = vpop.eup %5379  ;;  %v3937_v44 = vpop.permute.xlu1 %3936  ;;  %v3679_v21 = vand.u32 2147483647, %v7578_v45 }
 0x692   : > { %5385 = vrcp.f32 %v7616_v36  ;;  %v3668_v31 = vsel %vm3665_vm11, %v3667_v1, %v3663_v6  ;;  %v5382_v56 = vpop.eup %5381  ;;  %vm3676_vm12 = vweird.f32 %v5378_v15  ;;  %v7630_v10 = vadd.f32 1.0, %v5380_v62 }
 0x693   : > { %v3757_v37 = vadd.f32 1.0, %v3668_v31  ;;  %v3672_v14 = vsub.f32 1.0, %v3671_v55  ;;  %5387 = vpow2.f32 %v5035_v34  ;;  %v3942_v48 = vperm.slane %v3937_v44, %v7398_v19 }
 0x694   : > { %v3119_v42 = vpop.f32.mrf.mxu3  ;;  %5389 = vpow2.f32 %v5037_v32  ;;  %v7634_v2 = vadd.f32 %v7527_v59, %v3328_v30  ;;  %vm3675_vm13 = vweird.f32 %v7578_v45  ;;  %v3682_v62 = vor.u32 1.1754944e-38, %v3681_v0 }
 0x695   : > { %v3120_v29 = vadd.f32 %v3119_v42, %v3007_v43  ;;  %v3821_v1 = vpack.c.bf16 %v3757_v37, %v3757_v37  ;;  %v3673_v6 = vmul.f32 %v5378_v15, %v3672_v14  ;;  %5391 = vrcp.f32 %v7623_v5  ;;  %vm3677_vm14 = vmor %vm3675_vm13, %vm3676_vm12 }
 0x696   : > { %v3553_v32 = vmul.f32 %v7585_v26, %v3552_v58  ;;  %vm3331_vm0 = vweird.f32 %v7527_v59  ;;  %vm3680_vm1 = vcmp.eq.f32.partialorder %v3679_v21, 8.507059e+37  ;;  %v4190_v45 = vunpack.c.l.bf16 %v3942_v48 }
 0x697   : > { %v5384_v34 = vpop.eup %5383  ;;  %v5050_v55 = vmul.f32 -1.442695, %v3120_v29  ;;  %4071 = vperm.xlu0 %5276, %v3821_v1   ;;  %v3674_v31 = vadd.f32 %v5378_v15, %v3673_v6  ;;  %v7647_v0 = vadd.f32 1.0, %v5382_v56  ;;  %v3561_v6 = vand.u32 2147483648, %v7516_v12 }
 0x698   : > { %v5386_v18 = vpop.eup %5385  ;;  %v7638_v43 = vadd.f32 1.0, %v5384_v34  ;;  %v3554_v21 = vadd.f32 %v7585_v26, %v3553_v32  ;;  %vm3556_vm3 = vweird.f32 %v7585_v26  ;;  %vm3316_vm4 = vweird.f32 %v7508_v25 }
 0x699   : > { %v3686_v30 = vmul.f32 %v5386_v18, %v7616_v36  ;;  %5393 = vpow2.f32 %v5050_v55  ;;  %v3946_v44 = vpop.permute.xlu0 %3945  ;;  %v3678_v29 = vsel %vm3677_vm14, %v5378_v15, %v3674_v31  ;;  %v5388_v37 = vpop.eup %5387  ;;  %v3696_v15 = vand.u32 2147483648, %v7616_v36  ;;  %vm7686_vm10 = vmor %vm3555_vm15, %vm3556_vm3 }
 0x69a   : > { %5395 = vrcp.f32 %v7638_v43  ;;  %v3951_v14 = vperm.slane %v3946_v44, %v7398_v19  ;;  %v3683_v42 = vsel %vm3680_vm1, %v3682_v62, %v3678_v29  ;;  %v5390_v34 = vpop.eup %5389  ;;  %vm3691_vm5 = vweird.f32 %v5386_v18  ;;  %vm7712_vm14 = vmor %vm3330_vm2, %vm3331_vm0 }
 0x69b   : > { %v3758_v58 = vadd.f32 1.0, %v3683_v42  ;;  %v3687_v1 = vsub.f32 1.0, %v3686_v30  ;;  %v7654_v48 = vpop.eup %5391  ;;  %v3694_v56 = vand.u32 2147483647, %v7616_v36  ;;  %v8376_v30 = vunpack.c.l.bf16 %v6852_v7 }
 0x69c   : > { %v4191_v55 = vunpack.c.l.bf16 %v3951_v14  ;;  %v8377_v29 = vunpack.c.h.bf16 %v6852_v7  ;;  %v8378_v32 = vunpack.c.l.bf16 %v6860_v22  ;;  %vm3315_vm8 = vweird.f32 %v7430_v4 }
 0x69d   : > { %v3822_v31 = vpack.c.bf16 %v3758_v58, %v3758_v58  ;;  %v3688_v62 = vmul.f32 %v5386_v18, %v3687_v1  ;;  %v7659_v44 = vmul.f32 %v4190_v45, %v8376_v30  ;;  %v8380_v58 = vand.u32 2147483647, %v7362_v11  ;;  %vm7748_vm2 = vmor %vm3315_vm8, %vm3316_vm4 }
 0x69e   : > { %v7663_v14 = vmul.f32 %v4190_v45, %v8377_v29  ;;  %v7667_v42 = vmul.f32 %v4191_v55, %v8378_v32  ;;  %v7671_v35 = vmul.f32 %v4191_v55, %v8379_v27  ;;  %5397 = vrcp.f32 %v7647_v0 }
 0x69f   : > { %vm7675_vm6 = vcmp.eq.f32.partialorder %v8380_v58, 8.507059e+37  ;;  %v5394_v30 = vpop.eup %5393  ;;  %4080 = vperm.xlu2 %5278, %v3822_v31   ;;  %v3689_v7 = vadd.f32 %v5386_v18, %v3688_v62  ;;  %vm3690_vm9 = vweird.f32 %v7616_v36  ;;  %v3559_v27 = vand.u32 2147483647, %v7516_v12 }
 0x6a0   : > { %v5396_v11 = vpop.eup %5395  ;;  %v7691_v45 = vadd.f32 1.0, %v5394_v30  ;;  %vm3692_vm11 = vmor %vm3690_vm9, %vm3691_vm5  ;;  %v3697_v55 = vor.u32 1.1754944e-38, %v3696_v15  ;;  %vm3695_vm12 = vcmp.eq.f32.partialorder %v3694_v56, 8.507059e+37  ;;  %v3558_v12 = vsel %vm7686_vm10, %v7585_v26, %v3554_v21 }
 0x6a1   : > { %v3701_v62 = vmul.f32 %v5396_v11, %v7638_v43  ;;  %v3693_v29 = vsel %vm3692_vm11, %v5386_v18, %v3689_v7  ;;  %v3562_v58 = vor.u32 1.1754944e-38, %v3561_v6  ;;  %v7705_v15 = vadd.f32 %v7508_v25, %v7626_v41  ;;  %v3955_v30 = vpop.permute.xlu0 %3954 }
 0x6a2   : > { %5399 = vrcp.f32 %v7691_v45  ;;  %v3698_v32 = vsel %vm3695_vm12, %v3697_v55, %v3693_v29  ;;  %vm3560_vm13 = vcmp.eq.f32.partialorder %v3559_v27, 8.507059e+37  ;;  %v7716_v18 = vadd.f32 1.0, %v5388_v37 }
 0x6a3   : > { %5401 = vrcp.f32 %v7630_v10  ;;  %v3759_v36 = vadd.f32 1.0, %v3698_v32  ;;  %v3702_v31 = vsub.f32 1.0, %v3701_v62  ;;  %v3711_v6 = vand.u32 2147483648, %v7638_v43 }
 0x6a4   : > { %v3563_v41 = vsel %vm3560_vm13, %v3562_v58, %v3558_v12  ;;  %v3333_v21 = vsel %vm7712_vm14, %v7527_v59, %v7634_v2  ;;  %v7723_v56 = vpop.eup %5397  ;;  %vm3706_vm15 = vweird.f32 %v5396_v11  ;;  %v3709_v27 = vand.u32 2147483647, %v7638_v43 }
 0x6a5   : > { %v3823_v7 = vpack.c.bf16 %v3759_v36, %v3759_v36  ;;  %v3703_v22 = vmul.f32 %v5396_v11, %v3702_v31  ;;  %v7726_v55 = vadd.f32 1.0, %v5390_v34  ;;  %v3960_v37 = vperm.slane %v3955_v30, %v7398_v19 }
 0x6a6   : > { %v8387_v62 = vand.u32 2147483648, %v7481_v9  ;;  %v8388_v12 = vand.u32 2147483648, %v7430_v4  ;;  %vm3705_vm0 = vweird.f32 %v7638_v43  ;;  %v8389_v59 = vand.u32 2147483647, %v7481_v9 }
 0x6a7   : > { %4089 = vperm.xlu1 %5277, %v3823_v7   ;;  %v3704_v58 = vadd.f32 %v5396_v11, %v3703_v22  ;;  %v8390_v2 = vsel %vm7594_vm7, %v7409_v51, %v7513_v23  ;;  %vm7752_vm3 = vmor %vm3705_vm0, %vm3706_vm15  ;;  %v3712_v28 = vor.u32 1.1754944e-38, %v3711_v6  ;;  %v3750_v36 = vadd.f32 1.0, %v3563_v41 }
 0x6a8   : > { %v3337_v29 = vor.u32 1.1754944e-38, %v8387_v62  ;;  %v3322_v32 = vor.u32 1.1754944e-38, %v8388_v12  ;;  %vm3335_vm1 = vcmp.eq.f32.partialorder %v8389_v59, 8.507059e+37  ;;  %v3308_v34 = vsel %vm7675_vm6, %v7471_v50, %v8390_v2  ;;  %v5400_v43 = vpop.eup %5399 }
 0x6a9   : > { %v3318_v50 = vsel %vm7748_vm2, %v7508_v25, %v7705_v15  ;;  %v7760_v23 = vpop.eup %5401  ;;  %5403 = vrcp.f32 %v7716_v18  ;;  %v3716_v1 = vmul.f32 %v5400_v43, %v7691_v45  ;;  %v3964_v30 = vpop.permute.xlu1 %3963  ;;  %v3708_v26 = vsel %vm7752_vm3, %v5396_v11, %v3704_v58 }
 0x6aa   : > { %v3338_v51 = vsel %vm3335_vm1, %v3337_v29, %v3333_v21  ;;  %vm3710_vm7 = vcmp.eq.f32.partialorder %v3709_v27, 8.507059e+37  ;;  %v8395_v6 = vand.u32 2147483647, %v7430_v4  ;;  %5405 = vrcp.f32 %v7726_v55 }
 0x6ab   : > { %v4192_v25 = vunpack.c.l.bf16 %v3960_v37  ;;  %v3969_v15 = vperm.slane %v3964_v30, %v7398_v19  ;;  %v3713_v21 = vsel %vm3710_vm7, %v3712_v28, %v3708_v26  ;;  %v3536_v7 = vmul.f32 %v7654_v48, %v7623_v5 }
 0x6ac   : > { %vm7768_vm4 = vcmp.eq.f32.partialorder %v8395_v6, 8.507059e+37  ;;  %v3566_v22 = vmul.f32 %v7723_v56, %v7647_v0  ;;  %v3760_v11 = vadd.f32 1.0, %v3713_v21  ;;  %v3717_v27 = vsub.f32 1.0, %v3716_v1 }
 0x6ad   : > { %v3506_v4 = vmul.f32 %v7760_v23, %v7630_v10  ;;  %v4193_v62 = vunpack.c.l.bf16 %v3969_v15  ;;  %v3814_v29 = vpack.c.bf16 %v3750_v36, %v3750_v36  ;;  %v3726_v12 = vand.u32 2147483648, %v7691_v45 }
 0x6ae   : > { %v3824_v58 = vpack.c.bf16 %v3760_v11, %v3760_v11  ;;  %v3718_v37 = vmul.f32 %v5400_v43, %v3717_v27  ;;  %vm3721_vm5 = vweird.f32 %v5400_v43  ;;  %v3724_v59 = vand.u32 2147483647, %v7691_v45 }
 0x6af   : > { %v8398_v2 = vunpack.c.l.bf16 %v6864_v38  ;;  %v8399_v9 = vunpack.c.h.bf16 %v6864_v38  ;;  %v8400_v1 = vunpack.c.l.bf16 %v6868_v53  ;;  %v8401_v26 = vunpack.c.h.bf16 %v6868_v53  ;;  %v7790_v36 = vpop.eup %5403  ;;  %4008 = vperm.xlu1 %5277, %v3814_v29  }
 0x6b0   : > { %4098 = vperm.xlu2 %5278, %v3824_v58   ;;  %v3719_v15 = vadd.f32 %v5400_v43, %v3718_v37  ;;  %vm3720_vm6 = vweird.f32 %v7691_v45  ;;  %v3567_v21 = vsub.f32 1.0, %v3566_v22  ;;  %v3537_v11 = vsub.f32 1.0, %v3536_v7  ;;  %v7793_v27 = vpop.eup %5405 }
 0x6b1   : > { %v4238_v31 = vmul.f32 %v4192_v25, %v8398_v2  ;;  %v4239_v28 = vmul.f32 %v4192_v25, %v8399_v9  ;;  %v4240_v30 = vmul.f32 %v4193_v62, %v8400_v1  ;;  %v4241_v6 = vmul.f32 %v4193_v62, %v8401_v26  ;;  %vm3722_vm8 = vmor %vm3720_vm6, %vm3721_vm5 }
 0x6b2   : > { %v3727_v25 = vor.u32 1.1754944e-38, %v3726_v12  ;;  %v3507_v9 = vsub.f32 1.0, %v3506_v4  ;;  %v3723_v1 = vsel %vm3722_vm8, %v5400_v43, %v3719_v15  ;;  %vm3725_vm9 = vcmp.eq.f32.partialorder %v3724_v59, 8.507059e+37 }
 0x6b3   : > { %v4288_v2 = vpack.c.bf16 %v4240_v30, %v4238_v31  ;;  %v4289_v38 = vpack.c.bf16 %v4241_v6, %v4239_v28  ;;  %v3735_v53 = vadd.f32 1.0, %v3338_v51  ;;  %v3733_v62 = vadd.f32 1.0, %v3308_v34 }
 0x6b4   : > { %v3491_v29 = vmul.f32 %v7790_v36, %v7716_v18  ;;  %v3728_v45 = vsel %vm3725_vm9, %v3727_v25, %v3723_v1  ;;  %v3323_v7 = vsel %vm7768_vm4, %v3322_v32, %v3318_v50  ;;  %v3521_v22 = vmul.f32 %v7793_v27, %v7726_v55 }
 0x6b5   : > { %4320 = vmatpush.bf16.msrb.mxu0 %v4288_v2  ;;  %4346 = vmatpush.bf16.msrb.mxu2 %v4289_v38  ;;  %v3761_v58 = vadd.f32 1.0, %v3728_v45  ;;  %v3568_v12 = vmul.f32 %v7723_v56, %v3567_v21  ;;  %v3538_v43 = vmul.f32 %v7654_v48, %v3537_v11  ;;  %v3730_v51 = vadd.f32 1.0, %v7403_v13 }
 0x6b6   : > { %v3508_v34 = vmul.f32 %v7760_v23, %v3507_v9  ;;  %v7808_v4 = vmul.f32 %v7424_v52, %v7375_v8  ;;  %v3799_v59 = vpack.c.bf16 %v3735_v53, %v3735_v53  ;;  %v3797_v41 = vpack.c.bf16 %v3733_v62, %v3733_v62 }
 0x6b7   : > { %v3825_v37 = vpack.c.bf16 %v3761_v58, %v3761_v58  ;;  %v3732_v32 = vadd.f32 1.0, %v7500_v57  ;;  %v8402_v50 = vpack.c.bf16 %v7667_v42, %v7659_v44  ;;  %v8403_v31 = vpack.c.bf16 %v7671_v35, %v7663_v14 }
 0x6b8   : > { %v3734_v13 = vadd.f32 1.0, %v3323_v7  ;;  %vm3541_vm10 = vweird.f32 %v7654_v48  ;;  %vm3511_vm11 = vweird.f32 %v7760_v23  ;;  %v3492_v28 = vsub.f32 1.0, %v3491_v29  ;;  %3873 = vperm.xlu2 %5278, %v3799_v59   ;;  %3855 = vperm.xlu1 %5277, %v3797_v41  }
 0x6b9   : > { %4321 = vmatpush.bf16.msrb.mxu0 %v8402_v50  ;;  %4347 = vmatpush.bf16.msrb.mxu2 %v8403_v31  ;;  %v3569_v30 = vadd.f32 %v7723_v56, %v3568_v12  ;;  %vm3571_vm12 = vweird.f32 %v7723_v56  ;;  %v3539_v57 = vadd.f32 %v7654_v48, %v3538_v43  ;;  %v3522_v44 = vsub.f32 1.0, %v3521_v22 }
 0x6ba   : > { %4107 = vperm.xlu0 %5276, %v3825_v37   ;;  %v3576_v42 = vand.u32 2147483648, %v7647_v0  ;;  %vm3540_vm13 = vweird.f32 %v7623_v5  ;;  %v3546_v35 = vand.u32 2147483648, %v7623_v5  ;;  %v3509_v14 = vadd.f32 %v7760_v23, %v3508_v34 }
 0x6bb   : > { %vm3570_vm14 = vweird.f32 %v7647_v0  ;;  %v3574_v26 = vand.u32 2147483647, %v7647_v0  ;;  %vm7830_vm15 = vmor %vm3540_vm13, %vm3541_vm10  ;;  %v3544_v15 = vand.u32 2147483647, %v7623_v5  ;;  %v3516_v21 = vand.u32 2147483648, %v7630_v10 }
 0x6bc   : > { %v8406_v11 = vpack.c.bf16 %v7563_v39, %v7571_v20  ;;  %v8407_v2 = vpack.c.bf16 %v7567_v3, %v7575_v17  ;;  %v3794_v38 = vpack.c.bf16 %v3730_v51, %v3730_v51  ;;  %vm7844_vm0 = vmor %vm3570_vm14, %vm3571_vm12  ;;  %vm3510_vm1 = vweird.f32 %v7630_v10 }
 0x6bd   : > { %v3514_v5 = vand.u32 2147483647, %v7630_v10  ;;  %v3267_v25 = vsub.f32 1.0, %v7808_v4  ;;  %v3573_v39 = vsel %vm7844_vm0, %v7723_v56, %v3569_v30  ;;  %v3543_v3 = vsel %vm7830_vm15, %v7654_v48, %v3539_v57  ;;  %vm7859_vm2 = vmor %vm3510_vm1, %vm3511_vm11 }
 0x6be   : > { %4322 = vmatpush.bf16.msrb.mxu0 %v8406_v11  ;;  %4348 = vmatpush.bf16.msrb.mxu2 %v8407_v2  ;;  %v3523_v17 = vmul.f32 %v7793_v27, %v3522_v44  ;;  %v3493_v10 = vmul.f32 %v7790_v36, %v3492_v28  ;;  %v3796_v9 = vpack.c.bf16 %v3732_v32, %v3732_v32  ;;  %v3577_v1 = vor.u32 1.1754944e-38, %v3576_v42 }
 0x6bf   : > { %v3547_v53 = vor.u32 1.1754944e-38, %v3546_v35  ;;  %v3513_v56 = vsel %vm7859_vm2, %v7760_v23, %v3509_v14  ;;  %v3798_v62 = vpack.c.bf16 %v3734_v13, %v3734_v13  ;;  %vm3575_vm3 = vcmp.eq.f32.partialorder %v3574_v26, 8.507059e+37 }
 0x6c0   : > { %vm3545_vm7 = vcmp.eq.f32.partialorder %v3544_v15, 8.507059e+37  ;;  %v3517_v48 = vor.u32 1.1754944e-38, %v3516_v21  ;;  %v8412_v29 = vpack.c.bf16 %v7536_v63, %v7520_v54  ;;  %v8413_v45 = vpack.c.bf16 %v7540_v61, %v7531_v46  ;;  %3846 = vperm.xlu2 %5278, %v3796_v9   ;;  %3828 = vperm.xlu1 %5277, %v3794_v38   ;;  %v4307_v15 = vld [vmem:[%s8087_s7] sm:$0xff] }
 0x6c1   : > { %v3578_v7 = vsel %vm3575_vm3, %v3577_v1, %v3573_v39  ;;  %v3548_v22 = vsel %vm3545_vm7, %v3547_v53, %v3543_v3  ;;  %vm3515_vm4 = vcmp.eq.f32.partialorder %v3514_v5, 8.507059e+37  ;;  %vm3496_vm5 = vweird.f32 %v7790_v36 }
 0x6c2   : > { %4323 = vmatpush.bf16.msrb.mxu0 %v8412_v29  ;;  %4349 = vmatpush.bf16.msrb.mxu2 %v8413_v45  ;;  %v3518_v23 = vsel %vm3515_vm4, %v3517_v48, %v3513_v56  ;;  %v3524_v58 = vadd.f32 %v7793_v27, %v3523_v17  ;;  %vm3526_vm6 = vweird.f32 %v7793_v27  ;;  %v3494_v12 = vadd.f32 %v7790_v36, %v3493_v10  ;;  %v8418_v29 = vld [vmem:[#allocation52_spill] sm:$0xff] }
 0x6c3   : > { %3864 = vperm.xlu0 %5276, %v3798_v62   ;;  %v3531_v63 = vand.u32 2147483648, %v7726_v55  ;;  %vm3495_vm8 = vweird.f32 %v7716_v18  ;;  %v3499_v61 = vand.u32 2147483647, %v7716_v18  ;;  %v3501_v54 = vand.u32 2147483648, %v7716_v18 }
 0x6c4   : > { %v3751_v46 = vadd.f32 1.0, %v3578_v7  ;;  %v3749_v43 = vadd.f32 1.0, %v3548_v22  ;;  %vm3525_vm9 = vweird.f32 %v7726_v55  ;;  %v3529_v51 = vand.u32 2147483647, %v7726_v55  ;;  %vm7886_vm10 = vmor %vm3495_vm8, %vm3496_vm5 }
 0x6c5   : > { %v8416_v4 = vpack.c.bf16 %v7453_v33, %v7445_v47  ;;  %v8417_v37 = vpack.c.bf16 %v7457_v60, %v7449_v40  ;;  %v3747_v18 = vadd.f32 1.0, %v3518_v23  ;;  %vm3527_vm11 = vmor %vm3525_vm9, %vm3526_vm6  ;;  %v3498_v59 = vsel %vm7886_vm10, %v7790_v36, %v3494_v12 }
 0x6c6   : > { %v3528_v55 = vsel %vm3527_vm11, %v7793_v27, %v3524_v58  ;;  %v3268_v41 = vmul.f32 %v7424_v52, %v3267_v25  ;;  %v3532_v32 = vor.u32 1.1754944e-38, %v3531_v63  ;;  %v3502_v50 = vor.u32 1.1754944e-38, %v3501_v54 }
 0x6c7   : > { %4324 = vmatpush.bf16.msrb.mxu0 %v8416_v4  ;;  %4350 = vmatpush.bf16.msrb.mxu2 %v8417_v37  ;;  %v3815_v47 = vpack.c.bf16 %v3751_v46, %v3751_v46  ;;  %v3813_v33 = vpack.c.bf16 %v3749_v43, %v3749_v43  ;;  %vm3530_vm12 = vcmp.eq.f32.partialorder %v3529_v51, 8.507059e+37  ;;  %vm3500_vm13 = vcmp.eq.f32.partialorder %v3499_v61, 8.507059e+37 }
 0x6c8   : > { %v3811_v40 = vpack.c.bf16 %v3747_v18, %v3747_v18  ;;  %v3533_v60 = vsel %vm3530_vm12, %v3532_v32, %v3528_v55  ;;  %v3503_v31 = vsel %vm3500_vm13, %v3502_v50, %v3498_v59  ;;  %v3269_v13 = vadd.f32 %v7424_v52, %v3268_v41  ;;  %v8419_v18 = vld [vmem:[#allocation61_spill] sm:$0xff]  ;;  %v8420_v32 = vld [vmem:[#allocation54_spill] sm:$0xff] }
 0x6c9   : > { %3999 = vperm.xlu2 %5278, %v3813_v33   ;;  %vm3271_vm14 = vweird.f32 %v7424_v52  ;;  %v3276_v36 = vand.u32 2147483648, %v7375_v8  ;;  %v3748_v27 = vadd.f32 1.0, %v3533_v60  ;;  %v3746_v28 = vadd.f32 1.0, %v3503_v31  ;;  %v4027_v21 = vpop.permute.xlu2 %4026 }
 0x6ca   : > { %3981 = vperm.xlu1 %5277, %v3811_v40   ;;  %vm3270_vm15 = vweird.f32 %v7375_v8  ;;  %v3274_v30 = vand.u32 2147483647, %v7375_v8  ;;  %v4032_v8 = vperm.slane %v4027_v21, %v7398_v19  ;;  %v4158_v38 = vunpack.c.l.bf16 %v6993_v16 }
 0x6cb   : > { %4017 = vperm.xlu0 %5276, %v3815_v47   ;;  %vm3272_vm0 = vmor %vm3270_vm15, %vm3271_vm14  ;;  %v3277_v44 = vor.u32 1.1754944e-38, %v3276_v36  ;;  %v3812_v42 = vpack.c.bf16 %v3748_v27, %v3748_v27  ;;  %v3810_v35 = vpack.c.bf16 %v3746_v28, %v3746_v28  ;;  %v4159_v5 = vunpack.c.h.bf16 %v6993_v16 }
 0x6cc   : > { %v3273_v57 = vsel %vm3272_vm0, %v7424_v52, %v3269_v13  ;;  %vm3275_vm1 = vcmp.eq.f32.partialorder %v3274_v30, 8.507059e+37  ;;  %v4200_v11 = vunpack.c.l.bf16 %v4032_v8  ;;  %v4160_v25 = vunpack.c.l.bf16 %v6998_v49 }
 0x6cd   : > { %v3278_v14 = vsel %vm3275_vm1, %v3277_v44, %v3273_v57  ;;  %v4161_v39 = vunpack.c.h.bf16 %v6998_v49  ;;  %v4162_v48 = vunpack.c.l.bf16 %v7003_v24  ;;  %v4164_v45 = vunpack.c.l.bf16 %v8418_v29 }
 0x6ce   : > { %v3731_v26 = vadd.f32 1.0, %v3278_v14  ;;  %v7918_v20 = vmul.f32 %v4200_v11, %v4158_v38  ;;  %v7920_v17 = vmul.f32 %v4200_v11, %v4159_v5  ;;  %v4165_v7 = vunpack.c.h.bf16 %v8418_v29 }
 0x6cf   : > { %v4163_v22 = vunpack.c.h.bf16 %v7003_v24  ;;  %v4166_v55 = vunpack.c.l.bf16 %v8419_v18  ;;  %v4167_v41 = vunpack.c.h.bf16 %v8419_v18  ;;  %v4168_v50 = vunpack.c.l.bf16 %v8420_v32 }
 0x6d0   : > { %v3795_v6 = vpack.c.bf16 %v3731_v26, %v3731_v26  ;;  %v4169_v47 = vunpack.c.h.bf16 %v8420_v32 }
 0x6d1   : > { %3972 = vperm.xlu2 %5278, %v3810_v35   ;;  %v8421_v35 = vld [vmem:[#allocation55_spill] sm:$0xff] }
 0x6d2   : > { %v4170_v14 = vunpack.c.l.bf16 %v8421_v35  ;;  %v4171_v26 = vunpack.c.h.bf16 %v8421_v35 }
 0x6d3   : > { %3990 = vperm.xlu0 %5276, %v3812_v42  }
 0x6db   : > { %3837 = vperm.xlu0 %5276, %v3795_v6   ;;  %v8422_v6 = vld [vmem:[#allocation56_spill] sm:$0xff] }
 0x6dc   : > { %v4173_v21 = vunpack.c.h.bf16 %v8422_v6 }
 0x6e1   : > { %v4054_v0 = vpop.permute.xlu2 %4053 }
 0x6e2   : > { %v4059_v10 = vperm.slane %v4054_v0, %v7398_v19 }
 0x6e3   : > { %4310 = vperm.xlu0 %5276, %v4307_v15   ;;  %v4172_v15 = vunpack.c.l.bf16 %v8422_v6 }
 0x6e4   : > { %v4203_v62 = vunpack.c.l.bf16 %v4059_v10 }
 0x6e6   : > { %v7936_v58 = vmul.f32 %v4203_v62, %v4164_v45  ;;  %v7938_v12 = vmul.f32 %v4203_v62, %v4165_v7 }
 0x6e9   : > { %v4036_v52 = vpop.permute.xlu1 %4035 }
 0x6ea   : > { %v4041_v2 = vperm.slane %v4036_v52, %v7398_v19 }
 0x6ec   : > { %v4201_v3 = vunpack.c.l.bf16 %v4041_v2 }
 0x6ee   : > { %v7923_v9 = vmul.f32 %v4201_v3, %v4160_v25  ;;  %v7925_v1 = vmul.f32 %v4201_v3, %v4161_v39 }
 0x6f0   : > { %v4296_v53 = vpack.c.bf16 %v7923_v9, %v7918_v20  ;;  %v4297_v16 = vpack.c.bf16 %v7925_v1, %v7920_v17  ;;  %v4306_v17 = vld [vmem:[%s8086_s6] sm:$0xff] }
 0x6f1   : > { %v4045_v56 = vpop.permute.xlu0 %4044 }
 0x6f2   : > { %v4050_v49 = vperm.slane %v4045_v56, %v7398_v19 }
 0x6f4   : > { %v4202_v23 = vunpack.c.l.bf16 %v4050_v49 }
 0x6f6   : > { %v7940_v63 = vmul.f32 %v4202_v23, %v4162_v48  ;;  %v7942_v61 = vmul.f32 %v4202_v23, %v4163_v22  ;;  %v8423_v48 = vld [vmem:[#allocation25_spill] sm:$0xff] }
 0x6f7   : > { %v4118_v29 = vunpack.c.l.bf16 %v8423_v48  ;;  %v8424_v22 = vld [vmem:[#allocation57_spill] sm:$0xff] }
 0x6f8   : > { %v4298_v54 = vpack.c.bf16 %v7936_v58, %v7940_v63  ;;  %v4299_v46 = vpack.c.bf16 %v7938_v12, %v7942_v61  ;;  %v4174_v23 = vunpack.c.l.bf16 %v8424_v22  ;;  %v8433_v58 = vld [vmem:[#allocation49_spill] sm:$0xff]  ;;  %v8434_v61 = vld [vmem:[#allocation42_spill] sm:$0xff] }
 0x6f9   : > { %v4081_v43 = vpop.permute.xlu2 %4080  ;;  %v4152_v63 = vunpack.c.l.bf16 %v8433_v58  ;;  %v4153_v12 = vunpack.c.h.bf16 %v8433_v58 }
 0x6fa   : > { %v4086_v30 = vperm.slane %v4081_v43, %v7398_v19  ;;  %v4119_v43 = vunpack.c.h.bf16 %v8423_v48 }
 0x6fc   : > { %v4206_v44 = vunpack.c.l.bf16 %v4086_v30 }
 0x6fe   : > { %v4266_v11 = vmul.f32 %v4206_v44, %v4170_v14  ;;  %v4267_v52 = vmul.f32 %v4206_v44, %v4171_v26 }
 0x701   : > { %v4063_v51 = vpop.permute.xlu1 %4062 }
 0x702   : > { %v4068_v34 = vperm.slane %v4063_v51, %v7398_v19 }
 0x704   : > { %v4204_v4 = vunpack.c.l.bf16 %v4068_v34 }
 0x706   : > { %v7954_v40 = vmul.f32 %v4204_v4, %v4166_v55  ;;  %v7956_v60 = vmul.f32 %v4204_v4, %v4167_v41  ;;  %v8425_v4 = vld [vmem:[#allocation58_spill] sm:$0xff] }
 0x707   : > { %v4177_v18 = vunpack.c.h.bf16 %v8425_v4  ;;  %v8426_v41 = vld [vmem:[#allocation30_spill] sm:$0xff] }
 0x708   : > { %v4120_v32 = vunpack.c.l.bf16 %v8426_v41 }
 0x709   : > { %v4072_v24 = vpop.permute.xlu0 %4071 }
 0x70a   : > { %v4077_v37 = vperm.slane %v4072_v24, %v7398_v19  ;;  %v4099_v59 = vpop.permute.xlu2 %4098  ;;  %v4175_v24 = vunpack.c.h.bf16 %v8424_v22 }
 0x70b   : > { %v4104_v3 = vperm.slane %v4099_v59, %v7398_v19 }
 0x70c   : > { %v4205_v33 = vunpack.c.l.bf16 %v4077_v37  ;;  %v4176_v37 = vunpack.c.l.bf16 %v8425_v4 }
 0x70d   : > { %v4208_v49 = vunpack.c.l.bf16 %v4104_v3 }
 0x70e   : > { %v7958_v31 = vmul.f32 %v4205_v33, %v4168_v50  ;;  %v7960_v13 = vmul.f32 %v4205_v33, %v4169_v47  ;;  %v4121_v50 = vunpack.c.h.bf16 %v8426_v41 }
 0x70f   : > { %v4270_v33 = vmul.f32 %v4208_v49, %v4174_v23  ;;  %v4271_v30 = vmul.f32 %v4208_v49, %v4175_v24 }
 0x710   : > { %v4300_v36 = vpack.c.bf16 %v7958_v31, %v7954_v40  ;;  %v4301_v27 = vpack.c.bf16 %v7960_v13, %v7956_v60 }
 0x712   : > { %v3874_v28 = vpop.permute.xlu2 %3873 }
 0x713   : > { %v3879_v59 = vperm.slane %v3874_v28, %v7398_v19 }
 0x719   : > { %v4090_v57 = vpop.permute.xlu1 %4089 }
 0x71a   : > { %v4095_v42 = vperm.slane %v4090_v57, %v7398_v19  ;;  %v3847_v0 = vpop.permute.xlu2 %3846 }
 0x71b   : > { %v3852_v10 = vperm.slane %v3847_v0, %v7398_v19 }
 0x71c   : > { %v4207_v8 = vunpack.c.l.bf16 %v4095_v42 }
 0x71d   : > { %v4180_v51 = vunpack.c.l.bf16 %v3852_v10 }
 0x71e   : > { %v4268_v2 = vmul.f32 %v4207_v8, %v4172_v15  ;;  %v4269_v38 = vmul.f32 %v4207_v8, %v4173_v21  ;;  %v4183_v21 = vunpack.c.l.bf16 %v3879_v59 }
 0x71f   : > { %v4214_v42 = vmul.f32 %v4180_v51, %v4118_v29  ;;  %v4215_v35 = vmul.f32 %v4180_v51, %v4119_v43 }
 0x720   : > { %v4302_v5 = vpack.c.bf16 %v4268_v2, %v4266_v11  ;;  %v4303_v25 = vpack.c.bf16 %v4269_v38, %v4267_v52  ;;  %v8427_v38 = vld [vmem:[#allocation32_spill] sm:$0xff] }
 0x721   : > { %v4009_v39 = vpop.permute.xlu1 %4008  ;;  %v4124_v0 = vunpack.c.l.bf16 %v8427_v38  ;;  %v4125_v3 = vunpack.c.h.bf16 %v8427_v38 }
 0x722   : > { %v4014_v22 = vperm.slane %v4009_v39, %v7398_v19  ;;  %v8430_v39 = vld [vmem:[#allocation50_spill] sm:$0xff] }
 0x723   : > { %v7974_v56 = vpop.permute.xlu2 %3999 }
 0x724   : > { %v4198_v4 = vunpack.c.l.bf16 %v4014_v22  ;;  %v4315_v22 = vunpack.c.h.b16 %v4306_v17 }
 0x72a   : > { %v3856_v7 = vpop.permute.xlu1 %3855 }
 0x72b   : > { %v3861_v34 = vperm.slane %v3856_v7, %v7398_v19  ;;  %v3973_v10 = vpop.permute.xlu2 %3972  ;;  %v4221_v7 = vmul.f32 %v4183_v21, %v4125_v3 }
 0x72c   : > { %v4108_v62 = vpop.permute.xlu0 %4107  ;;  %v3978_v23 = vperm.slane %v3973_v10, %v7398_v19 }
 0x72d   : > { %v4113_v45 = vperm.slane %v4108_v62, %v7398_v19  ;;  %v4181_v47 = vunpack.c.l.bf16 %v3861_v34  ;;  %v8428_v62 = vld [vmem:[#allocation31_spill] sm:$0xff] }
 0x72e   : > { %v4122_v49 = vunpack.c.l.bf16 %v8428_v62  ;;  %v4123_v48 = vunpack.c.h.bf16 %v8428_v62  ;;  %v4194_v41 = vunpack.c.l.bf16 %v3978_v23  ;;  %v8436_v23 = vld [vmem:[#allocation24_spill] sm:$0xff] }
 0x72f   : > { %v4209_v55 = vunpack.c.l.bf16 %v4113_v45  ;;  %v4216_v14 = vmul.f32 %v4181_v47, %v4120_v32  ;;  %v4217_v26 = vmul.f32 %v4181_v47, %v4121_v50  ;;  %v4220_v45 = vmul.f32 %v4183_v21, %v4124_v0  ;;  %v8431_v47 = vld [vmem:[#allocation41_spill] sm:$0xff] }
 0x730   : > { %v4149_v40 = vunpack.c.h.bf16 %v8431_v47 }
 0x731   : > { %v4272_v57 = vmul.f32 %v4209_v55, %v4176_v37  ;;  %v4273_v44 = vmul.f32 %v4209_v55, %v4177_v18  ;;  %v4276_v11 = vpack.c.bf16 %v4216_v14, %v4214_v42  ;;  %v4277_v52 = vpack.c.bf16 %v4217_v26, %v4215_v35  ;;  %v8429_v18 = vld [vmem:[#allocation40_spill] sm:$0xff] }
 0x732   : > { %v7988_v2 = vpop.permute.xlu1 %3828  ;;  %v4146_v55 = vunpack.c.l.bf16 %v8429_v18  ;;  %v4147_v59 = vunpack.c.h.bf16 %v8429_v18  ;;  %v4005_v14 = vperm.slane %v7974_v56, %v7398_v19 }
 0x733   : > { %v4304_v6 = vpack.c.bf16 %v4272_v57, %v4270_v33  ;;  %v4305_v15 = vpack.c.bf16 %v4273_v44, %v4271_v30  ;;  %v4148_v33 = vunpack.c.l.bf16 %v8431_v47  ;;  %v8432_v57 = vld [vmem:[#allocation51_spill] sm:$0xff] }
 0x734   : > { %v4156_v44 = vunpack.c.l.bf16 %v8432_v57  ;;  %v4157_v42 = vunpack.c.h.bf16 %v8432_v57  ;;  %v4243_v60 = vmul.f32 %v4194_v41, %v4147_v59  ;;  %v4197_v56 = vunpack.c.l.bf16 %v4005_v14 }
 0x735   : > { %v3865_v8 = vpop.permute.xlu0 %3864  ;;  %4333 = vmatpush.bf16.msrb.mxu1 %v4304_v6  ;;  %4359 = vmatpush.bf16.msrb.mxu3 %v4305_v15  ;;  %v4242_v6 = vmul.f32 %v4194_v41, %v4146_v55 }
 0x736   : > { %v3870_v28 = vperm.slane %v3865_v8, %v7398_v19  ;;  %v4248_v10 = vmul.f32 %v4197_v56, %v4152_v63  ;;  %v4249_v62 = vmul.f32 %v4197_v56, %v4153_v12 }
 0x738   : > { %v4182_v29 = vunpack.c.l.bf16 %v3870_v28 }
 0x739   : > { %4334 = vmatpush.bf16.msrb.mxu1 %v4302_v5  ;;  %4360 = vmatpush.bf16.msrb.mxu3 %v4303_v25  ;;  %v4154_v5 = vunpack.c.l.bf16 %v8430_v39  ;;  %v4155_v25 = vunpack.c.h.bf16 %v8430_v39 }
 0x73a   : > { %v4218_v43 = vmul.f32 %v4182_v29, %v4122_v49  ;;  %v4219_v51 = vmul.f32 %v4182_v29, %v4123_v48  ;;  %v3834_v49 = vperm.slane %v7988_v2, %v7398_v19 }
 0x73b   : > { %v4250_v31 = vmul.f32 %v4198_v4, %v4154_v5 }
 0x73c   : > { %v4278_v34 = vpack.c.bf16 %v4220_v45, %v4218_v43  ;;  %v4279_v24 = vpack.c.bf16 %v4221_v7, %v4219_v51  ;;  %v3982_v50 = vpop.permute.xlu1 %3981  ;;  %v8435_v45 = vld [vmem:[#allocation23_spill] sm:$0xff]  ;;  %v4116_v43 = vunpack.c.l.bf16 %v8436_v23  ;;  %v4117_v51 = vunpack.c.h.bf16 %v8436_v23 }
 0x73d   : > { %v4018_v37 = vpop.permute.xlu0 %4017  ;;  %4335 = vmatpush.bf16.msrb.mxu1 %v4300_v36  ;;  %v3987_v30 = vperm.slane %v3982_v50, %v7398_v19  ;;  %4361 = vmatpush.bf16.msrb.mxu3 %v4301_v27  ;;  %v4251_v36 = vmul.f32 %v4198_v4, %v4155_v25  ;;  %v4114_v7 = vunpack.c.l.bf16 %v8435_v45  ;;  %v4115_v2 = vunpack.c.h.bf16 %v8435_v45 }
 0x73e   : > { %v4023_v32 = vperm.slane %v4018_v37, %v7398_v19  ;;  %4325 = vmatpush.bf16.msrb.mxu0 %v4278_v34  ;;  %4351 = vmatpush.bf16.msrb.mxu2 %v4279_v24  ;;  %v4314_v24 = vunpack.c.l.b16 %v4306_v17 }
 0x73f   : > { %v4195_v26 = vunpack.c.l.bf16 %v3987_v30 }
 0x740   : > { %v4199_v35 = vunpack.c.l.bf16 %v4023_v32  ;;  %v4316_v32 = vpack.c.b16 %v4314_v24, %v4314_v24 }
 0x741   : > { %4336 = vmatpush.bf16.msrb.mxu1 %v4298_v54  ;;  %v4244_v13 = vmul.f32 %v4195_v26, %v4148_v33  ;;  %v4245_v27 = vmul.f32 %v4195_v26, %v4149_v40  ;;  %4362 = vmatpush.bf16.msrb.mxu3 %v4299_v46  ;;  %v4150_v54 = vunpack.c.l.bf16 %v8434_v61  ;;  %v4151_v46 = vunpack.c.h.bf16 %v8434_v61 }
 0x742   : > { %v4252_v15 = vmul.f32 %v4199_v35, %v4156_v44  ;;  %v4253_v21 = vmul.f32 %v4199_v35, %v4157_v42  ;;  %4326 = vmatpush.bf16.msrb.mxu0 %v4276_v11  ;;  %4352 = vmatpush.bf16.msrb.mxu2 %v4277_v52 }
 0x743   : > { %v4290_v0 = vpack.c.bf16 %v4244_v13, %v4242_v6  ;;  %v4291_v3 = vpack.c.bf16 %v4245_v27, %v4243_v60 }
 0x744   : > { %v4294_v8 = vpack.c.bf16 %v4252_v15, %v4250_v31  ;;  %v4295_v28 = vpack.c.bf16 %v4253_v21, %v4251_v36 }
 0x745   : > { %v3991_v38 = vpop.permute.xlu0 %3990  ;;  %4337 = vmatpush.bf16.msrb.mxu1 %v4296_v53  ;;  %4363 = vmatpush.bf16.msrb.mxu3 %v4297_v16  ;;  %v4178_v16 = vunpack.c.l.bf16 %v3834_v49 }
 0x746   : > { %v3996_v11 = vperm.slane %v3991_v38, %v7398_v19 }
 0x747   : > { %v4210_v4 = vmul.f32 %v4178_v16, %v4114_v7  ;;  %v4211_v37 = vmul.f32 %v4178_v16, %v4115_v2 }
 0x748   : > { %v4196_v52 = vunpack.c.l.bf16 %v3996_v11 }
 0x749   : > { %4338 = vmatpush.bf16.msrb.mxu1 %v4294_v8  ;;  %4364 = vmatpush.bf16.msrb.mxu3 %v4295_v28 }
 0x74a   : > { %v4246_v20 = vmul.f32 %v4196_v52, %v4150_v54  ;;  %v4247_v9 = vmul.f32 %v4196_v52, %v4151_v46 }
 0x74c   : > { %v4292_v53 = vpack.c.bf16 %v4248_v10, %v4246_v20  ;;  %v4293_v48 = vpack.c.bf16 %v4249_v62, %v4247_v9 }
 0x74d   : > { %v3838_v1 = vpop.permute.xlu0 %3837 }
 0x74e   : > { %v3843_v29 = vperm.slane %v3838_v1, %v7398_v19  ;;  %4339 = vmatpush.bf16.msrb.mxu1 %v4292_v53  ;;  %4365 = vmatpush.bf16.msrb.mxu3 %v4293_v48  ;;  %v4317_v19 = vpack.c.b16 %v4315_v22, %v4315_v22 }
 0x750   : > { %v4179_v34 = vunpack.c.l.bf16 %v3843_v29 }
 0x752   : > { %v4212_v18 = vmul.f32 %v4179_v34, %v4116_v43  ;;  %v4213_v55 = vmul.f32 %v4179_v34, %v4117_v51  ;;  %4340 = vmatpush.bf16.msrb.mxu1 %v4290_v0  ;;  %4366 = vmatpush.bf16.msrb.mxu3 %v4291_v3 }
 0x754   : > { %v4274_v59 = vpack.c.bf16 %v4212_v18, %v4210_v4  ;;  %v4275_v41 = vpack.c.bf16 %v4213_v55, %v4211_v37 }
 0x755   : > { %4341 = vmatmul.bf16.vlgmr.msrb.gmra.mxu1 %v4317_v19  ;;  %4367 = vmatmul.bf16.vlgmr.msrb.gmra.mxu3 %v4317_v19  ;;  %v4311_v39 = vpop.permute.xlu0 %4310 }
 0x756   : > { %4327 = vmatpush.bf16.msrb.mxu0 %v4274_v59  ;;  %4353 = vmatpush.bf16.msrb.mxu2 %v4275_v41 }
 0x759   : > { %4328 = vmatmul.bf16.vlgmr.msrb.gmra.mxu0 %v4316_v32  ;;  %4354 = vmatmul.bf16.vlgmr.msrb.gmra.mxu2 %v4316_v32 }
 0x7d2   : > { %v4342_v50 = vpop.f32.mrf.mxu1 }
 0x7d6   : > { %v4329_v5 = vpop.f32.mrf.mxu0 }
 0x7d7   : > { %v4330_v25 = vadd.f32 %v4329_v5, %v4311_v39 }
 0x7d8   : > { %v4368_v33 = vpop.f32.mrf.mxu3 }
 0x7d9   : > { %v4343_v47 = vadd.f32 %v4342_v50, %v4330_v25 }
 0x7da   : > { %v4344_v30 = vpop.f32.mrf.mxu1 }
 0x7db   : > { %4372 = vst [vmem:[%s374_s13] sm:$0xff] %v4343_v47 }
 0x7dc   : > { %v4355_v57 = vpop.f32.mrf.mxu2 }
 0x7dd   : > { %v4356_v44 = vadd.f32 %v4355_v57, %v4311_v39 }
 0x7de   : > { %v4331_v42 = vpop.f32.mrf.mxu0 }
 0x7df   : > { %v4369_v35 = vadd.f32 %v4368_v33, %v4356_v44 }
 0x7e0   : > { %v4370_v40 = vpop.f32.mrf.mxu3 }
 0x7e1   : > { %4373 = vst [vmem:[%s374_s13 + $0x8] sm:$0xff] %v4369_v35 }
 0x7e2   : > { %5524 = shalt.err (!%p5521_p0)
}
 0x7e3   : > { %5196 = dma.vmem_to_hbm [thread:$0]  (%p5722_p7), %s4389_s18, 256, %s4391_s23, %s4375_s30  }
 0x7e4   : > { %v4357_v31 = vpop.f32.mrf.mxu2 }
 0x7e5 PF: > { %s8438_s21 = sld [smem:[#allocation14_spill]]  ;;  %p5210_p3 = pnand %p4498_p11, %p5688_p6 }
 0x7e7   : > { %p5211_p5 = pneg %p5210_p3 }
 0x7eb   : > { %s4402_s16 = sand.u32 1, %s8438_s21  }
 0x7ec   : > { %s4403_s22 = scalar_lea.sflag [#allocation6], %s4402_s16 }
 0x7ed   : > { %5558 = dma.done.wait (%p5211_p5), %s4403_s22, 256  }
 0x7ee   : > { %5560 = vsyncadd (%p5211_p5), %s4403_s22, 4294967040  ;;  %s25_s10 = sadd.s32 1, %s5583_s10   ;;  %s8440_s4 = sld [smem:[#allocation16_spill]] }
 0x7ef   : > { %p22_p9 = scmp.ge.s32.totalorder %s25_s10, 4   ;;  %s8441_s27 = smov %s5567_s28 }
 0x7f0   : > { %s8442_s28 = smov %s5571_s29  ;;  %s8443_s29 = smov %s5731_s11 }
 0x7f1   : > { %s8444_s30 = smov %s5579_s9  ;;  %24 = sbr.rel (!%p22_p9) target bundleno = 10 (0xa), region = 114 }
 0x7f4   : > { %s8445_s9 = smov %s8440_s4 }
 0x7f6   :  { %4409 = vsyncpa [#allocation5], 1 }
 0x7f7   :  { %4411 = vsyncpa [#allocation5 + $0x1], 1 }
 0x7f8   :  { %4412 = vsyncpa [#allocation8], 1 }
 0x7f9   :  { %4413 = vsyncpa [#allocation6], 1 }
 0x7fa   :  { %4415 = vsyncpa [#allocation6 + $0x1], 1 }

</bundles_post_ra>
